<compile_context>
chip_gen: v5e
topology: v5e:2x2
jax: 0.10.0
libtpu: 0.0.40
codegen_flags: <defaults>
</compile_context>

<pallas_src>
import math

import numpy as np
import jax
import jax.numpy as jnp
from jax import lax
from jax.experimental import pallas as pl
from jax.experimental.pallas import tpu as pltpu

# ---- small synthetic RoBERTa config ----
VOCAB = 100
HIDDEN = 32
HEADS = 4
HEAD_DIM = HIDDEN // HEADS
INTER = 64
NUM_LAYERS = 2
MAX_POS = 40
LN_EPS = 1e-5

# RoBERTa special tokens
CLS_IDX = 0   # <s>
PAD_IDX = 1   # <pad>
SEP_IDX = 2   # </s>

BATCH = 2
SEQ = 8
BS = BATCH * SEQ
LAYERS = [-1]          # matches default layers='-1'
POOLED_CLS = False     # default

NEG_INF = -10000.0     # older HF / fastNLP additive-mask convention


# -------------------- packed-weight slab layout (shared by packer & kernel) ----
def _round8(n):
    return (n + 7) & ~7


VOCAB_PAD = _round8(VOCAB)      # pad vocab rows so every block is 8-row aligned
SLAB_COLS = 3 * HIDDEN          # widest block (wqkv) sets the lane width

_LAYER_PARAM_ORDER = ("wqkv", "bqkv", "wo", "bo", "ln1_g", "ln1_b",
                      "w1", "b1", "w2", "b2", "ln2_g", "ln2_b")


def _build_layout():
    layout, off = {}, 0

    def add(key, rows, cols):
        nonlocal off
        layout[key] = (off, rows, cols)
        off += _round8(rows)

    add("word_emb", VOCAB_PAD, HIDDEN)   # real data: VOCAB rows, rest stays zero
    add("pos_emb", MAX_POS, HIDDEN)
    add("type_emb", 1, HIDDEN)
    add("emb_ln_g", 1, HIDDEN)
    add("emb_ln_b", 1, HIDDEN)
    for l in range(NUM_LAYERS):
        add(("wqkv", l), HIDDEN, 3 * HIDDEN)
        add(("bqkv", l), 1, 3 * HIDDEN)
        add(("wo", l), HIDDEN, HIDDEN)
        add(("bo", l), 1, HIDDEN)
        add(("ln1_g", l), 1, HIDDEN)
        add(("ln1_b", l), 1, HIDDEN)
        add(("w1", l), HIDDEN, INTER)
        add(("b1", l), 1, INTER)
        add(("w2", l), INTER, HIDDEN)
        add(("b2", l), 1, HIDDEN)
        add(("ln2_g", l), 1, HIDDEN)
        add(("ln2_b", l), 1, HIDDEN)
    return layout, off


_LAYOUT, SLAB_ROWS = _build_layout()


def _slots_for(hidden_idx):
    """Output slots that want hidden state `hidden_idx` (0 = embedding output)."""
    return [j for j, l in enumerate(LAYERS) if l % (NUM_LAYERS + 1) == hidden_idx]


# -------------------- in-kernel helpers --------------------
def _ln(x, g, b):
    mu = jnp.mean(x, axis=-1, keepdims=True)
    var = jnp.mean(jnp.square(x - mu), axis=-1, keepdims=True)
    return (x - mu) * lax.rsqrt(var + LN_EPS) * g + b


def _gelu(x):
    # tanh-form GELU (HF RoBERTa "gelu" is erf-based; the tanh form is ~1e-3
    # close and guaranteed to lower to the TPU EUP).
    c = math.sqrt(2.0 / math.pi)
    return 0.5 * x * (1.0 + jnp.tanh(c * (x + 0.044715 * x * x * x)))


def _store_hidden(o_ref, hidden_idx, x):
    for j in _slots_for(hidden_idx):
        # (BS, H) -> (B, S, H) is an 8-sublane-aligned leading-dim split (pure view).
        o_ref[j] = x.reshape(BATCH, SEQ, HIDDEN).astype(o_ref.dtype)


# -------------------- single fused forward kernel --------------------
def fused_forward_kernel(wp_ref, slab_ref, o_ref):
    f32 = jnp.float32

    def blk(name, layer=None):
        off, rows, cols = _LAYOUT[name if layer is None else (name, layer)]
        return slab_ref[off:off + rows, :cols]         # static slice -> cheap view load

    # ---- 1) scalar pass over word-piece ids (SMEM): build id / position columns,
    #         key-padding mask row and batch-id column/row.  Vectors are built
    #         from 2-D iotas + selects only (no gathers, no reshapes).
    row_iota = lax.broadcasted_iota(jnp.int32, (BS, 1), 0)
    col_iota = lax.broadcasted_iota(jnp.int32, (1, BS), 1)
    wid_col = jnp.zeros((BS, 1), jnp.int32)
    pid_col = jnp.zeros((BS, 1), jnp.int32)
    qbatch_col = jnp.zeros((BS, 1), jnp.int32)
    kbatch_row = jnp.zeros((1, BS), jnp.int32)
    key_neg = jnp.zeros((1, BS), f32)

    for b in range(BATCH):
        run = 0
        for s in range(SEQ):
            i = b * SEQ + s
            wid = wp_ref[b, s]                                   # SMEM scalar read
            notpad = (wid != PAD_IDX).astype(jnp.int32)
            run = run + notpad
            pid = run * notpad + PAD_IDX                         # RoBERTa position ids
            neg = (1 - notpad).astype(f32) * NEG_INF             # key padding penalty
            at_row = row_iota == i
            at_col = col_iota == i
            wid_col = jnp.where(at_row, wid, wid_col)
            pid_col = jnp.where(at_row, pid, pid_col)
            qbatch_col = jnp.where(at_row, b, qbatch_col)
            kbatch_row = jnp.where(at_col, b, kbatch_row)
            key_neg = jnp.where(at_col, neg, key_neg)

    # Additive mask for batch-flattened (BS, BS) attention scores:
    # key padding inside the batch block, NEG_INF for cross-batch entries.
    mask_add = jnp.where(qbatch_col == kbatch_row, key_neg, jnp.float32(NEG_INF))

    # ---- 2) embedding lookups as one-hot matmuls on the MXU ----
    onehot_w = (lax.broadcasted_iota(jnp.int32, (BS, VOCAB_PAD), 1) == wid_col).astype(f32)
    onehot_p = (lax.broadcasted_iota(jnp.int32, (BS, MAX_POS), 1) == pid_col).astype(f32)
    emb = jnp.dot(onehot_w, blk("word_emb"), preferred_element_type=f32)
    emb = emb + jnp.dot(onehot_p, blk("pos_emb"), preferred_element_type=f32)
    emb = emb + blk("type_emb")                                  # token_type_ids == 0

    x = _ln(emb, blk("emb_ln_g"), blk("emb_ln_b"))               # (BS, H)
    _store_hidden(o_ref, 0, x)

    # ---- 3) encoder layers; all weights resident in VMEM for the whole forward ----
    scale = 1.0 / math.sqrt(HEAD_DIM)
    for layer in range(NUM_LAYERS):
        # fused QKV projection: one MXU pass, one bias add
        qkv = jnp.dot(x, blk("wqkv", layer),
                      preferred_element_type=f32) + blk("bqkv", layer)     # (BS, 3H)
        wo = blk("wo", layer)
        attn = jnp.zeros((BS, HIDDEN), f32)
        for h in range(HEADS):                       # unrolled; accumulate per head
            lo = h * HEAD_DIM
            q = qkv[:, lo:lo + HEAD_DIM]                                   # (BS, dh)
            k = qkv[:, HIDDEN + lo:HIDDEN + lo + HEAD_DIM]
            v = qkv[:, 2 * HIDDEN + lo:2 * HIDDEN + lo + HEAD_DIM]
            sc = lax.dot_general(q, k, (((1,), (1,)), ((), ())),
                                 preferred_element_type=f32) * scale + mask_add
            sc = sc - jnp.max(sc, axis=-1, keepdims=True)
            p = jnp.exp(sc)
            p = p * pl.reciprocal(jnp.sum(p, axis=-1, keepdims=True), approx=True)
            ctx = jnp.dot(p, v, preferred_element_type=f32)                # (BS, dh)
            attn = attn + jnp.dot(ctx, wo[lo:lo + HEAD_DIM, :],
                                  preferred_element_type=f32)              # no concat
        attn = attn + blk("bo", layer)
        h1 = _ln(attn + x, blk("ln1_g", layer), blk("ln1_b", layer))

        ff = jnp.dot(h1, blk("w1", layer), preferred_element_type=f32) + blk("b1", layer)
        ff = _gelu(ff)
        ff = jnp.dot(ff, blk("w2", layer), preferred_element_type=f32) + blk("b2", layer)
        x = _ln(ff + h1, blk("ln2_g", layer), blk("ln2_b", layer))
        _store_hidden(o_ref, layer + 1, x)


# -------------------- wrapper: one pallas_call, nothing else --------------------
def wordpiece_roberta_forward(word_pieces, packed_weights):
    # pooled_cls=False (default): pooler output never substituted into the CLS row.
    # TODO(synk): pooled_cls=True path (tanh pooler replacing [:, 0]) not exercised here.
    return pl.pallas_call(
        fused_forward_kernel,
        out_shape=jax.ShapeDtypeStruct((len(LAYERS), BATCH, SEQ, HIDDEN), jnp.float32),
        in_specs=[pl.BlockSpec(memory_space=pltpu.MemorySpace.SMEM),   # word_pieces ids
                  pl.BlockSpec(memory_space=pltpu.MemorySpace.VMEM)],  # packed weight slab
        out_specs=pl.BlockSpec(memory_space=pltpu.MemorySpace.VMEM),
    )(word_pieces, packed_weights)


# -------------------- deterministic parameter init & host-side packing --------------------
def init_params(key):
    keys = iter(jax.random.split(key, 64))

    def nrm(shape, scale=0.02):
        return (scale * jax.random.normal(next(keys), shape)).astype(jnp.float32)

    params = {
        "word_emb": nrm((VOCAB, HIDDEN)).at[PAD_IDX].set(0.0),   # padding_idx row
        "pos_emb": nrm((MAX_POS, HIDDEN)),
        "type_emb": nrm((1, HIDDEN)),
        "emb_ln_g": jnp.ones((1, HIDDEN), jnp.float32),
        "emb_ln_b": jnp.zeros((1, HIDDEN), jnp.float32),
        "layers": [],
    }
    for _ in range(NUM_LAYERS):
        params["layers"].append({
            "wqkv": nrm((HIDDEN, 3 * HIDDEN)), "bqkv": nrm((1, 3 * HIDDEN)),
            "wo": nrm((HIDDEN, HIDDEN)), "bo": nrm((1, HIDDEN)),
            "ln1_g": jnp.ones((1, HIDDEN), jnp.float32),
            "ln1_b": jnp.zeros((1, HIDDEN), jnp.float32),
            "w1": nrm((HIDDEN, INTER)), "b1": nrm((1, INTER)),
            "w2": nrm((INTER, HIDDEN)), "b2": nrm((1, HIDDEN)),
            "ln2_g": jnp.ones((1, HIDDEN), jnp.float32),
            "ln2_b": jnp.zeros((1, HIDDEN), jnp.float32),
        })
    return params


def pack_params(params):
    """One-time host-side (numpy) packing of all weights into a single f32 slab so the
    kernel sees exactly one VMEM input / DMA instead of ~28 tiny descriptor issues."""
    slab = np.zeros((SLAB_ROWS, SLAB_COLS), np.float32)

    def put(key, arr):
        off, _, _ = _LAYOUT[key]
        a = np.asarray(arr, np.float32)
        slab[off:off + a.shape[0], :a.shape[1]] = a

    put("word_emb", params["word_emb"])
    put("pos_emb", params["pos_emb"])
    put("type_emb", params["type_emb"])
    put("emb_ln_g", params["emb_ln_g"])
    put("emb_ln_b", params["emb_ln_b"])
    for l, lp in enumerate(params["layers"]):
        for name in _LAYER_PARAM_ORDER:
            put((name, l), lp[name])
    return jnp.asarray(slab)


if __name__ == "__main__":
    key = jax.random.PRNGKey(0)
    pkey, dkey = jax.random.split(key)
    params = init_params(pkey)
    slab = pack_params(params)

    # Synthetic word-piece ids: <s> ... </s> with trailing <pad> on row 1.
    body = jax.random.randint(dkey, (BATCH, SEQ), 4, VOCAB, dtype=jnp.int32)
    word_pieces = body.at[:, 0].set(CLS_IDX)
    word_pieces = word_pieces.at[0, SEQ - 1].set(SEP_IDX)
    word_pieces = word_pieces.at[1, SEQ - 3].set(SEP_IDX)
    word_pieces = word_pieces.at[1, SEQ - 2:].set(PAD_IDX)

    out = wordpiece_roberta_forward(word_pieces, slab)
    out = jax.block_until_ready(out)

    assert out.shape == (len(LAYERS), BATCH, SEQ, HIDDEN), out.shape
    assert bool(jnp.all(jnp.isfinite(out)))
    print("KERNEL_OK")
</pallas_src>

<mosaic_0001>
module attributes {stable_mosaic.version = 11 : i64} {
  func.func @fused_forward_kernel(%arg0: memref<2x8xi32, #tpu.memory_space<smem>>, %arg1: memref<616x96xf32, #tpu.memory_space<vmem>>, %arg2: memref<1x2x8x32xf32, #tpu.memory_space<vmem>>) attributes {dimension_semantics = [], scalar_prefetch = 0 : i64, scratch_operands = 0 : i64, tpu.core_type = #tpu.core_type<tc>} {
    %0 = tpu.iota {dimensions = array<i32: 0>} : vector<16x1xi32>
    %1 = tpu.iota {dimensions = array<i32: 1>} : vector<1x16xi32>
    %c0_i32 = arith.constant 0 : i32
    %2 = vector.broadcast %c0_i32 : i32 to vector<16x1xi32>
    %c0_i32_0 = arith.constant 0 : i32
    %3 = vector.broadcast %c0_i32_0 : i32 to vector<16x1xi32>
    %c0_i32_1 = arith.constant 0 : i32
    %4 = vector.broadcast %c0_i32_1 : i32 to vector<16x1xi32>
    %c0_i32_2 = arith.constant 0 : i32
    %5 = vector.broadcast %c0_i32_2 : i32 to vector<1x16xi32>
    %cst = arith.constant 0.000000e+00 : f32
    %6 = vector.broadcast %cst : f32 to vector<1x16xf32>
    %c0 = arith.constant 0 : index
    %c0_3 = arith.constant 0 : index
    %7 = memref.load %arg0[%c0, %c0_3] : memref<2x8xi32, #tpu.memory_space<smem>>
    %c1_i32 = arith.constant 1 : i32
    %8 = arith.cmpi ne, %7, %c1_i32 : i32
    %9 = arith.extui %8 : i1 to i32
    %c0_i32_4 = arith.constant 0 : i32
    %10 = arith.addi %c0_i32_4, %9 : i32
    %11 = arith.muli %10, %9 : i32
    %c1_i32_5 = arith.constant 1 : i32
    %12 = arith.addi %11, %c1_i32_5 : i32
    %c1_i32_6 = arith.constant 1 : i32
    %13 = arith.subi %c1_i32_6, %9 : i32
    %14 = arith.sitofp %13 : i32 to f32
    %cst_7 = arith.constant -1.000000e+04 : f32
    %15 = arith.mulf %14, %cst_7 : f32
    %c0_i32_8 = arith.constant 0 : i32
    %16 = vector.broadcast %c0_i32_8 : i32 to vector<16x1xi32>
    %17 = arith.cmpi eq, %0, %16 : vector<16x1xi32>
    %c0_i32_9 = arith.constant 0 : i32
    %18 = vector.broadcast %c0_i32_9 : i32 to vector<1x16xi32>
    %19 = arith.cmpi eq, %1, %18 : vector<1x16xi32>
    %20 = vector.broadcast %7 : i32 to vector<16x1xi32>
    %21 = arith.select %17, %20, %2 : vector<16x1xi1>, vector<16x1xi32>
    %22 = vector.broadcast %12 : i32 to vector<16x1xi32>
    %23 = arith.select %17, %22, %3 : vector<16x1xi1>, vector<16x1xi32>
    %c0_i32_10 = arith.constant 0 : i32
    %24 = vector.broadcast %c0_i32_10 : i32 to vector<16x1xi32>
    %25 = arith.select %17, %24, %4 : vector<16x1xi1>, vector<16x1xi32>
    %c0_i32_11 = arith.constant 0 : i32
    %26 = vector.broadcast %c0_i32_11 : i32 to vector<1x16xi32>
    %27 = arith.select %19, %26, %5 : vector<1x16xi1>, vector<1x16xi32>
    %28 = vector.broadcast %15 : f32 to vector<1x16xf32>
    %29 = arith.select %19, %28, %6 : vector<1x16xi1>, vector<1x16xf32>
    %c0_12 = arith.constant 0 : index
    %c1 = arith.constant 1 : index
    %30 = memref.load %arg0[%c0_12, %c1] : memref<2x8xi32, #tpu.memory_space<smem>>
    %c1_i32_13 = arith.constant 1 : i32
    %31 = arith.cmpi ne, %30, %c1_i32_13 : i32
    %32 = arith.extui %31 : i1 to i32
    %33 = arith.addi %10, %32 : i32
    %34 = arith.muli %33, %32 : i32
    %c1_i32_14 = arith.constant 1 : i32
    %35 = arith.addi %34, %c1_i32_14 : i32
    %c1_i32_15 = arith.constant 1 : i32
    %36 = arith.subi %c1_i32_15, %32 : i32
    %37 = arith.sitofp %36 : i32 to f32
    %cst_16 = arith.constant -1.000000e+04 : f32
    %38 = arith.mulf %37, %cst_16 : f32
    %c1_i32_17 = arith.constant 1 : i32
    %39 = vector.broadcast %c1_i32_17 : i32 to vector<16x1xi32>
    %40 = arith.cmpi eq, %0, %39 : vector<16x1xi32>
    %c1_i32_18 = arith.constant 1 : i32
    %41 = vector.broadcast %c1_i32_18 : i32 to vector<1x16xi32>
    %42 = arith.cmpi eq, %1, %41 : vector<1x16xi32>
    %43 = vector.broadcast %30 : i32 to vector<16x1xi32>
    %44 = arith.select %40, %43, %21 : vector<16x1xi1>, vector<16x1xi32>
    %45 = vector.broadcast %35 : i32 to vector<16x1xi32>
    %46 = arith.select %40, %45, %23 : vector<16x1xi1>, vector<16x1xi32>
    %c0_i32_19 = arith.constant 0 : i32
    %47 = vector.broadcast %c0_i32_19 : i32 to vector<16x1xi32>
    %48 = arith.select %40, %47, %25 : vector<16x1xi1>, vector<16x1xi32>
    %c0_i32_20 = arith.constant 0 : i32
    %49 = vector.broadcast %c0_i32_20 : i32 to vector<1x16xi32>
    %50 = arith.select %42, %49, %27 : vector<1x16xi1>, vector<1x16xi32>
    %51 = vector.broadcast %38 : f32 to vector<1x16xf32>
    %52 = arith.select %42, %51, %29 : vector<1x16xi1>, vector<1x16xf32>
    %c0_21 = arith.constant 0 : index
    %c2 = arith.constant 2 : index
    %53 = memref.load %arg0[%c0_21, %c2] : memref<2x8xi32, #tpu.memory_space<smem>>
    %c1_i32_22 = arith.constant 1 : i32
    %54 = arith.cmpi ne, %53, %c1_i32_22 : i32
    %55 = arith.extui %54 : i1 to i32
    %56 = arith.addi %33, %55 : i32
    %57 = arith.muli %56, %55 : i32
    %c1_i32_23 = arith.constant 1 : i32
    %58 = arith.addi %57, %c1_i32_23 : i32
    %c1_i32_24 = arith.constant 1 : i32
    %59 = arith.subi %c1_i32_24, %55 : i32
    %60 = arith.sitofp %59 : i32 to f32
    %cst_25 = arith.constant -1.000000e+04 : f32
    %61 = arith.mulf %60, %cst_25 : f32
    %c2_i32 = arith.constant 2 : i32
    %62 = vector.broadcast %c2_i32 : i32 to vector<16x1xi32>
    %63 = arith.cmpi eq, %0, %62 : vector<16x1xi32>
    %c2_i32_26 = arith.constant 2 : i32
    %64 = vector.broadcast %c2_i32_26 : i32 to vector<1x16xi32>
    %65 = arith.cmpi eq, %1, %64 : vector<1x16xi32>
    %66 = vector.broadcast %53 : i32 to vector<16x1xi32>
    %67 = arith.select %63, %66, %44 : vector<16x1xi1>, vector<16x1xi32>
    %68 = vector.broadcast %58 : i32 to vector<16x1xi32>
    %69 = arith.select %63, %68, %46 : vector<16x1xi1>, vector<16x1xi32>
    %c0_i32_27 = arith.constant 0 : i32
    %70 = vector.broadcast %c0_i32_27 : i32 to vector<16x1xi32>
    %71 = arith.select %63, %70, %48 : vector<16x1xi1>, vector<16x1xi32>
    %c0_i32_28 = arith.constant 0 : i32
    %72 = vector.broadcast %c0_i32_28 : i32 to vector<1x16xi32>
    %73 = arith.select %65, %72, %50 : vector<1x16xi1>, vector<1x16xi32>
    %74 = vector.broadcast %61 : f32 to vector<1x16xf32>
    %75 = arith.select %65, %74, %52 : vector<1x16xi1>, vector<1x16xf32>
    %c0_29 = arith.constant 0 : index
    %c3 = arith.constant 3 : index
    %76 = memref.load %arg0[%c0_29, %c3] : memref<2x8xi32, #tpu.memory_space<smem>>
    %c1_i32_30 = arith.constant 1 : i32
    %77 = arith.cmpi ne, %76, %c1_i32_30 : i32
    %78 = arith.extui %77 : i1 to i32
    %79 = arith.addi %56, %78 : i32
    %80 = arith.muli %79, %78 : i32
    %c1_i32_31 = arith.constant 1 : i32
    %81 = arith.addi %80, %c1_i32_31 : i32
    %c1_i32_32 = arith.constant 1 : i32
    %82 = arith.subi %c1_i32_32, %78 : i32
    %83 = arith.sitofp %82 : i32 to f32
    %cst_33 = arith.constant -1.000000e+04 : f32
    %84 = arith.mulf %83, %cst_33 : f32
    %c3_i32 = arith.constant 3 : i32
    %85 = vector.broadcast %c3_i32 : i32 to vector<16x1xi32>
    %86 = arith.cmpi eq, %0, %85 : vector<16x1xi32>
    %c3_i32_34 = arith.constant 3 : i32
    %87 = vector.broadcast %c3_i32_34 : i32 to vector<1x16xi32>
    %88 = arith.cmpi eq, %1, %87 : vector<1x16xi32>
    %89 = vector.broadcast %76 : i32 to vector<16x1xi32>
    %90 = arith.select %86, %89, %67 : vector<16x1xi1>, vector<16x1xi32>
    %91 = vector.broadcast %81 : i32 to vector<16x1xi32>
    %92 = arith.select %86, %91, %69 : vector<16x1xi1>, vector<16x1xi32>
    %c0_i32_35 = arith.constant 0 : i32
    %93 = vector.broadcast %c0_i32_35 : i32 to vector<16x1xi32>
    %94 = arith.select %86, %93, %71 : vector<16x1xi1>, vector<16x1xi32>
    %c0_i32_36 = arith.constant 0 : i32
    %95 = vector.broadcast %c0_i32_36 : i32 to vector<1x16xi32>
    %96 = arith.select %88, %95, %73 : vector<1x16xi1>, vector<1x16xi32>
    %97 = vector.broadcast %84 : f32 to vector<1x16xf32>
    %98 = arith.select %88, %97, %75 : vector<1x16xi1>, vector<1x16xf32>
    %c0_37 = arith.constant 0 : index
    %c4 = arith.constant 4 : index
    %99 = memref.load %arg0[%c0_37, %c4] : memref<2x8xi32, #tpu.memory_space<smem>>
    %c1_i32_38 = arith.constant 1 : i32
    %100 = arith.cmpi ne, %99, %c1_i32_38 : i32
    %101 = arith.extui %100 : i1 to i32
    %102 = arith.addi %79, %101 : i32
    %103 = arith.muli %102, %101 : i32
    %c1_i32_39 = arith.constant 1 : i32
    %104 = arith.addi %103, %c1_i32_39 : i32
    %c1_i32_40 = arith.constant 1 : i32
    %105 = arith.subi %c1_i32_40, %101 : i32
    %106 = arith.sitofp %105 : i32 to f32
    %cst_41 = arith.constant -1.000000e+04 : f32
    %107 = arith.mulf %106, %cst_41 : f32
    %c4_i32 = arith.constant 4 : i32
    %108 = vector.broadcast %c4_i32 : i32 to vector<16x1xi32>
    %109 = arith.cmpi eq, %0, %108 : vector<16x1xi32>
    %c4_i32_42 = arith.constant 4 : i32
    %110 = vector.broadcast %c4_i32_42 : i32 to vector<1x16xi32>
    %111 = arith.cmpi eq, %1, %110 : vector<1x16xi32>
    %112 = vector.broadcast %99 : i32 to vector<16x1xi32>
    %113 = arith.select %109, %112, %90 : vector<16x1xi1>, vector<16x1xi32>
    %114 = vector.broadcast %104 : i32 to vector<16x1xi32>
    %115 = arith.select %109, %114, %92 : vector<16x1xi1>, vector<16x1xi32>
    %c0_i32_43 = arith.constant 0 : i32
    %116 = vector.broadcast %c0_i32_43 : i32 to vector<16x1xi32>
    %117 = arith.select %109, %116, %94 : vector<16x1xi1>, vector<16x1xi32>
    %c0_i32_44 = arith.constant 0 : i32
    %118 = vector.broadcast %c0_i32_44 : i32 to vector<1x16xi32>
    %119 = arith.select %111, %118, %96 : vector<1x16xi1>, vector<1x16xi32>
    %120 = vector.broadcast %107 : f32 to vector<1x16xf32>
    %121 = arith.select %111, %120, %98 : vector<1x16xi1>, vector<1x16xf32>
    %c0_45 = arith.constant 0 : index
    %c5 = arith.constant 5 : index
    %122 = memref.load %arg0[%c0_45, %c5] : memref<2x8xi32, #tpu.memory_space<smem>>
    %c1_i32_46 = arith.constant 1 : i32
    %123 = arith.cmpi ne, %122, %c1_i32_46 : i32
    %124 = arith.extui %123 : i1 to i32
    %125 = arith.addi %102, %124 : i32
    %126 = arith.muli %125, %124 : i32
    %c1_i32_47 = arith.constant 1 : i32
    %127 = arith.addi %126, %c1_i32_47 : i32
    %c1_i32_48 = arith.constant 1 : i32
    %128 = arith.subi %c1_i32_48, %124 : i32
    %129 = arith.sitofp %128 : i32 to f32
    %cst_49 = arith.constant -1.000000e+04 : f32
    %130 = arith.mulf %129, %cst_49 : f32
    %c5_i32 = arith.constant 5 : i32
    %131 = vector.broadcast %c5_i32 : i32 to vector<16x1xi32>
    %132 = arith.cmpi eq, %0, %131 : vector<16x1xi32>
    %c5_i32_50 = arith.constant 5 : i32
    %133 = vector.broadcast %c5_i32_50 : i32 to vector<1x16xi32>
    %134 = arith.cmpi eq, %1, %133 : vector<1x16xi32>
    %135 = vector.broadcast %122 : i32 to vector<16x1xi32>
    %136 = arith.select %132, %135, %113 : vector<16x1xi1>, vector<16x1xi32>
    %137 = vector.broadcast %127 : i32 to vector<16x1xi32>
    %138 = arith.select %132, %137, %115 : vector<16x1xi1>, vector<16x1xi32>
    %c0_i32_51 = arith.constant 0 : i32
    %139 = vector.broadcast %c0_i32_51 : i32 to vector<16x1xi32>
    %140 = arith.select %132, %139, %117 : vector<16x1xi1>, vector<16x1xi32>
    %c0_i32_52 = arith.constant 0 : i32
    %141 = vector.broadcast %c0_i32_52 : i32 to vector<1x16xi32>
    %142 = arith.select %134, %141, %119 : vector<1x16xi1>, vector<1x16xi32>
    %143 = vector.broadcast %130 : f32 to vector<1x16xf32>
    %144 = arith.select %134, %143, %121 : vector<1x16xi1>, vector<1x16xf32>
    %c0_53 = arith.constant 0 : index
    %c6 = arith.constant 6 : index
    %145 = memref.load %arg0[%c0_53, %c6] : memref<2x8xi32, #tpu.memory_space<smem>>
    %c1_i32_54 = arith.constant 1 : i32
    %146 = arith.cmpi ne, %145, %c1_i32_54 : i32
    %147 = arith.extui %146 : i1 to i32
    %148 = arith.addi %125, %147 : i32
    %149 = arith.muli %148, %147 : i32
    %c1_i32_55 = arith.constant 1 : i32
    %150 = arith.addi %149, %c1_i32_55 : i32
    %c1_i32_56 = arith.constant 1 : i32
    %151 = arith.subi %c1_i32_56, %147 : i32
    %152 = arith.sitofp %151 : i32 to f32
    %cst_57 = arith.constant -1.000000e+04 : f32
    %153 = arith.mulf %152, %cst_57 : f32
    %c6_i32 = arith.constant 6 : i32
    %154 = vector.broadcast %c6_i32 : i32 to vector<16x1xi32>
    %155 = arith.cmpi eq, %0, %154 : vector<16x1xi32>
    %c6_i32_58 = arith.constant 6 : i32
    %156 = vector.broadcast %c6_i32_58 : i32 to vector<1x16xi32>
    %157 = arith.cmpi eq, %1, %156 : vector<1x16xi32>
    %158 = vector.broadcast %145 : i32 to vector<16x1xi32>
    %159 = arith.select %155, %158, %136 : vector<16x1xi1>, vector<16x1xi32>
    %160 = vector.broadcast %150 : i32 to vector<16x1xi32>
    %161 = arith.select %155, %160, %138 : vector<16x1xi1>, vector<16x1xi32>
    %c0_i32_59 = arith.constant 0 : i32
    %162 = vector.broadcast %c0_i32_59 : i32 to vector<16x1xi32>
    %163 = arith.select %155, %162, %140 : vector<16x1xi1>, vector<16x1xi32>
    %c0_i32_60 = arith.constant 0 : i32
    %164 = vector.broadcast %c0_i32_60 : i32 to vector<1x16xi32>
    %165 = arith.select %157, %164, %142 : vector<1x16xi1>, vector<1x16xi32>
    %166 = vector.broadcast %153 : f32 to vector<1x16xf32>
    %167 = arith.select %157, %166, %144 : vector<1x16xi1>, vector<1x16xf32>
    %c0_61 = arith.constant 0 : index
    %c7 = arith.constant 7 : index
    %168 = memref.load %arg0[%c0_61, %c7] : memref<2x8xi32, #tpu.memory_space<smem>>
    %c1_i32_62 = arith.constant 1 : i32
    %169 = arith.cmpi ne, %168, %c1_i32_62 : i32
    %170 = arith.extui %169 : i1 to i32
    %171 = arith.addi %148, %170 : i32
    %172 = arith.muli %171, %170 : i32
    %c1_i32_63 = arith.constant 1 : i32
    %173 = arith.addi %172, %c1_i32_63 : i32
    %c1_i32_64 = arith.constant 1 : i32
    %174 = arith.subi %c1_i32_64, %170 : i32
    %175 = arith.sitofp %174 : i32 to f32
    %cst_65 = arith.constant -1.000000e+04 : f32
    %176 = arith.mulf %175, %cst_65 : f32
    %c7_i32 = arith.constant 7 : i32
    %177 = vector.broadcast %c7_i32 : i32 to vector<16x1xi32>
    %178 = arith.cmpi eq, %0, %177 : vector<16x1xi32>
    %c7_i32_66 = arith.constant 7 : i32
    %179 = vector.broadcast %c7_i32_66 : i32 to vector<1x16xi32>
    %180 = arith.cmpi eq, %1, %179 : vector<1x16xi32>
    %181 = vector.broadcast %168 : i32 to vector<16x1xi32>
    %182 = arith.select %178, %181, %159 : vector<16x1xi1>, vector<16x1xi32>
    %183 = vector.broadcast %173 : i32 to vector<16x1xi32>
    %184 = arith.select %178, %183, %161 : vector<16x1xi1>, vector<16x1xi32>
    %c0_i32_67 = arith.constant 0 : i32
    %185 = vector.broadcast %c0_i32_67 : i32 to vector<16x1xi32>
    %186 = arith.select %178, %185, %163 : vector<16x1xi1>, vector<16x1xi32>
    %c0_i32_68 = arith.constant 0 : i32
    %187 = vector.broadcast %c0_i32_68 : i32 to vector<1x16xi32>
    %188 = arith.select %180, %187, %165 : vector<1x16xi1>, vector<1x16xi32>
    %189 = vector.broadcast %176 : f32 to vector<1x16xf32>
    %190 = arith.select %180, %189, %167 : vector<1x16xi1>, vector<1x16xf32>
    %c1_69 = arith.constant 1 : index
    %c0_70 = arith.constant 0 : index
    %191 = memref.load %arg0[%c1_69, %c0_70] : memref<2x8xi32, #tpu.memory_space<smem>>
    %c1_i32_71 = arith.constant 1 : i32
    %192 = arith.cmpi ne, %191, %c1_i32_71 : i32
    %193 = arith.extui %192 : i1 to i32
    %c0_i32_72 = arith.constant 0 : i32
    %194 = arith.addi %c0_i32_72, %193 : i32
    %195 = arith.muli %194, %193 : i32
    %c1_i32_73 = arith.constant 1 : i32
    %196 = arith.addi %195, %c1_i32_73 : i32
    %c1_i32_74 = arith.constant 1 : i32
    %197 = arith.subi %c1_i32_74, %193 : i32
    %198 = arith.sitofp %197 : i32 to f32
    %cst_75 = arith.constant -1.000000e+04 : f32
    %199 = arith.mulf %198, %cst_75 : f32
    %c8_i32 = arith.constant 8 : i32
    %200 = vector.broadcast %c8_i32 : i32 to vector<16x1xi32>
    %201 = arith.cmpi eq, %0, %200 : vector<16x1xi32>
    %c8_i32_76 = arith.constant 8 : i32
    %202 = vector.broadcast %c8_i32_76 : i32 to vector<1x16xi32>
    %203 = arith.cmpi eq, %1, %202 : vector<1x16xi32>
    %204 = vector.broadcast %191 : i32 to vector<16x1xi32>
    %205 = arith.select %201, %204, %182 : vector<16x1xi1>, vector<16x1xi32>
    %206 = vector.broadcast %196 : i32 to vector<16x1xi32>
    %207 = arith.select %201, %206, %184 : vector<16x1xi1>, vector<16x1xi32>
    %c1_i32_77 = arith.constant 1 : i32
    %208 = vector.broadcast %c1_i32_77 : i32 to vector<16x1xi32>
    %209 = arith.select %201, %208, %186 : vector<16x1xi1>, vector<16x1xi32>
    %c1_i32_78 = arith.constant 1 : i32
    %210 = vector.broadcast %c1_i32_78 : i32 to vector<1x16xi32>
    %211 = arith.select %203, %210, %188 : vector<1x16xi1>, vector<1x16xi32>
    %212 = vector.broadcast %199 : f32 to vector<1x16xf32>
    %213 = arith.select %203, %212, %190 : vector<1x16xi1>, vector<1x16xf32>
    %c1_79 = arith.constant 1 : index
    %c1_80 = arith.constant 1 : index
    %214 = memref.load %arg0[%c1_79, %c1_80] : memref<2x8xi32, #tpu.memory_space<smem>>
    %c1_i32_81 = arith.constant 1 : i32
    %215 = arith.cmpi ne, %214, %c1_i32_81 : i32
    %216 = arith.extui %215 : i1 to i32
    %217 = arith.addi %194, %216 : i32
    %218 = arith.muli %217, %216 : i32
    %c1_i32_82 = arith.constant 1 : i32
    %219 = arith.addi %218, %c1_i32_82 : i32
    %c1_i32_83 = arith.constant 1 : i32
    %220 = arith.subi %c1_i32_83, %216 : i32
    %221 = arith.sitofp %220 : i32 to f32
    %cst_84 = arith.constant -1.000000e+04 : f32
    %222 = arith.mulf %221, %cst_84 : f32
    %c9_i32 = arith.constant 9 : i32
    %223 = vector.broadcast %c9_i32 : i32 to vector<16x1xi32>
    %224 = arith.cmpi eq, %0, %223 : vector<16x1xi32>
    %c9_i32_85 = arith.constant 9 : i32
    %225 = vector.broadcast %c9_i32_85 : i32 to vector<1x16xi32>
    %226 = arith.cmpi eq, %1, %225 : vector<1x16xi32>
    %227 = vector.broadcast %214 : i32 to vector<16x1xi32>
    %228 = arith.select %224, %227, %205 : vector<16x1xi1>, vector<16x1xi32>
    %229 = vector.broadcast %219 : i32 to vector<16x1xi32>
    %230 = arith.select %224, %229, %207 : vector<16x1xi1>, vector<16x1xi32>
    %c1_i32_86 = arith.constant 1 : i32
    %231 = vector.broadcast %c1_i32_86 : i32 to vector<16x1xi32>
    %232 = arith.select %224, %231, %209 : vector<16x1xi1>, vector<16x1xi32>
    %c1_i32_87 = arith.constant 1 : i32
    %233 = vector.broadcast %c1_i32_87 : i32 to vector<1x16xi32>
    %234 = arith.select %226, %233, %211 : vector<1x16xi1>, vector<1x16xi32>
    %235 = vector.broadcast %222 : f32 to vector<1x16xf32>
    %236 = arith.select %226, %235, %213 : vector<1x16xi1>, vector<1x16xf32>
    %c1_88 = arith.constant 1 : index
    %c2_89 = arith.constant 2 : index
    %237 = memref.load %arg0[%c1_88, %c2_89] : memref<2x8xi32, #tpu.memory_space<smem>>
    %c1_i32_90 = arith.constant 1 : i32
    %238 = arith.cmpi ne, %237, %c1_i32_90 : i32
    %239 = arith.extui %238 : i1 to i32
    %240 = arith.addi %217, %239 : i32
    %241 = arith.muli %240, %239 : i32
    %c1_i32_91 = arith.constant 1 : i32
    %242 = arith.addi %241, %c1_i32_91 : i32
    %c1_i32_92 = arith.constant 1 : i32
    %243 = arith.subi %c1_i32_92, %239 : i32
    %244 = arith.sitofp %243 : i32 to f32
    %cst_93 = arith.constant -1.000000e+04 : f32
    %245 = arith.mulf %244, %cst_93 : f32
    %c10_i32 = arith.constant 10 : i32
    %246 = vector.broadcast %c10_i32 : i32 to vector<16x1xi32>
    %247 = arith.cmpi eq, %0, %246 : vector<16x1xi32>
    %c10_i32_94 = arith.constant 10 : i32
    %248 = vector.broadcast %c10_i32_94 : i32 to vector<1x16xi32>
    %249 = arith.cmpi eq, %1, %248 : vector<1x16xi32>
    %250 = vector.broadcast %237 : i32 to vector<16x1xi32>
    %251 = arith.select %247, %250, %228 : vector<16x1xi1>, vector<16x1xi32>
    %252 = vector.broadcast %242 : i32 to vector<16x1xi32>
    %253 = arith.select %247, %252, %230 : vector<16x1xi1>, vector<16x1xi32>
    %c1_i32_95 = arith.constant 1 : i32
    %254 = vector.broadcast %c1_i32_95 : i32 to vector<16x1xi32>
    %255 = arith.select %247, %254, %232 : vector<16x1xi1>, vector<16x1xi32>
    %c1_i32_96 = arith.constant 1 : i32
    %256 = vector.broadcast %c1_i32_96 : i32 to vector<1x16xi32>
    %257 = arith.select %249, %256, %234 : vector<1x16xi1>, vector<1x16xi32>
    %258 = vector.broadcast %245 : f32 to vector<1x16xf32>
    %259 = arith.select %249, %258, %236 : vector<1x16xi1>, vector<1x16xf32>
    %c1_97 = arith.constant 1 : index
    %c3_98 = arith.constant 3 : index
    %260 = memref.load %arg0[%c1_97, %c3_98] : memref<2x8xi32, #tpu.memory_space<smem>>
    %c1_i32_99 = arith.constant 1 : i32
    %261 = arith.cmpi ne, %260, %c1_i32_99 : i32
    %262 = arith.extui %261 : i1 to i32
    %263 = arith.addi %240, %262 : i32
    %264 = arith.muli %263, %262 : i32
    %c1_i32_100 = arith.constant 1 : i32
    %265 = arith.addi %264, %c1_i32_100 : i32
    %c1_i32_101 = arith.constant 1 : i32
    %266 = arith.subi %c1_i32_101, %262 : i32
    %267 = arith.sitofp %266 : i32 to f32
    %cst_102 = arith.constant -1.000000e+04 : f32
    %268 = arith.mulf %267, %cst_102 : f32
    %c11_i32 = arith.constant 11 : i32
    %269 = vector.broadcast %c11_i32 : i32 to vector<16x1xi32>
    %270 = arith.cmpi eq, %0, %269 : vector<16x1xi32>
    %c11_i32_103 = arith.constant 11 : i32
    %271 = vector.broadcast %c11_i32_103 : i32 to vector<1x16xi32>
    %272 = arith.cmpi eq, %1, %271 : vector<1x16xi32>
    %273 = vector.broadcast %260 : i32 to vector<16x1xi32>
    %274 = arith.select %270, %273, %251 : vector<16x1xi1>, vector<16x1xi32>
    %275 = vector.broadcast %265 : i32 to vector<16x1xi32>
    %276 = arith.select %270, %275, %253 : vector<16x1xi1>, vector<16x1xi32>
    %c1_i32_104 = arith.constant 1 : i32
    %277 = vector.broadcast %c1_i32_104 : i32 to vector<16x1xi32>
    %278 = arith.select %270, %277, %255 : vector<16x1xi1>, vector<16x1xi32>
    %c1_i32_105 = arith.constant 1 : i32
    %279 = vector.broadcast %c1_i32_105 : i32 to vector<1x16xi32>
    %280 = arith.select %272, %279, %257 : vector<1x16xi1>, vector<1x16xi32>
    %281 = vector.broadcast %268 : f32 to vector<1x16xf32>
    %282 = arith.select %272, %281, %259 : vector<1x16xi1>, vector<1x16xf32>
    %c1_106 = arith.constant 1 : index
    %c4_107 = arith.constant 4 : index
    %283 = memref.load %arg0[%c1_106, %c4_107] : memref<2x8xi32, #tpu.memory_space<smem>>
    %c1_i32_108 = arith.constant 1 : i32
    %284 = arith.cmpi ne, %283, %c1_i32_108 : i32
    %285 = arith.extui %284 : i1 to i32
    %286 = arith.addi %263, %285 : i32
    %287 = arith.muli %286, %285 : i32
    %c1_i32_109 = arith.constant 1 : i32
    %288 = arith.addi %287, %c1_i32_109 : i32
    %c1_i32_110 = arith.constant 1 : i32
    %289 = arith.subi %c1_i32_110, %285 : i32
    %290 = arith.sitofp %289 : i32 to f32
    %cst_111 = arith.constant -1.000000e+04 : f32
    %291 = arith.mulf %290, %cst_111 : f32
    %c12_i32 = arith.constant 12 : i32
    %292 = vector.broadcast %c12_i32 : i32 to vector<16x1xi32>
    %293 = arith.cmpi eq, %0, %292 : vector<16x1xi32>
    %c12_i32_112 = arith.constant 12 : i32
    %294 = vector.broadcast %c12_i32_112 : i32 to vector<1x16xi32>
    %295 = arith.cmpi eq, %1, %294 : vector<1x16xi32>
    %296 = vector.broadcast %283 : i32 to vector<16x1xi32>
    %297 = arith.select %293, %296, %274 : vector<16x1xi1>, vector<16x1xi32>
    %298 = vector.broadcast %288 : i32 to vector<16x1xi32>
    %299 = arith.select %293, %298, %276 : vector<16x1xi1>, vector<16x1xi32>
    %c1_i32_113 = arith.constant 1 : i32
    %300 = vector.broadcast %c1_i32_113 : i32 to vector<16x1xi32>
    %301 = arith.select %293, %300, %278 : vector<16x1xi1>, vector<16x1xi32>
    %c1_i32_114 = arith.constant 1 : i32
    %302 = vector.broadcast %c1_i32_114 : i32 to vector<1x16xi32>
    %303 = arith.select %295, %302, %280 : vector<1x16xi1>, vector<1x16xi32>
    %304 = vector.broadcast %291 : f32 to vector<1x16xf32>
    %305 = arith.select %295, %304, %282 : vector<1x16xi1>, vector<1x16xf32>
    %c1_115 = arith.constant 1 : index
    %c5_116 = arith.constant 5 : index
    %306 = memref.load %arg0[%c1_115, %c5_116] : memref<2x8xi32, #tpu.memory_space<smem>>
    %c1_i32_117 = arith.constant 1 : i32
    %307 = arith.cmpi ne, %306, %c1_i32_117 : i32
    %308 = arith.extui %307 : i1 to i32
    %309 = arith.addi %286, %308 : i32
    %310 = arith.muli %309, %308 : i32
    %c1_i32_118 = arith.constant 1 : i32
    %311 = arith.addi %310, %c1_i32_118 : i32
    %c1_i32_119 = arith.constant 1 : i32
    %312 = arith.subi %c1_i32_119, %308 : i32
    %313 = arith.sitofp %312 : i32 to f32
    %cst_120 = arith.constant -1.000000e+04 : f32
    %314 = arith.mulf %313, %cst_120 : f32
    %c13_i32 = arith.constant 13 : i32
    %315 = vector.broadcast %c13_i32 : i32 to vector<16x1xi32>
    %316 = arith.cmpi eq, %0, %315 : vector<16x1xi32>
    %c13_i32_121 = arith.constant 13 : i32
    %317 = vector.broadcast %c13_i32_121 : i32 to vector<1x16xi32>
    %318 = arith.cmpi eq, %1, %317 : vector<1x16xi32>
    %319 = vector.broadcast %306 : i32 to vector<16x1xi32>
    %320 = arith.select %316, %319, %297 : vector<16x1xi1>, vector<16x1xi32>
    %321 = vector.broadcast %311 : i32 to vector<16x1xi32>
    %322 = arith.select %316, %321, %299 : vector<16x1xi1>, vector<16x1xi32>
    %c1_i32_122 = arith.constant 1 : i32
    %323 = vector.broadcast %c1_i32_122 : i32 to vector<16x1xi32>
    %324 = arith.select %316, %323, %301 : vector<16x1xi1>, vector<16x1xi32>
    %c1_i32_123 = arith.constant 1 : i32
    %325 = vector.broadcast %c1_i32_123 : i32 to vector<1x16xi32>
    %326 = arith.select %318, %325, %303 : vector<1x16xi1>, vector<1x16xi32>
    %327 = vector.broadcast %314 : f32 to vector<1x16xf32>
    %328 = arith.select %318, %327, %305 : vector<1x16xi1>, vector<1x16xf32>
    %c1_124 = arith.constant 1 : index
    %c6_125 = arith.constant 6 : index
    %329 = memref.load %arg0[%c1_124, %c6_125] : memref<2x8xi32, #tpu.memory_space<smem>>
    %c1_i32_126 = arith.constant 1 : i32
    %330 = arith.cmpi ne, %329, %c1_i32_126 : i32
    %331 = arith.extui %330 : i1 to i32
    %332 = arith.addi %309, %331 : i32
    %333 = arith.muli %332, %331 : i32
    %c1_i32_127 = arith.constant 1 : i32
    %334 = arith.addi %333, %c1_i32_127 : i32
    %c1_i32_128 = arith.constant 1 : i32
    %335 = arith.subi %c1_i32_128, %331 : i32
    %336 = arith.sitofp %335 : i32 to f32
    %cst_129 = arith.constant -1.000000e+04 : f32
    %337 = arith.mulf %336, %cst_129 : f32
    %c14_i32 = arith.constant 14 : i32
    %338 = vector.broadcast %c14_i32 : i32 to vector<16x1xi32>
    %339 = arith.cmpi eq, %0, %338 : vector<16x1xi32>
    %c14_i32_130 = arith.constant 14 : i32
    %340 = vector.broadcast %c14_i32_130 : i32 to vector<1x16xi32>
    %341 = arith.cmpi eq, %1, %340 : vector<1x16xi32>
    %342 = vector.broadcast %329 : i32 to vector<16x1xi32>
    %343 = arith.select %339, %342, %320 : vector<16x1xi1>, vector<16x1xi32>
    %344 = vector.broadcast %334 : i32 to vector<16x1xi32>
    %345 = arith.select %339, %344, %322 : vector<16x1xi1>, vector<16x1xi32>
    %c1_i32_131 = arith.constant 1 : i32
    %346 = vector.broadcast %c1_i32_131 : i32 to vector<16x1xi32>
    %347 = arith.select %339, %346, %324 : vector<16x1xi1>, vector<16x1xi32>
    %c1_i32_132 = arith.constant 1 : i32
    %348 = vector.broadcast %c1_i32_132 : i32 to vector<1x16xi32>
    %349 = arith.select %341, %348, %326 : vector<1x16xi1>, vector<1x16xi32>
    %350 = vector.broadcast %337 : f32 to vector<1x16xf32>
    %351 = arith.select %341, %350, %328 : vector<1x16xi1>, vector<1x16xf32>
    %c1_133 = arith.constant 1 : index
    %c7_134 = arith.constant 7 : index
    %352 = memref.load %arg0[%c1_133, %c7_134] : memref<2x8xi32, #tpu.memory_space<smem>>
    %c1_i32_135 = arith.constant 1 : i32
    %353 = arith.cmpi ne, %352, %c1_i32_135 : i32
    %354 = arith.extui %353 : i1 to i32
    %355 = arith.addi %332, %354 : i32
    %356 = arith.muli %355, %354 : i32
    %c1_i32_136 = arith.constant 1 : i32
    %357 = arith.addi %356, %c1_i32_136 : i32
    %c1_i32_137 = arith.constant 1 : i32
    %358 = arith.subi %c1_i32_137, %354 : i32
    %359 = arith.sitofp %358 : i32 to f32
    %cst_138 = arith.constant -1.000000e+04 : f32
    %360 = arith.mulf %359, %cst_138 : f32
    %c15_i32 = arith.constant 15 : i32
    %361 = vector.broadcast %c15_i32 : i32 to vector<16x1xi32>
    %362 = arith.cmpi eq, %0, %361 : vector<16x1xi32>
    %c15_i32_139 = arith.constant 15 : i32
    %363 = vector.broadcast %c15_i32_139 : i32 to vector<1x16xi32>
    %364 = arith.cmpi eq, %1, %363 : vector<1x16xi32>
    %365 = vector.broadcast %352 : i32 to vector<16x1xi32>
    %366 = arith.select %362, %365, %343 : vector<16x1xi1>, vector<16x1xi32>
    %367 = vector.broadcast %357 : i32 to vector<16x1xi32>
    %368 = arith.select %362, %367, %345 : vector<16x1xi1>, vector<16x1xi32>
    %c1_i32_140 = arith.constant 1 : i32
    %369 = vector.broadcast %c1_i32_140 : i32 to vector<16x1xi32>
    %370 = arith.select %362, %369, %347 : vector<16x1xi1>, vector<16x1xi32>
    %c1_i32_141 = arith.constant 1 : i32
    %371 = vector.broadcast %c1_i32_141 : i32 to vector<1x16xi32>
    %372 = arith.select %364, %371, %349 : vector<1x16xi1>, vector<1x16xi32>
    %373 = vector.broadcast %360 : f32 to vector<1x16xf32>
    %374 = arith.select %364, %373, %351 : vector<1x16xi1>, vector<1x16xf32>
    %375 = vector.broadcast %370 : vector<16x1xi32> to vector<16x16xi32>
    %376 = vector.broadcast %372 : vector<1x16xi32> to vector<16x16xi32>
    %377 = arith.cmpi eq, %375, %376 : vector<16x16xi32>
    %cst_142 = arith.constant -1.000000e+04 : f32
    %378 = vector.shape_cast %374 : vector<1x16xf32> to vector<1x16xf32>
    %379 = vector.broadcast %378 : vector<1x16xf32> to vector<16x16xf32>
    %380 = vector.broadcast %cst_142 : f32 to vector<16x16xf32>
    %381 = arith.select %377, %379, %380 : vector<16x16xi1>, vector<16x16xf32>
    %382 = tpu.iota {dimensions = array<i32: 1>} : vector<16x104xi32>
    %383 = vector.broadcast %366 : vector<16x1xi32> to vector<16x104xi32>
    %384 = arith.cmpi eq, %382, %383 : vector<16x104xi32>
    %385 = arith.extui %384 : vector<16x104xi1> to vector<16x104xi32>
    %386 = arith.sitofp %385 : vector<16x104xi32> to vector<16x104xf32>
    %387 = tpu.iota {dimensions = array<i32: 1>} : vector<16x40xi32>
    %388 = vector.broadcast %368 : vector<16x1xi32> to vector<16x40xi32>
    %389 = arith.cmpi eq, %387, %388 : vector<16x40xi32>
    %390 = arith.extui %389 : vector<16x40xi1> to vector<16x40xi32>
    %391 = arith.sitofp %390 : vector<16x40xi32> to vector<16x40xf32>
    %c0_143 = arith.constant 0 : index
    %c0_144 = arith.constant 0 : index
    %392 = vector.load %arg1[%c0_143, %c0_144] : memref<616x96xf32, #tpu.memory_space<vmem>>, vector<104x32xf32>
    %cst_145 = arith.constant dense<0.000000e+00> : vector<16x32xf32>
    %393 = tpu.matmul %386, %392, %cst_145 {dimension_numbers = #tpu.dot_dimension_numbers<[1], [0], [0], [1], [0, 0, 1, 1], [], []>} : vector<16x104xf32>, vector<104x32xf32>, vector<16x32xf32> -> vector<16x32xf32>
    %c104 = arith.constant 104 : index
    %c0_146 = arith.constant 0 : index
    %394 = vector.load %arg1[%c104, %c0_146] : memref<616x96xf32, #tpu.memory_space<vmem>>, vector<40x32xf32>
    %cst_147 = arith.constant dense<0.000000e+00> : vector<16x32xf32>
    %395 = tpu.matmul %391, %394, %cst_147 {dimension_numbers = #tpu.dot_dimension_numbers<[1], [0], [0], [1], [0, 0, 1, 1], [], []>} : vector<16x40xf32>, vector<40x32xf32>, vector<16x32xf32> -> vector<16x32xf32>
    %396 = arith.addf %393, %395 : vector<16x32xf32>
    %c144 = arith.constant 144 : index
    %c0_148 = arith.constant 0 : index
    %397 = vector.load %arg1[%c144, %c0_148] : memref<616x96xf32, #tpu.memory_space<vmem>>, vector<1x32xf32>
    %398 = vector.broadcast %397 : vector<1x32xf32> to vector<16x32xf32>
    %399 = arith.addf %396, %398 : vector<16x32xf32>
    %c152 = arith.constant 152 : index
    %c0_149 = arith.constant 0 : index
    %400 = vector.load %arg1[%c152, %c0_149] : memref<616x96xf32, #tpu.memory_space<vmem>>, vector<1x32xf32>
    %c160 = arith.constant 160 : index
    %c0_150 = arith.constant 0 : index
    %401 = vector.load %arg1[%c160, %c0_150] : memref<616x96xf32, #tpu.memory_space<vmem>>, vector<1x32xf32>
    %cst_151 = arith.constant dense<0.000000e+00> : vector<16xf32>
    %402 = vector.multi_reduction <add>, %399, %cst_151 [1] : vector<16x32xf32> to vector<16xf32>
    %403 = vector.shape_cast %402 : vector<16xf32> to vector<16x1xf32>
    %cst_152 = arith.constant 3.200000e+01 : f32
    %404 = vector.broadcast %cst_152 : f32 to vector<16x1xf32>
    %405 = arith.divf %403, %404 : vector<16x1xf32>
    %406 = vector.broadcast %405 : vector<16x1xf32> to vector<16x32xf32>
    %407 = arith.subf %399, %406 : vector<16x32xf32>
    %408 = arith.mulf %407, %407 : vector<16x32xf32>
    %cst_153 = arith.constant dense<0.000000e+00> : vector<16xf32>
    %409 = vector.multi_reduction <add>, %408, %cst_153 [1] : vector<16x32xf32> to vector<16xf32>
    %410 = vector.shape_cast %409 : vector<16xf32> to vector<16x1xf32>
    %cst_154 = arith.constant 3.200000e+01 : f32
    %411 = vector.broadcast %cst_154 : f32 to vector<16x1xf32>
    %412 = arith.divf %410, %411 : vector<16x1xf32>
    %413 = vector.broadcast %405 : vector<16x1xf32> to vector<16x32xf32>
    %414 = arith.subf %399, %413 : vector<16x32xf32>
    %cst_155 = arith.constant 9.99999974E-6 : f32
    %415 = vector.broadcast %cst_155 : f32 to vector<16x1xf32>
    %416 = arith.addf %412, %415 : vector<16x1xf32>
    %417 = math.rsqrt %416 : vector<16x1xf32>
    %418 = vector.broadcast %417 : vector<16x1xf32> to vector<16x32xf32>
    %419 = arith.mulf %414, %418 : vector<16x32xf32>
    %420 = vector.broadcast %400 : vector<1x32xf32> to vector<16x32xf32>
    %421 = arith.mulf %419, %420 : vector<16x32xf32>
    %422 = vector.broadcast %401 : vector<1x32xf32> to vector<16x32xf32>
    %423 = arith.addf %421, %422 : vector<16x32xf32>
    %c168 = arith.constant 168 : index
    %c0_156 = arith.constant 0 : index
    %424 = vector.load %arg1[%c168, %c0_156] : memref<616x96xf32, #tpu.memory_space<vmem>>, vector<32x96xf32>
    %cst_157 = arith.constant dense<0.000000e+00> : vector<16x96xf32>
    %425 = tpu.matmul %423, %424, %cst_157 {dimension_numbers = #tpu.dot_dimension_numbers<[1], [0], [0], [1], [0, 0, 1, 1], [], []>} : vector<16x32xf32>, vector<32x96xf32>, vector<16x96xf32> -> vector<16x96xf32>
    %c200 = arith.constant 200 : index
    %c0_158 = arith.constant 0 : index
    %426 = vector.load %arg1[%c200, %c0_158] : memref<616x96xf32, #tpu.memory_space<vmem>>, vector<1x96xf32>
    %427 = vector.broadcast %426 : vector<1x96xf32> to vector<16x96xf32>
    %428 = arith.addf %425, %427 : vector<16x96xf32>
    %c208 = arith.constant 208 : index
    %c0_159 = arith.constant 0 : index
    %429 = vector.load %arg1[%c208, %c0_159] : memref<616x96xf32, #tpu.memory_space<vmem>>, vector<32x32xf32>
    %cst_160 = arith.constant 0.000000e+00 : f32
    %430 = vector.broadcast %cst_160 : f32 to vector<16x32xf32>
    %431 = vector.extract_strided_slice %428 {offsets = [0, 0], sizes = [16, 8], strides = [1, 1]} : vector<16x96xf32> to vector<16x8xf32>
    %432 = vector.extract_strided_slice %428 {offsets = [0, 32], sizes = [16, 8], strides = [1, 1]} : vector<16x96xf32> to vector<16x8xf32>
    %433 = vector.extract_strided_slice %428 {offsets = [0, 64], sizes = [16, 8], strides = [1, 1]} : vector<16x96xf32> to vector<16x8xf32>
    %cst_161 = arith.constant dense<0.000000e+00> : vector<16x16xf32>
    %434 = tpu.matmul %431, %432, %cst_161 {dimension_numbers = #tpu.dot_dimension_numbers<[1], [1], [0], [0], [0, 0, 1, 0], [], []>} : vector<16x8xf32>, vector<16x8xf32>, vector<16x16xf32> -> vector<16x16xf32>
    %cst_162 = arith.constant 0.353553385 : f32
    %435 = vector.broadcast %cst_162 : f32 to vector<16x16xf32>
    %436 = arith.mulf %434, %435 : vector<16x16xf32>
    %437 = arith.addf %436, %381 : vector<16x16xf32>
    %cst_163 = arith.constant dense<0xFF800000> : vector<16xf32>
    %438 = vector.multi_reduction <maximumf>, %437, %cst_163 [1] : vector<16x16xf32> to vector<16xf32>
    %439 = vector.shape_cast %438 : vector<16xf32> to vector<16x1xf32>
    %440 = vector.broadcast %439 : vector<16x1xf32> to vector<16x16xf32>
    %441 = arith.subf %437, %440 : vector<16x16xf32>
    %442 = math.exp %441 : vector<16x16xf32>
    %cst_164 = arith.constant dense<0.000000e+00> : vector<16xf32>
    %443 = vector.multi_reduction <add>, %442, %cst_164 [1] : vector<16x16xf32> to vector<16xf32>
    %444 = vector.shape_cast %443 : vector<16xf32> to vector<16x1xf32>
    %445 = tpu.reciprocal %444 {approx = true} : vector<16x1xf32> -> vector<16x1xf32>
    %446 = vector.broadcast %445 : vector<16x1xf32> to vector<16x16xf32>
    %447 = arith.mulf %442, %446 : vector<16x16xf32>
    %cst_165 = arith.constant dense<0.000000e+00> : vector<16x8xf32>
    %448 = tpu.matmul %447, %433, %cst_165 {dimension_numbers = #tpu.dot_dimension_numbers<[1], [0], [0], [1], [0, 0, 1, 1], [], []>} : vector<16x16xf32>, vector<16x8xf32>, vector<16x8xf32> -> vector<16x8xf32>
    %449 = vector.extract_strided_slice %429 {offsets = [0, 0], sizes = [8, 32], strides = [1, 1]} : vector<32x32xf32> to vector<8x32xf32>
    %cst_166 = arith.constant dense<0.000000e+00> : vector<16x32xf32>
    %450 = tpu.matmul %448, %449, %cst_166 {dimension_numbers = #tpu.dot_dimension_numbers<[1], [0], [0], [1], [0, 0, 1, 1], [], []>} : vector<16x8xf32>, vector<8x32xf32>, vector<16x32xf32> -> vector<16x32xf32>
    %451 = arith.addf %430, %450 : vector<16x32xf32>
    %452 = vector.extract_strided_slice %428 {offsets = [0, 8], sizes = [16, 8], strides = [1, 1]} : vector<16x96xf32> to vector<16x8xf32>
    %453 = vector.extract_strided_slice %428 {offsets = [0, 40], sizes = [16, 8], strides = [1, 1]} : vector<16x96xf32> to vector<16x8xf32>
    %454 = vector.extract_strided_slice %428 {offsets = [0, 72], sizes = [16, 8], strides = [1, 1]} : vector<16x96xf32> to vector<16x8xf32>
    %cst_167 = arith.constant dense<0.000000e+00> : vector<16x16xf32>
    %455 = tpu.matmul %452, %453, %cst_167 {dimension_numbers = #tpu.dot_dimension_numbers<[1], [1], [0], [0], [0, 0, 1, 0], [], []>} : vector<16x8xf32>, vector<16x8xf32>, vector<16x16xf32> -> vector<16x16xf32>
    %cst_168 = arith.constant 0.353553385 : f32
    %456 = vector.broadcast %cst_168 : f32 to vector<16x16xf32>
    %457 = arith.mulf %455, %456 : vector<16x16xf32>
    %458 = arith.addf %457, %381 : vector<16x16xf32>
    %cst_169 = arith.constant dense<0xFF800000> : vector<16xf32>
    %459 = vector.multi_reduction <maximumf>, %458, %cst_169 [1] : vector<16x16xf32> to vector<16xf32>
    %460 = vector.shape_cast %459 : vector<16xf32> to vector<16x1xf32>
    %461 = vector.broadcast %460 : vector<16x1xf32> to vector<16x16xf32>
    %462 = arith.subf %458, %461 : vector<16x16xf32>
    %463 = math.exp %462 : vector<16x16xf32>
    %cst_170 = arith.constant dense<0.000000e+00> : vector<16xf32>
    %464 = vector.multi_reduction <add>, %463, %cst_170 [1] : vector<16x16xf32> to vector<16xf32>
    %465 = vector.shape_cast %464 : vector<16xf32> to vector<16x1xf32>
    %466 = tpu.reciprocal %465 {approx = true} : vector<16x1xf32> -> vector<16x1xf32>
    %467 = vector.broadcast %466 : vector<16x1xf32> to vector<16x16xf32>
    %468 = arith.mulf %463, %467 : vector<16x16xf32>
    %cst_171 = arith.constant dense<0.000000e+00> : vector<16x8xf32>
    %469 = tpu.matmul %468, %454, %cst_171 {dimension_numbers = #tpu.dot_dimension_numbers<[1], [0], [0], [1], [0, 0, 1, 1], [], []>} : vector<16x16xf32>, vector<16x8xf32>, vector<16x8xf32> -> vector<16x8xf32>
    %470 = vector.extract_strided_slice %429 {offsets = [8, 0], sizes = [8, 32], strides = [1, 1]} : vector<32x32xf32> to vector<8x32xf32>
    %cst_172 = arith.constant dense<0.000000e+00> : vector<16x32xf32>
    %471 = tpu.matmul %469, %470, %cst_172 {dimension_numbers = #tpu.dot_dimension_numbers<[1], [0], [0], [1], [0, 0, 1, 1], [], []>} : vector<16x8xf32>, vector<8x32xf32>, vector<16x32xf32> -> vector<16x32xf32>
    %472 = arith.addf %451, %471 : vector<16x32xf32>
    %473 = vector.extract_strided_slice %428 {offsets = [0, 16], sizes = [16, 8], strides = [1, 1]} : vector<16x96xf32> to vector<16x8xf32>
    %474 = vector.extract_strided_slice %428 {offsets = [0, 48], sizes = [16, 8], strides = [1, 1]} : vector<16x96xf32> to vector<16x8xf32>
    %475 = vector.extract_strided_slice %428 {offsets = [0, 80], sizes = [16, 8], strides = [1, 1]} : vector<16x96xf32> to vector<16x8xf32>
    %cst_173 = arith.constant dense<0.000000e+00> : vector<16x16xf32>
    %476 = tpu.matmul %473, %474, %cst_173 {dimension_numbers = #tpu.dot_dimension_numbers<[1], [1], [0], [0], [0, 0, 1, 0], [], []>} : vector<16x8xf32>, vector<16x8xf32>, vector<16x16xf32> -> vector<16x16xf32>
    %cst_174 = arith.constant 0.353553385 : f32
    %477 = vector.broadcast %cst_174 : f32 to vector<16x16xf32>
    %478 = arith.mulf %476, %477 : vector<16x16xf32>
    %479 = arith.addf %478, %381 : vector<16x16xf32>
    %cst_175 = arith.constant dense<0xFF800000> : vector<16xf32>
    %480 = vector.multi_reduction <maximumf>, %479, %cst_175 [1] : vector<16x16xf32> to vector<16xf32>
    %481 = vector.shape_cast %480 : vector<16xf32> to vector<16x1xf32>
    %482 = vector.broadcast %481 : vector<16x1xf32> to vector<16x16xf32>
    %483 = arith.subf %479, %482 : vector<16x16xf32>
    %484 = math.exp %483 : vector<16x16xf32>
    %cst_176 = arith.constant dense<0.000000e+00> : vector<16xf32>
    %485 = vector.multi_reduction <add>, %484, %cst_176 [1] : vector<16x16xf32> to vector<16xf32>
    %486 = vector.shape_cast %485 : vector<16xf32> to vector<16x1xf32>
    %487 = tpu.reciprocal %486 {approx = true} : vector<16x1xf32> -> vector<16x1xf32>
    %488 = vector.broadcast %487 : vector<16x1xf32> to vector<16x16xf32>
    %489 = arith.mulf %484, %488 : vector<16x16xf32>
    %cst_177 = arith.constant dense<0.000000e+00> : vector<16x8xf32>
    %490 = tpu.matmul %489, %475, %cst_177 {dimension_numbers = #tpu.dot_dimension_numbers<[1], [0], [0], [1], [0, 0, 1, 1], [], []>} : vector<16x16xf32>, vector<16x8xf32>, vector<16x8xf32> -> vector<16x8xf32>
    %491 = vector.extract_strided_slice %429 {offsets = [16, 0], sizes = [8, 32], strides = [1, 1]} : vector<32x32xf32> to vector<8x32xf32>
    %cst_178 = arith.constant dense<0.000000e+00> : vector<16x32xf32>
    %492 = tpu.matmul %490, %491, %cst_178 {dimension_numbers = #tpu.dot_dimension_numbers<[1], [0], [0], [1], [0, 0, 1, 1], [], []>} : vector<16x8xf32>, vector<8x32xf32>, vector<16x32xf32> -> vector<16x32xf32>
    %493 = arith.addf %472, %492 : vector<16x32xf32>
    %494 = vector.extract_strided_slice %428 {offsets = [0, 24], sizes = [16, 8], strides = [1, 1]} : vector<16x96xf32> to vector<16x8xf32>
    %495 = vector.extract_strided_slice %428 {offsets = [0, 56], sizes = [16, 8], strides = [1, 1]} : vector<16x96xf32> to vector<16x8xf32>
    %496 = vector.extract_strided_slice %428 {offsets = [0, 88], sizes = [16, 8], strides = [1, 1]} : vector<16x96xf32> to vector<16x8xf32>
    %cst_179 = arith.constant dense<0.000000e+00> : vector<16x16xf32>
    %497 = tpu.matmul %494, %495, %cst_179 {dimension_numbers = #tpu.dot_dimension_numbers<[1], [1], [0], [0], [0, 0, 1, 0], [], []>} : vector<16x8xf32>, vector<16x8xf32>, vector<16x16xf32> -> vector<16x16xf32>
    %cst_180 = arith.constant 0.353553385 : f32
    %498 = vector.broadcast %cst_180 : f32 to vector<16x16xf32>
    %499 = arith.mulf %497, %498 : vector<16x16xf32>
    %500 = arith.addf %499, %381 : vector<16x16xf32>
    %cst_181 = arith.constant dense<0xFF800000> : vector<16xf32>
    %501 = vector.multi_reduction <maximumf>, %500, %cst_181 [1] : vector<16x16xf32> to vector<16xf32>
    %502 = vector.shape_cast %501 : vector<16xf32> to vector<16x1xf32>
    %503 = vector.broadcast %502 : vector<16x1xf32> to vector<16x16xf32>
    %504 = arith.subf %500, %503 : vector<16x16xf32>
    %505 = math.exp %504 : vector<16x16xf32>
    %cst_182 = arith.constant dense<0.000000e+00> : vector<16xf32>
    %506 = vector.multi_reduction <add>, %505, %cst_182 [1] : vector<16x16xf32> to vector<16xf32>
    %507 = vector.shape_cast %506 : vector<16xf32> to vector<16x1xf32>
    %508 = tpu.reciprocal %507 {approx = true} : vector<16x1xf32> -> vector<16x1xf32>
    %509 = vector.broadcast %508 : vector<16x1xf32> to vector<16x16xf32>
    %510 = arith.mulf %505, %509 : vector<16x16xf32>
    %cst_183 = arith.constant dense<0.000000e+00> : vector<16x8xf32>
    %511 = tpu.matmul %510, %496, %cst_183 {dimension_numbers = #tpu.dot_dimension_numbers<[1], [0], [0], [1], [0, 0, 1, 1], [], []>} : vector<16x16xf32>, vector<16x8xf32>, vector<16x8xf32> -> vector<16x8xf32>
    %512 = vector.extract_strided_slice %429 {offsets = [24, 0], sizes = [8, 32], strides = [1, 1]} : vector<32x32xf32> to vector<8x32xf32>
    %cst_184 = arith.constant dense<0.000000e+00> : vector<16x32xf32>
    %513 = tpu.matmul %511, %512, %cst_184 {dimension_numbers = #tpu.dot_dimension_numbers<[1], [0], [0], [1], [0, 0, 1, 1], [], []>} : vector<16x8xf32>, vector<8x32xf32>, vector<16x32xf32> -> vector<16x32xf32>
    %514 = arith.addf %493, %513 : vector<16x32xf32>
    %c240 = arith.constant 240 : index
    %c0_185 = arith.constant 0 : index
    %515 = vector.load %arg1[%c240, %c0_185] : memref<616x96xf32, #tpu.memory_space<vmem>>, vector<1x32xf32>
    %516 = vector.broadcast %515 : vector<1x32xf32> to vector<16x32xf32>
    %517 = arith.addf %514, %516 : vector<16x32xf32>
    %518 = arith.addf %517, %423 : vector<16x32xf32>
    %c248 = arith.constant 248 : index
    %c0_186 = arith.constant 0 : index
    %519 = vector.load %arg1[%c248, %c0_186] : memref<616x96xf32, #tpu.memory_space<vmem>>, vector<1x32xf32>
    %c256 = arith.constant 256 : index
    %c0_187 = arith.constant 0 : index
    %520 = vector.load %arg1[%c256, %c0_187] : memref<616x96xf32, #tpu.memory_space<vmem>>, vector<1x32xf32>
    %cst_188 = arith.constant dense<0.000000e+00> : vector<16xf32>
    %521 = vector.multi_reduction <add>, %518, %cst_188 [1] : vector<16x32xf32> to vector<16xf32>
    %522 = vector.shape_cast %521 : vector<16xf32> to vector<16x1xf32>
    %cst_189 = arith.constant 3.200000e+01 : f32
    %523 = vector.broadcast %cst_189 : f32 to vector<16x1xf32>
    %524 = arith.divf %522, %523 : vector<16x1xf32>
    %525 = vector.broadcast %524 : vector<16x1xf32> to vector<16x32xf32>
    %526 = arith.subf %518, %525 : vector<16x32xf32>
    %527 = arith.mulf %526, %526 : vector<16x32xf32>
    %cst_190 = arith.constant dense<0.000000e+00> : vector<16xf32>
    %528 = vector.multi_reduction <add>, %527, %cst_190 [1] : vector<16x32xf32> to vector<16xf32>
    %529 = vector.shape_cast %528 : vector<16xf32> to vector<16x1xf32>
    %cst_191 = arith.constant 3.200000e+01 : f32
    %530 = vector.broadcast %cst_191 : f32 to vector<16x1xf32>
    %531 = arith.divf %529, %530 : vector<16x1xf32>
    %532 = vector.broadcast %524 : vector<16x1xf32> to vector<16x32xf32>
    %533 = arith.subf %518, %532 : vector<16x32xf32>
    %cst_192 = arith.constant 9.99999974E-6 : f32
    %534 = vector.broadcast %cst_192 : f32 to vector<16x1xf32>
    %535 = arith.addf %531, %534 : vector<16x1xf32>
    %536 = math.rsqrt %535 : vector<16x1xf32>
    %537 = vector.broadcast %536 : vector<16x1xf32> to vector<16x32xf32>
    %538 = arith.mulf %533, %537 : vector<16x32xf32>
    %539 = vector.broadcast %519 : vector<1x32xf32> to vector<16x32xf32>
    %540 = arith.mulf %538, %539 : vector<16x32xf32>
    %541 = vector.broadcast %520 : vector<1x32xf32> to vector<16x32xf32>
    %542 = arith.addf %540, %541 : vector<16x32xf32>
    %c264 = arith.constant 264 : index
    %c0_193 = arith.constant 0 : index
    %543 = vector.load %arg1[%c264, %c0_193] : memref<616x96xf32, #tpu.memory_space<vmem>>, vector<32x64xf32>
    %cst_194 = arith.constant dense<0.000000e+00> : vector<16x64xf32>
    %544 = tpu.matmul %542, %543, %cst_194 {dimension_numbers = #tpu.dot_dimension_numbers<[1], [0], [0], [1], [0, 0, 1, 1], [], []>} : vector<16x32xf32>, vector<32x64xf32>, vector<16x64xf32> -> vector<16x64xf32>
    %c296 = arith.constant 296 : index
    %c0_195 = arith.constant 0 : index
    %545 = vector.load %arg1[%c296, %c0_195] : memref<616x96xf32, #tpu.memory_space<vmem>>, vector<1x64xf32>
    %546 = vector.broadcast %545 : vector<1x64xf32> to vector<16x64xf32>
    %547 = arith.addf %544, %546 : vector<16x64xf32>
    %cst_196 = arith.constant 5.000000e-01 : f32
    %548 = vector.broadcast %cst_196 : f32 to vector<16x64xf32>
    %549 = arith.mulf %548, %547 : vector<16x64xf32>
    %cst_197 = arith.constant 4.471500e-02 : f32
    %550 = vector.broadcast %cst_197 : f32 to vector<16x64xf32>
    %551 = arith.mulf %550, %547 : vector<16x64xf32>
    %552 = arith.mulf %551, %547 : vector<16x64xf32>
    %553 = arith.mulf %552, %547 : vector<16x64xf32>
    %554 = arith.addf %547, %553 : vector<16x64xf32>
    %cst_198 = arith.constant 0.797884583 : f32
    %555 = vector.broadcast %cst_198 : f32 to vector<16x64xf32>
    %556 = arith.mulf %555, %554 : vector<16x64xf32>
    %557 = math.tanh %556 : vector<16x64xf32>
    %cst_199 = arith.constant 1.000000e+00 : f32
    %558 = vector.broadcast %cst_199 : f32 to vector<16x64xf32>
    %559 = arith.addf %558, %557 : vector<16x64xf32>
    %560 = arith.mulf %549, %559 : vector<16x64xf32>
    %c304 = arith.constant 304 : index
    %c0_200 = arith.constant 0 : index
    %561 = vector.load %arg1[%c304, %c0_200] : memref<616x96xf32, #tpu.memory_space<vmem>>, vector<64x32xf32>
    %cst_201 = arith.constant dense<0.000000e+00> : vector<16x32xf32>
    %562 = tpu.matmul %560, %561, %cst_201 {dimension_numbers = #tpu.dot_dimension_numbers<[1], [0], [0], [1], [0, 0, 1, 1], [], []>} : vector<16x64xf32>, vector<64x32xf32>, vector<16x32xf32> -> vector<16x32xf32>
    %c368 = arith.constant 368 : index
    %c0_202 = arith.constant 0 : index
    %563 = vector.load %arg1[%c368, %c0_202] : memref<616x96xf32, #tpu.memory_space<vmem>>, vector<1x32xf32>
    %564 = vector.broadcast %563 : vector<1x32xf32> to vector<16x32xf32>
    %565 = arith.addf %562, %564 : vector<16x32xf32>
    %566 = arith.addf %565, %542 : vector<16x32xf32>
    %c376 = arith.constant 376 : index
    %c0_203 = arith.constant 0 : index
    %567 = vector.load %arg1[%c376, %c0_203] : memref<616x96xf32, #tpu.memory_space<vmem>>, vector<1x32xf32>
    %c384 = arith.constant 384 : index
    %c0_204 = arith.constant 0 : index
    %568 = vector.load %arg1[%c384, %c0_204] : memref<616x96xf32, #tpu.memory_space<vmem>>, vector<1x32xf32>
    %cst_205 = arith.constant dense<0.000000e+00> : vector<16xf32>
    %569 = vector.multi_reduction <add>, %566, %cst_205 [1] : vector<16x32xf32> to vector<16xf32>
    %570 = vector.shape_cast %569 : vector<16xf32> to vector<16x1xf32>
    %cst_206 = arith.constant 3.200000e+01 : f32
    %571 = vector.broadcast %cst_206 : f32 to vector<16x1xf32>
    %572 = arith.divf %570, %571 : vector<16x1xf32>
    %573 = vector.broadcast %572 : vector<16x1xf32> to vector<16x32xf32>
    %574 = arith.subf %566, %573 : vector<16x32xf32>
    %575 = arith.mulf %574, %574 : vector<16x32xf32>
    %cst_207 = arith.constant dense<0.000000e+00> : vector<16xf32>
    %576 = vector.multi_reduction <add>, %575, %cst_207 [1] : vector<16x32xf32> to vector<16xf32>
    %577 = vector.shape_cast %576 : vector<16xf32> to vector<16x1xf32>
    %cst_208 = arith.constant 3.200000e+01 : f32
    %578 = vector.broadcast %cst_208 : f32 to vector<16x1xf32>
    %579 = arith.divf %577, %578 : vector<16x1xf32>
    %580 = vector.broadcast %572 : vector<16x1xf32> to vector<16x32xf32>
    %581 = arith.subf %566, %580 : vector<16x32xf32>
    %cst_209 = arith.constant 9.99999974E-6 : f32
    %582 = vector.broadcast %cst_209 : f32 to vector<16x1xf32>
    %583 = arith.addf %579, %582 : vector<16x1xf32>
    %584 = math.rsqrt %583 : vector<16x1xf32>
    %585 = vector.broadcast %584 : vector<16x1xf32> to vector<16x32xf32>
    %586 = arith.mulf %581, %585 : vector<16x32xf32>
    %587 = vector.broadcast %567 : vector<1x32xf32> to vector<16x32xf32>
    %588 = arith.mulf %586, %587 : vector<16x32xf32>
    %589 = vector.broadcast %568 : vector<1x32xf32> to vector<16x32xf32>
    %590 = arith.addf %588, %589 : vector<16x32xf32>
    %c392 = arith.constant 392 : index
    %c0_210 = arith.constant 0 : index
    %591 = vector.load %arg1[%c392, %c0_210] : memref<616x96xf32, #tpu.memory_space<vmem>>, vector<32x96xf32>
    %cst_211 = arith.constant dense<0.000000e+00> : vector<16x96xf32>
    %592 = tpu.matmul %590, %591, %cst_211 {dimension_numbers = #tpu.dot_dimension_numbers<[1], [0], [0], [1], [0, 0, 1, 1], [], []>} : vector<16x32xf32>, vector<32x96xf32>, vector<16x96xf32> -> vector<16x96xf32>
    %c424 = arith.constant 424 : index
    %c0_212 = arith.constant 0 : index
    %593 = vector.load %arg1[%c424, %c0_212] : memref<616x96xf32, #tpu.memory_space<vmem>>, vector<1x96xf32>
    %594 = vector.broadcast %593 : vector<1x96xf32> to vector<16x96xf32>
    %595 = arith.addf %592, %594 : vector<16x96xf32>
    %c432 = arith.constant 432 : index
    %c0_213 = arith.constant 0 : index
    %596 = vector.load %arg1[%c432, %c0_213] : memref<616x96xf32, #tpu.memory_space<vmem>>, vector<32x32xf32>
    %cst_214 = arith.constant 0.000000e+00 : f32
    %597 = vector.broadcast %cst_214 : f32 to vector<16x32xf32>
    %598 = vector.extract_strided_slice %595 {offsets = [0, 0], sizes = [16, 8], strides = [1, 1]} : vector<16x96xf32> to vector<16x8xf32>
    %599 = vector.extract_strided_slice %595 {offsets = [0, 32], sizes = [16, 8], strides = [1, 1]} : vector<16x96xf32> to vector<16x8xf32>
    %600 = vector.extract_strided_slice %595 {offsets = [0, 64], sizes = [16, 8], strides = [1, 1]} : vector<16x96xf32> to vector<16x8xf32>
    %cst_215 = arith.constant dense<0.000000e+00> : vector<16x16xf32>
    %601 = tpu.matmul %598, %599, %cst_215 {dimension_numbers = #tpu.dot_dimension_numbers<[1], [1], [0], [0], [0, 0, 1, 0], [], []>} : vector<16x8xf32>, vector<16x8xf32>, vector<16x16xf32> -> vector<16x16xf32>
    %cst_216 = arith.constant 0.353553385 : f32
    %602 = vector.broadcast %cst_216 : f32 to vector<16x16xf32>
    %603 = arith.mulf %601, %602 : vector<16x16xf32>
    %604 = arith.addf %603, %381 : vector<16x16xf32>
    %cst_217 = arith.constant dense<0xFF800000> : vector<16xf32>
    %605 = vector.multi_reduction <maximumf>, %604, %cst_217 [1] : vector<16x16xf32> to vector<16xf32>
    %606 = vector.shape_cast %605 : vector<16xf32> to vector<16x1xf32>
    %607 = vector.broadcast %606 : vector<16x1xf32> to vector<16x16xf32>
    %608 = arith.subf %604, %607 : vector<16x16xf32>
    %609 = math.exp %608 : vector<16x16xf32>
    %cst_218 = arith.constant dense<0.000000e+00> : vector<16xf32>
    %610 = vector.multi_reduction <add>, %609, %cst_218 [1] : vector<16x16xf32> to vector<16xf32>
    %611 = vector.shape_cast %610 : vector<16xf32> to vector<16x1xf32>
    %612 = tpu.reciprocal %611 {approx = true} : vector<16x1xf32> -> vector<16x1xf32>
    %613 = vector.broadcast %612 : vector<16x1xf32> to vector<16x16xf32>
    %614 = arith.mulf %609, %613 : vector<16x16xf32>
    %cst_219 = arith.constant dense<0.000000e+00> : vector<16x8xf32>
    %615 = tpu.matmul %614, %600, %cst_219 {dimension_numbers = #tpu.dot_dimension_numbers<[1], [0], [0], [1], [0, 0, 1, 1], [], []>} : vector<16x16xf32>, vector<16x8xf32>, vector<16x8xf32> -> vector<16x8xf32>
    %616 = vector.extract_strided_slice %596 {offsets = [0, 0], sizes = [8, 32], strides = [1, 1]} : vector<32x32xf32> to vector<8x32xf32>
    %cst_220 = arith.constant dense<0.000000e+00> : vector<16x32xf32>
    %617 = tpu.matmul %615, %616, %cst_220 {dimension_numbers = #tpu.dot_dimension_numbers<[1], [0], [0], [1], [0, 0, 1, 1], [], []>} : vector<16x8xf32>, vector<8x32xf32>, vector<16x32xf32> -> vector<16x32xf32>
    %618 = arith.addf %597, %617 : vector<16x32xf32>
    %619 = vector.extract_strided_slice %595 {offsets = [0, 8], sizes = [16, 8], strides = [1, 1]} : vector<16x96xf32> to vector<16x8xf32>
    %620 = vector.extract_strided_slice %595 {offsets = [0, 40], sizes = [16, 8], strides = [1, 1]} : vector<16x96xf32> to vector<16x8xf32>
    %621 = vector.extract_strided_slice %595 {offsets = [0, 72], sizes = [16, 8], strides = [1, 1]} : vector<16x96xf32> to vector<16x8xf32>
    %cst_221 = arith.constant dense<0.000000e+00> : vector<16x16xf32>
    %622 = tpu.matmul %619, %620, %cst_221 {dimension_numbers = #tpu.dot_dimension_numbers<[1], [1], [0], [0], [0, 0, 1, 0], [], []>} : vector<16x8xf32>, vector<16x8xf32>, vector<16x16xf32> -> vector<16x16xf32>
    %cst_222 = arith.constant 0.353553385 : f32
    %623 = vector.broadcast %cst_222 : f32 to vector<16x16xf32>
    %624 = arith.mulf %622, %623 : vector<16x16xf32>
    %625 = arith.addf %624, %381 : vector<16x16xf32>
    %cst_223 = arith.constant dense<0xFF800000> : vector<16xf32>
    %626 = vector.multi_reduction <maximumf>, %625, %cst_223 [1] : vector<16x16xf32> to vector<16xf32>
    %627 = vector.shape_cast %626 : vector<16xf32> to vector<16x1xf32>
    %628 = vector.broadcast %627 : vector<16x1xf32> to vector<16x16xf32>
    %629 = arith.subf %625, %628 : vector<16x16xf32>
    %630 = math.exp %629 : vector<16x16xf32>
    %cst_224 = arith.constant dense<0.000000e+00> : vector<16xf32>
    %631 = vector.multi_reduction <add>, %630, %cst_224 [1] : vector<16x16xf32> to vector<16xf32>
    %632 = vector.shape_cast %631 : vector<16xf32> to vector<16x1xf32>
    %633 = tpu.reciprocal %632 {approx = true} : vector<16x1xf32> -> vector<16x1xf32>
    %634 = vector.broadcast %633 : vector<16x1xf32> to vector<16x16xf32>
    %635 = arith.mulf %630, %634 : vector<16x16xf32>
    %cst_225 = arith.constant dense<0.000000e+00> : vector<16x8xf32>
    %636 = tpu.matmul %635, %621, %cst_225 {dimension_numbers = #tpu.dot_dimension_numbers<[1], [0], [0], [1], [0, 0, 1, 1], [], []>} : vector<16x16xf32>, vector<16x8xf32>, vector<16x8xf32> -> vector<16x8xf32>
    %637 = vector.extract_strided_slice %596 {offsets = [8, 0], sizes = [8, 32], strides = [1, 1]} : vector<32x32xf32> to vector<8x32xf32>
    %cst_226 = arith.constant dense<0.000000e+00> : vector<16x32xf32>
    %638 = tpu.matmul %636, %637, %cst_226 {dimension_numbers = #tpu.dot_dimension_numbers<[1], [0], [0], [1], [0, 0, 1, 1], [], []>} : vector<16x8xf32>, vector<8x32xf32>, vector<16x32xf32> -> vector<16x32xf32>
    %639 = arith.addf %618, %638 : vector<16x32xf32>
    %640 = vector.extract_strided_slice %595 {offsets = [0, 16], sizes = [16, 8], strides = [1, 1]} : vector<16x96xf32> to vector<16x8xf32>
    %641 = vector.extract_strided_slice %595 {offsets = [0, 48], sizes = [16, 8], strides = [1, 1]} : vector<16x96xf32> to vector<16x8xf32>
    %642 = vector.extract_strided_slice %595 {offsets = [0, 80], sizes = [16, 8], strides = [1, 1]} : vector<16x96xf32> to vector<16x8xf32>
    %cst_227 = arith.constant dense<0.000000e+00> : vector<16x16xf32>
    %643 = tpu.matmul %640, %641, %cst_227 {dimension_numbers = #tpu.dot_dimension_numbers<[1], [1], [0], [0], [0, 0, 1, 0], [], []>} : vector<16x8xf32>, vector<16x8xf32>, vector<16x16xf32> -> vector<16x16xf32>
    %cst_228 = arith.constant 0.353553385 : f32
    %644 = vector.broadcast %cst_228 : f32 to vector<16x16xf32>
    %645 = arith.mulf %643, %644 : vector<16x16xf32>
    %646 = arith.addf %645, %381 : vector<16x16xf32>
    %cst_229 = arith.constant dense<0xFF800000> : vector<16xf32>
    %647 = vector.multi_reduction <maximumf>, %646, %cst_229 [1] : vector<16x16xf32> to vector<16xf32>
    %648 = vector.shape_cast %647 : vector<16xf32> to vector<16x1xf32>
    %649 = vector.broadcast %648 : vector<16x1xf32> to vector<16x16xf32>
    %650 = arith.subf %646, %649 : vector<16x16xf32>
    %651 = math.exp %650 : vector<16x16xf32>
    %cst_230 = arith.constant dense<0.000000e+00> : vector<16xf32>
    %652 = vector.multi_reduction <add>, %651, %cst_230 [1] : vector<16x16xf32> to vector<16xf32>
    %653 = vector.shape_cast %652 : vector<16xf32> to vector<16x1xf32>
    %654 = tpu.reciprocal %653 {approx = true} : vector<16x1xf32> -> vector<16x1xf32>
    %655 = vector.broadcast %654 : vector<16x1xf32> to vector<16x16xf32>
    %656 = arith.mulf %651, %655 : vector<16x16xf32>
    %cst_231 = arith.constant dense<0.000000e+00> : vector<16x8xf32>
    %657 = tpu.matmul %656, %642, %cst_231 {dimension_numbers = #tpu.dot_dimension_numbers<[1], [0], [0], [1], [0, 0, 1, 1], [], []>} : vector<16x16xf32>, vector<16x8xf32>, vector<16x8xf32> -> vector<16x8xf32>
    %658 = vector.extract_strided_slice %596 {offsets = [16, 0], sizes = [8, 32], strides = [1, 1]} : vector<32x32xf32> to vector<8x32xf32>
    %cst_232 = arith.constant dense<0.000000e+00> : vector<16x32xf32>
    %659 = tpu.matmul %657, %658, %cst_232 {dimension_numbers = #tpu.dot_dimension_numbers<[1], [0], [0], [1], [0, 0, 1, 1], [], []>} : vector<16x8xf32>, vector<8x32xf32>, vector<16x32xf32> -> vector<16x32xf32>
    %660 = arith.addf %639, %659 : vector<16x32xf32>
    %661 = vector.extract_strided_slice %595 {offsets = [0, 24], sizes = [16, 8], strides = [1, 1]} : vector<16x96xf32> to vector<16x8xf32>
    %662 = vector.extract_strided_slice %595 {offsets = [0, 56], sizes = [16, 8], strides = [1, 1]} : vector<16x96xf32> to vector<16x8xf32>
    %663 = vector.extract_strided_slice %595 {offsets = [0, 88], sizes = [16, 8], strides = [1, 1]} : vector<16x96xf32> to vector<16x8xf32>
    %cst_233 = arith.constant dense<0.000000e+00> : vector<16x16xf32>
    %664 = tpu.matmul %661, %662, %cst_233 {dimension_numbers = #tpu.dot_dimension_numbers<[1], [1], [0], [0], [0, 0, 1, 0], [], []>} : vector<16x8xf32>, vector<16x8xf32>, vector<16x16xf32> -> vector<16x16xf32>
    %cst_234 = arith.constant 0.353553385 : f32
    %665 = vector.broadcast %cst_234 : f32 to vector<16x16xf32>
    %666 = arith.mulf %664, %665 : vector<16x16xf32>
    %667 = arith.addf %666, %381 : vector<16x16xf32>
    %cst_235 = arith.constant dense<0xFF800000> : vector<16xf32>
    %668 = vector.multi_reduction <maximumf>, %667, %cst_235 [1] : vector<16x16xf32> to vector<16xf32>
    %669 = vector.shape_cast %668 : vector<16xf32> to vector<16x1xf32>
    %670 = vector.broadcast %669 : vector<16x1xf32> to vector<16x16xf32>
    %671 = arith.subf %667, %670 : vector<16x16xf32>
    %672 = math.exp %671 : vector<16x16xf32>
    %cst_236 = arith.constant dense<0.000000e+00> : vector<16xf32>
    %673 = vector.multi_reduction <add>, %672, %cst_236 [1] : vector<16x16xf32> to vector<16xf32>
    %674 = vector.shape_cast %673 : vector<16xf32> to vector<16x1xf32>
    %675 = tpu.reciprocal %674 {approx = true} : vector<16x1xf32> -> vector<16x1xf32>
    %676 = vector.broadcast %675 : vector<16x1xf32> to vector<16x16xf32>
    %677 = arith.mulf %672, %676 : vector<16x16xf32>
    %cst_237 = arith.constant dense<0.000000e+00> : vector<16x8xf32>
    %678 = tpu.matmul %677, %663, %cst_237 {dimension_numbers = #tpu.dot_dimension_numbers<[1], [0], [0], [1], [0, 0, 1, 1], [], []>} : vector<16x16xf32>, vector<16x8xf32>, vector<16x8xf32> -> vector<16x8xf32>
    %679 = vector.extract_strided_slice %596 {offsets = [24, 0], sizes = [8, 32], strides = [1, 1]} : vector<32x32xf32> to vector<8x32xf32>
    %cst_238 = arith.constant dense<0.000000e+00> : vector<16x32xf32>
    %680 = tpu.matmul %678, %679, %cst_238 {dimension_numbers = #tpu.dot_dimension_numbers<[1], [0], [0], [1], [0, 0, 1, 1], [], []>} : vector<16x8xf32>, vector<8x32xf32>, vector<16x32xf32> -> vector<16x32xf32>
    %681 = arith.addf %660, %680 : vector<16x32xf32>
    %c464 = arith.constant 464 : index
    %c0_239 = arith.constant 0 : index
    %682 = vector.load %arg1[%c464, %c0_239] : memref<616x96xf32, #tpu.memory_space<vmem>>, vector<1x32xf32>
    %683 = vector.broadcast %682 : vector<1x32xf32> to vector<16x32xf32>
    %684 = arith.addf %681, %683 : vector<16x32xf32>
    %685 = arith.addf %684, %590 : vector<16x32xf32>
    %c472 = arith.constant 472 : index
    %c0_240 = arith.constant 0 : index
    %686 = vector.load %arg1[%c472, %c0_240] : memref<616x96xf32, #tpu.memory_space<vmem>>, vector<1x32xf32>
    %c480 = arith.constant 480 : index
    %c0_241 = arith.constant 0 : index
    %687 = vector.load %arg1[%c480, %c0_241] : memref<616x96xf32, #tpu.memory_space<vmem>>, vector<1x32xf32>
    %cst_242 = arith.constant dense<0.000000e+00> : vector<16xf32>
    %688 = vector.multi_reduction <add>, %685, %cst_242 [1] : vector<16x32xf32> to vector<16xf32>
    %689 = vector.shape_cast %688 : vector<16xf32> to vector<16x1xf32>
    %cst_243 = arith.constant 3.200000e+01 : f32
    %690 = vector.broadcast %cst_243 : f32 to vector<16x1xf32>
    %691 = arith.divf %689, %690 : vector<16x1xf32>
    %692 = vector.broadcast %691 : vector<16x1xf32> to vector<16x32xf32>
    %693 = arith.subf %685, %692 : vector<16x32xf32>
    %694 = arith.mulf %693, %693 : vector<16x32xf32>
    %cst_244 = arith.constant dense<0.000000e+00> : vector<16xf32>
    %695 = vector.multi_reduction <add>, %694, %cst_244 [1] : vector<16x32xf32> to vector<16xf32>
    %696 = vector.shape_cast %695 : vector<16xf32> to vector<16x1xf32>
    %cst_245 = arith.constant 3.200000e+01 : f32
    %697 = vector.broadcast %cst_245 : f32 to vector<16x1xf32>
    %698 = arith.divf %696, %697 : vector<16x1xf32>
    %699 = vector.broadcast %691 : vector<16x1xf32> to vector<16x32xf32>
    %700 = arith.subf %685, %699 : vector<16x32xf32>
    %cst_246 = arith.constant 9.99999974E-6 : f32
    %701 = vector.broadcast %cst_246 : f32 to vector<16x1xf32>
    %702 = arith.addf %698, %701 : vector<16x1xf32>
    %703 = math.rsqrt %702 : vector<16x1xf32>
    %704 = vector.broadcast %703 : vector<16x1xf32> to vector<16x32xf32>
    %705 = arith.mulf %700, %704 : vector<16x32xf32>
    %706 = vector.broadcast %686 : vector<1x32xf32> to vector<16x32xf32>
    %707 = arith.mulf %705, %706 : vector<16x32xf32>
    %708 = vector.broadcast %687 : vector<1x32xf32> to vector<16x32xf32>
    %709 = arith.addf %707, %708 : vector<16x32xf32>
    %c488 = arith.constant 488 : index
    %c0_247 = arith.constant 0 : index
    %710 = vector.load %arg1[%c488, %c0_247] : memref<616x96xf32, #tpu.memory_space<vmem>>, vector<32x64xf32>
    %cst_248 = arith.constant dense<0.000000e+00> : vector<16x64xf32>
    %711 = tpu.matmul %709, %710, %cst_248 {dimension_numbers = #tpu.dot_dimension_numbers<[1], [0], [0], [1], [0, 0, 1, 1], [], []>} : vector<16x32xf32>, vector<32x64xf32>, vector<16x64xf32> -> vector<16x64xf32>
    %c520 = arith.constant 520 : index
    %c0_249 = arith.constant 0 : index
    %712 = vector.load %arg1[%c520, %c0_249] : memref<616x96xf32, #tpu.memory_space<vmem>>, vector<1x64xf32>
    %713 = vector.broadcast %712 : vector<1x64xf32> to vector<16x64xf32>
    %714 = arith.addf %711, %713 : vector<16x64xf32>
    %cst_250 = arith.constant 5.000000e-01 : f32
    %715 = vector.broadcast %cst_250 : f32 to vector<16x64xf32>
    %716 = arith.mulf %715, %714 : vector<16x64xf32>
    %cst_251 = arith.constant 4.471500e-02 : f32
    %717 = vector.broadcast %cst_251 : f32 to vector<16x64xf32>
    %718 = arith.mulf %717, %714 : vector<16x64xf32>
    %719 = arith.mulf %718, %714 : vector<16x64xf32>
    %720 = arith.mulf %719, %714 : vector<16x64xf32>
    %721 = arith.addf %714, %720 : vector<16x64xf32>
    %cst_252 = arith.constant 0.797884583 : f32
    %722 = vector.broadcast %cst_252 : f32 to vector<16x64xf32>
    %723 = arith.mulf %722, %721 : vector<16x64xf32>
    %724 = math.tanh %723 : vector<16x64xf32>
    %cst_253 = arith.constant 1.000000e+00 : f32
    %725 = vector.broadcast %cst_253 : f32 to vector<16x64xf32>
    %726 = arith.addf %725, %724 : vector<16x64xf32>
    %727 = arith.mulf %716, %726 : vector<16x64xf32>
    %c528 = arith.constant 528 : index
    %c0_254 = arith.constant 0 : index
    %728 = vector.load %arg1[%c528, %c0_254] : memref<616x96xf32, #tpu.memory_space<vmem>>, vector<64x32xf32>
    %cst_255 = arith.constant dense<0.000000e+00> : vector<16x32xf32>
    %729 = tpu.matmul %727, %728, %cst_255 {dimension_numbers = #tpu.dot_dimension_numbers<[1], [0], [0], [1], [0, 0, 1, 1], [], []>} : vector<16x64xf32>, vector<64x32xf32>, vector<16x32xf32> -> vector<16x32xf32>
    %c592 = arith.constant 592 : index
    %c0_256 = arith.constant 0 : index
    %730 = vector.load %arg1[%c592, %c0_256] : memref<616x96xf32, #tpu.memory_space<vmem>>, vector<1x32xf32>
    %731 = vector.broadcast %730 : vector<1x32xf32> to vector<16x32xf32>
    %732 = arith.addf %729, %731 : vector<16x32xf32>
    %733 = arith.addf %732, %709 : vector<16x32xf32>
    %c600 = arith.constant 600 : index
    %c0_257 = arith.constant 0 : index
    %734 = vector.load %arg1[%c600, %c0_257] : memref<616x96xf32, #tpu.memory_space<vmem>>, vector<1x32xf32>
    %c608 = arith.constant 608 : index
    %c0_258 = arith.constant 0 : index
    %735 = vector.load %arg1[%c608, %c0_258] : memref<616x96xf32, #tpu.memory_space<vmem>>, vector<1x32xf32>
    %cst_259 = arith.constant dense<0.000000e+00> : vector<16xf32>
    %736 = vector.multi_reduction <add>, %733, %cst_259 [1] : vector<16x32xf32> to vector<16xf32>
    %737 = vector.shape_cast %736 : vector<16xf32> to vector<16x1xf32>
    %cst_260 = arith.constant 3.200000e+01 : f32
    %738 = vector.broadcast %cst_260 : f32 to vector<16x1xf32>
    %739 = arith.divf %737, %738 : vector<16x1xf32>
    %740 = vector.broadcast %739 : vector<16x1xf32> to vector<16x32xf32>
    %741 = arith.subf %733, %740 : vector<16x32xf32>
    %742 = arith.mulf %741, %741 : vector<16x32xf32>
    %cst_261 = arith.constant dense<0.000000e+00> : vector<16xf32>
    %743 = vector.multi_reduction <add>, %742, %cst_261 [1] : vector<16x32xf32> to vector<16xf32>
    %744 = vector.shape_cast %743 : vector<16xf32> to vector<16x1xf32>
    %cst_262 = arith.constant 3.200000e+01 : f32
    %745 = vector.broadcast %cst_262 : f32 to vector<16x1xf32>
    %746 = arith.divf %744, %745 : vector<16x1xf32>
    %747 = vector.broadcast %739 : vector<16x1xf32> to vector<16x32xf32>
    %748 = arith.subf %733, %747 : vector<16x32xf32>
    %cst_263 = arith.constant 9.99999974E-6 : f32
    %749 = vector.broadcast %cst_263 : f32 to vector<16x1xf32>
    %750 = arith.addf %746, %749 : vector<16x1xf32>
    %751 = math.rsqrt %750 : vector<16x1xf32>
    %752 = vector.broadcast %751 : vector<16x1xf32> to vector<16x32xf32>
    %753 = arith.mulf %748, %752 : vector<16x32xf32>
    %754 = vector.broadcast %734 : vector<1x32xf32> to vector<16x32xf32>
    %755 = arith.mulf %753, %754 : vector<16x32xf32>
    %756 = vector.broadcast %735 : vector<1x32xf32> to vector<16x32xf32>
    %757 = arith.addf %755, %756 : vector<16x32xf32>
    %758 = vector.shape_cast %757 : vector<16x32xf32> to vector<2x8x32xf32>
    %c0_264 = arith.constant 0 : index
    %c0_265 = arith.constant 0 : index
    %c0_266 = arith.constant 0 : index
    %c0_267 = arith.constant 0 : index
    %759 = vector.load %arg2[%c0_264, %c0_265, %c0_266, %c0_267] : memref<1x2x8x32xf32, #tpu.memory_space<vmem>>, vector<1x2x8x32xf32>
    %760 = vector.shape_cast %759 : vector<1x2x8x32xf32> to vector<2x8x32xf32>
    %761 = vector.shape_cast %758 : vector<2x8x32xf32> to vector<1x2x8x32xf32>
    tpu.vector_store %arg2[%c0_264, %c0_265, %c0_266, %c0_267], %761 {strides = array<i32>} : memref<1x2x8x32xf32, #tpu.memory_space<vmem>>, vector<1x2x8x32xf32>,
    return
  }
}

</mosaic_0001>

<bundles_post_ra>
// kernel: tpu_custom_call.1
= control target key start
LH: loop header
LB: loop body
LE: loop exit
PB: predicated region body
PF: predicated region fallthrough
CT: control target
= control target key end

     0   :  { %7 = vsyncpa [#allocation4], 0  ;;  %s3257_s0 = inlined_call_operand.vmem [shape: s32[2,8], index: 0, kind: input, shape index: {}]   ;;  %s3258_s1 = inlined_call_operand.vmem [shape: f32[616,96], index: 1, kind: input, shape index: {}]   ;;  %s3259_s2 = inlined_call_operand.hbm [shape: f32[1,2,8,32], index: 2, kind: output, shape index: {}]  }
   0x1   :  { %8 = vsyncpa [#allocation3], 0  ;;  %s14_s11 = sshll.u32 %s3257_s0, 4  ;;  %s2391_s12 = smov [#allocation2]   ;;  %s15_s11 = int_to_ptr.vmem [resolvable:$true] %s14_s11 }
   0x2   :  { %17 = dma.vmem_to_smem %s15_s11, 32, %s2391_s12, [#allocation4]  }
   0x3   :  { %2387 = dma.done.wait [#allocation4], 32  }
   0x4   :  { %2388 = vsyncadd [#allocation4], 4294967264 }
   0x5   :  { %24 = sfence }
   0x6   :  { %v400_v0 = vld [vmem:[%s3258_s1 + $0x60] sm:$0xff]  ;;  %v399_v1 = vld [vmem:[%s3258_s1 + $0x58] sm:$0xff]  ;;  %s2433_s17 = sld [smem:[#allocation2]]  ;;  %v398_v2 = vld [vmem:[%s3258_s1 + $0x50] sm:$0xff]  ;;  %v25_v11 = vlaneseq  ;;  %v2392_v33 = vmov 0   ;;  %v2393_v62 = vmov 0.0  }
   0x7   :  { %446 = vmatpush.msra.mxu1 %v400_v0  ;;  %s2435_s18 = sld [smem:[#allocation2 + $0x1]]  ;;  %v405_v3 = vld [vmem:[%s3258_s1 + $0x88] sm:$0xff]  ;;  %v404_v4 = vld [vmem:[%s3258_s1 + $0x80] sm:$0xff]  ;;  %v403_v6 = vld [vmem:[%s3258_s1 + $0x78] sm:$0xff] }
   0x8   :  { %424 = vmatpush.msra.mxu0 %v405_v3  ;;  %v397_v5 = vld [vmem:[%s3258_s1 + $0x48] sm:$0xff]  ;;  %s2452_s28 = sld [smem:[#allocation2 + $0x2]]  ;;  %v396_v7 = vld [vmem:[%s3258_s1 + $0x40] sm:$0xff]  ;;  %v395_v8 = vld [vmem:[%s3258_s1 + $0x38] sm:$0xff]  ;;  %v2479_v13 = vand.u32 127, %v25_v11  ;;  %v2485_v15 = vshrl.u32 %v25_v11, 7 }
   0x9   :  { %447 = vmatpush.msra.mxu1 %v399_v1  ;;  %v402_v9 = vld [vmem:[%s3258_s1 + $0x70] sm:$0xff]  ;;  %s2464_s7 = sld [smem:[#allocation2 + $0x3]]  ;;  %v401_v10 = vld [vmem:[%s3258_s1 + $0x68] sm:$0xff]  ;;  %v392_v16 = vld [vmem:[%s3258_s1 + $0x20] sm:$0xff] }
   0xa   :  { %425 = vmatpush.msra.mxu0 %v404_v4  ;;  %s2470_s10 = sld [smem:[#allocation2 + $0x4]]  ;;  %v394_v12 = vld [vmem:[%s3258_s1 + $0x30] sm:$0xff]  ;;  %v393_v14 = vld [vmem:[%s3258_s1 + $0x28] sm:$0xff]  ;;  %vm40_vm0 = vcmp.eq.s32.totalorder %v2479_v13, 0  ;;  %v391_v18 = vld [vmem:[%s3258_s1 + $0x18] sm:$0xff]  ;;  %vm60_vm1 = vcmp.eq.s32.totalorder %v2479_v13, 1 }
   0xb   :  { %448 = vmatpush.msra.mxu1 %v398_v2  ;;  %v390_v20 = vld [vmem:[%s3258_s1 + $0x10] sm:$0xff]  ;;  %vm38_vm2 = vcmp.eq.s32.totalorder %v2485_v15, 0  ;;  %v389_v24 = vld [vmem:[%s3258_s1 + $0x8] sm:$0xff]  ;;  %vm58_vm3 = vcmp.eq.s32.totalorder %v2485_v15, 1  ;;  %v2527_v27 = vadd.s32 8, %v2485_v15  ;;  %v388_v28 = vld [vmem:[%s3258_s1] sm:$0xff] }
   0xc   :  { %p31_p0 = scmp.ne.s32.totalorder %s2433_s17, 1  ;;  %426 = vmatpush.msra.mxu0 %v403_v6  ;;  %v41_v21 = vstv %s2433_s17  ;;  %vm80_vm4 = vcmp.eq.s32.totalorder %v2479_v13, 2  ;;  %vm78_vm5 = vcmp.eq.s32.totalorder %v2485_v15, 2  ;;  %vm100_vm7 = vcmp.eq.s32.totalorder %v2479_v13, 3  ;;  %s2587_s3 = sld [smem:[#allocation2 + $0x6]] }
   0xd   :  { %449 = vmatpush.msra.mxu1 %v397_v5  ;;  %p50_p1 = scmp.ne.s32.totalorder %s2435_s18, 1  ;;  %v42_v25 = vsel %vm38_vm2, %v41_v21, 0  ;;  %v61_v26 = vstv %s2435_s18  ;;  %vm198_vm6 = vcmp.eq.s32.totalorder %v2527_v27, 8  ;;  %vm221_vm8 = vcmp.eq.s32.totalorder %v2527_v27, 9  ;;  %s2606_s9 = sld [smem:[#allocation2 + $0x82]] }
   0xe   :  { %s2472_s11 = scalar_select %p31_p0, 1, 0  ;;  %427 = vmatpush.msra.mxu0 %v402_v9  ;;  %v62_v29 = vsel %vm58_vm3, %v61_v26, %v42_v25  ;;  %v81_v30 = vstv %s2452_s28  ;;  %v207_v34 = vsel %vm198_vm6, 1, %v2392_v33  ;;  %vm98_vm9 = vcmp.eq.s32.totalorder %v2485_v15, 3 }
   0xf   :  { %450 = vmatpush.msra.mxu1 %v396_v7  ;;  %s2477_s14 = scalar_select %p50_p1, 1, 0  ;;  %v82_v35 = vsel %vm78_vm5, %v81_v30, %v62_v29  ;;  %v101_v36 = vstv %s2464_s7  ;;  %v230_v37 = vsel %vm221_vm8, 1, %v207_v34  ;;  %vm118_vm10 = vcmp.eq.s32.totalorder %v2485_v15, 4 }
  0x10   :  { %s35_s15 = ssub.s32 1, %s2472_s11  ;;  %428 = vmatpush.msra.mxu0 %v401_v10  ;;  %s33_s24 = smul.u32 %s2472_s11, %s2472_s11  ;;  %vm120_vm11 = vcmp.eq.s32.totalorder %v2479_v13, 4  ;;  %v102_v41 = vsel %vm98_vm9, %v101_v36, %v82_v35  ;;  %v121_v42 = vstv %s2470_s10  ;;  %vm138_vm12 = vcmp.eq.s32.totalorder %v2485_v15, 5 }
  0x11   :  { %451 = vmatpush.msra.mxu1 %v395_v8  ;;  %s36_s16 = scvt.s32.f32 %s35_s15  ;;  %s55_s21 = ssub.s32 1, %s2477_s14  ;;  %v122_v47 = vsel %vm118_vm10, %v121_v42, %v102_v41  ;;  %vm244_vm13 = vcmp.eq.s32.totalorder %v2527_v27, 10  ;;  %vm158_vm14 = vcmp.eq.s32.totalorder %v2485_v15, 6  ;;  %vm178_vm15 = vcmp.eq.s32.totalorder %v2485_v15, 7 }
  0x12   :  { %s56_s25 = scvt.s32.f32 %s55_s21  ;;  %p70_p2 = scmp.ne.s32.totalorder %s2452_s28, 1  ;;  %v253_v51 = vsel %vm244_vm13, 1, %v230_v37  ;;  %v161_v55 = vstv %s2587_s3 }
  0x13   :  { %452 = vmatpush.msra.mxu1 %v394_v12  ;;  %s37_s20 = smul.f32 -10000.0, %s36_s16  ;;  %p90_p3 = scmp.ne.s32.totalorder %s2464_s7, 1 }
  0x14   :  { %s2501_s29 = sadd.s32 %s2477_s14, %s2472_s11  ;;  %s57_s30 = smul.f32 -10000.0, %s56_s25 }
  0x15   :  { %453 = vmatpush.msra.mxu1 %v393_v14  ;;  %v47_v17 = vstv %s37_s20  ;;  %s2508_s5 = scalar_select %p70_p2, 1, 0 }
  0x16   :  { %v48_v19 = vsel %vm40_vm0, %v47_v17, 0.0  ;;  %v67_v22 = vstv %s57_s30  ;;  %s2511_s6 = scalar_select %p90_p3, 1, 0  ;;  %vm267_vm0 = vcmp.eq.s32.totalorder %v2527_v27, 11 }
  0x17   :  { %454 = vmatpush.msra.mxu1 %v392_v16  ;;  %v68_v23 = vsel %vm60_vm1, %v67_v22, %v48_v19  ;;  %s75_s8 = ssub.s32 1, %s2508_s5  ;;  %p110_p4 = scmp.ne.s32.totalorder %s2470_s10, 1  ;;  %v276_v58 = vsel %vm267_vm0, 1, %v253_v51  ;;  %vm436_vm1 = vcmask 850944  }
  0x18   :  { %s2521_s13 = sadd.s32 %s2508_s5, %s2501_s29  ;;  %s76_s17 = scvt.s32.f32 %s75_s8 }
  0x19   :  { %455 = vmatpush.msra.mxu1 %v391_v18  ;;  %s53_s15 = smul.u32 %s2501_s29, %s2477_s14  ;;  %s95_s16 = ssub.s32 1, %s2511_s6 }
  0x1a   :  { %s2538_s20 = sadd.s32 1, %s33_s24  ;;  %s77_s21 = smul.f32 -10000.0, %s76_s17 }
  0x1b   :  { %456 = vmatpush.msra.mxu1 %v390_v20  ;;  %s2544_s18 = sadd.s32 %s2511_s6, %s2521_s13  ;;  %s96_s22 = scvt.s32.f32 %s95_s16  ;;  %v44_v38 = vstv %s2538_s20 }
  0x1c   :  { %v87_v31 = vstv %s77_s21  ;;  %s2551_s11 = scalar_select %p110_p4, 1, 0  ;;  %v45_v43 = vsel %vm38_vm2, %v44_v38, 0 }
  0x1d   :  { %457 = vmatpush.msra.mxu1 %v389_v24  ;;  %s2554_s14 = sadd.s32 1, %s53_s15  ;;  %v88_v32 = vsel %vm80_vm4, %v87_v31, %v68_v23  ;;  %s97_s23 = smul.f32 -10000.0, %s96_s22  ;;  %vm290_vm4 = vcmp.eq.s32.totalorder %v2527_v27, 12 }
  0x1e   :  { %s73_s28 = smul.u32 %s2521_s13, %s2508_s5  ;;  %s115_s24 = ssub.s32 1, %s2551_s11  ;;  %v64_v44 = vstv %s2554_s14  ;;  %v299_v3 = vsel %vm290_vm4, 1, %v276_v58 }
  0x1f   :  { %458 = vmatpush.msra.mxu1 %v388_v28  ;;  %s93_s25 = smul.u32 %s2544_s18, %s2511_s6  ;;  %v107_v39 = vstv %s97_s23  ;;  %s116_s26 = scvt.s32.f32 %s115_s24  ;;  %v65_v48 = vsel %vm58_vm3, %v64_v44, %v45_v43  ;;  %vm140_vm3 = vcmp.eq.s32.totalorder %v2479_v13, 5  ;;  %v246_v28 = vstv %s2606_s9 }
  0x20   :  { %v108_v40 = vsel %vm100_vm7, %v107_v39, %v88_v32  ;;  %s2575_s27 = sadd.s32 %s2551_s11, %s2544_s18  ;;  %s2577_s29 = sld [smem:[#allocation2 + $0x5]]  ;;  %vm313_vm7 = vcmp.eq.s32.totalorder %v2527_v27, 13 }
  0x21   :  { %s117_s30 = smul.f32 -10000.0, %s116_s26  ;;  %s74_s7 = sadd.s32 1, %s73_s28  ;;  %v322_v10 = vsel %vm313_vm7, 1, %v299_v3 }
  0x22   :  { %s113_s4 = smul.u32 %s2575_s27, %s2551_s11  ;;  %s2591_s5 = sld [smem:[#allocation2 + $0x7]]  ;;  %v84_v49 = vstv %s74_s7 }
  0x23   :  { %v127_v45 = vstv %s117_s30  ;;  %s2596_s10 = sld [smem:[#allocation2 + $0x80]]  ;;  %s94_s6 = sadd.s32 1, %s93_s25  ;;  %v85_v53 = vsel %vm78_vm5, %v84_v49, %v65_v48  ;;  %vm160_vm5 = vcmp.eq.s32.totalorder %v2479_v13, 6 }
  0x24   :  { %v128_v46 = vsel %vm120_vm11, %v127_v45, %v108_v40  ;;  %s2600_s8 = sld [smem:[#allocation2 + $0x81]]  ;;  %s114_s12 = sadd.s32 1, %s113_s4  ;;  %v104_v54 = vstv %s94_s6 }
  0x25   :  { %s2613_s13 = sld [smem:[#allocation2 + $0x83]]  ;;  %p150_p6 = scmp.ne.s32.totalorder %s2587_s3, 1  ;;  %v105_v60 = vsel %vm98_vm9, %v104_v54, %v85_v53  ;;  %v124_v61 = vstv %s114_s12  ;;  %vm180_vm9 = vcmp.eq.s32.totalorder %v2479_v13, 7 }
  0x26   :  { %p130_p5 = scmp.ne.s32.totalorder %s2577_s29, 1  ;;  %v141_v50 = vstv %s2577_s29  ;;  %v125_v0 = vsel %vm118_vm10, %v124_v61, %v105_v60  ;;  %vm406_vm10 = vcmask 326656   ;;  %p235_p10 = scmp.ne.s32.totalorder %s2606_s9, 1 }
  0x27   :  { %v142_v52 = vsel %vm138_vm12, %v141_v50, %v122_v47  ;;  %s151_s20 = scalar_select %p150_p6, 1, 0 }
  0x28   :  { %s131_s17 = scalar_select %p130_p5, 1, 0  ;;  %v162_v56 = vsel %vm158_vm14, %v161_v55, %v142_v52  ;;  %v181_v57 = vstv %s2591_s5 }
  0x29   :  { %p170_p7 = scmp.ne.s32.totalorder %s2591_s5, 1  ;;  %v182_v59 = vsel %vm178_vm15, %v181_v57, %v162_v56  ;;  %s155_s11 = ssub.s32 1, %s151_s20  ;;  %v200_v18 = vstv %s2596_s10 }
  0x2a   :  { %s132_s15 = sadd.s32 %s131_s17, %s2575_s27  ;;  %s135_s16 = ssub.s32 1, %s131_s17  ;;  %vm376_vm2 = vcmp.eq.s32.totalorder %v2479_v13, %v182_v59  ;;  %v202_v21 = vsel %vm198_vm6, %v200_v18, 0  ;;  %v223_v22 = vstv %s2600_s8 }
  0x2b   :  { %s133_s0 = smul.u32 %s132_s15, %s131_s17  ;;  %s136_s19 = scvt.s32.f32 %s135_s16  ;;  %v2092_v63 = vsel %vm376_vm2, 1.0, %v2393_v62  ;;  %vm359_vm2 = vcmp.eq.s32.totalorder %v2527_v27, 15  ;;  %v225_v26 = vsel %vm221_vm8, %v223_v22, %v202_v21  ;;  %v269_v30 = vstv %s2613_s13 }
  0x2c   :  { %2098 = vmatmul.msk.f32.vlgmr.msra.gmra.mxu1 %vm436_vm1, %v2092_v63  ;;  %s152_s22 = sadd.s32 %s151_s20, %s132_s15  ;;  %s156_s23 = scvt.s32.f32 %s155_s11  ;;  %v248_v29 = vsel %vm244_vm13, %v246_v28, %v225_v26 }
  0x2d   :  { %s134_s21 = sadd.s32 1, %s133_s0  ;;  %s137_s18 = smul.f32 -10000.0, %s136_s19  ;;  %v271_v35 = vsel %vm267_vm0, %v269_v30, %v248_v29 }
  0x2e   :  { %v144_v1 = vstv %s134_s21  ;;  %s153_s14 = smul.u32 %s152_s22, %s151_s20  ;;  %p190_p8 = scmp.ne.s32.totalorder %s2596_s10, 1 }
  0x2f   :  { %v147_v2 = vstv %s137_s18  ;;  %s171_s28 = scalar_select %p170_p7, 1, 0  ;;  %v145_v5 = vsel %vm138_vm12, %v144_v1, %v125_v0  ;;  %vm336_vm12 = vcmp.eq.s32.totalorder %v2527_v27, 14  ;;  %v2238_v27 = vld [vmem:[%s3258_s1 + $0x90] ss:$0 sm:$0xff] }
  0x30   :  { %v148_v4 = vsel %vm140_vm3, %v147_v2, %v128_v46  ;;  %s154_s24 = sadd.s32 1, %s153_s14  ;;  %s157_s25 = smul.f32 -10000.0, %s156_s23  ;;  %v345_v17 = vsel %vm336_vm12, 1, %v322_v10  ;;  %vm245_vm3 = vcmp.eq.s32.totalorder %v2479_v13, 10 }
  0x31   :  { %v164_v6 = vstv %s154_s24  ;;  %s172_s26 = sadd.s32 %s171_s28, %s152_s22  ;;  %s175_s27 = ssub.s32 1, %s171_s28  ;;  %v2692_v23 = vsel %vm359_vm2, 1, %v345_v17 }
  0x32   :  { %v167_v7 = vstv %s157_s25  ;;  %s173_s29 = smul.u32 %s172_s26, %s171_s28  ;;  %s176_s30 = scvt.s32.f32 %s175_s27  ;;  %v165_v8 = vsel %vm158_vm14, %v164_v6, %v145_v5  ;;  %vm199_vm14 = vcmp.eq.s32.totalorder %v2479_v13, 8 }
  0x33   :  { %v168_v9 = vsel %vm160_vm5, %v167_v7, %v148_v4  ;;  %p212_p9 = scmp.ne.s32.totalorder %s2600_s8, 1  ;;  %p258_p11 = scmp.ne.s32.totalorder %s2613_s13, 1  ;;  %vm268_vm5 = vcmp.eq.s32.totalorder %v2479_v13, 11  ;;  %v208_v37 = vsel %vm199_vm14, 1, %v2392_v33 }
  0x34   :  { %s174_s7 = sadd.s32 1, %s173_s29  ;;  %s177_s3 = smul.f32 -10000.0, %s176_s30 }
  0x35   :  { %v184_v11 = vstv %s174_s7  ;;  %s2655_s4 = scalar_select %p190_p8, 1, 0 }
  0x36   :  { %v185_v12 = vsel %vm178_vm15, %v184_v11, %v165_v8  ;;  %v187_v14 = vstv %s177_s3  ;;  %s2659_s5 = scalar_select %p212_p9, 1, 0  ;;  %vm222_vm15 = vcmp.eq.s32.totalorder %v2479_v13, 9 }
  0x37   :  { %v188_v16 = vsel %vm180_vm9, %v187_v14, %v168_v9  ;;  %vm382_vm11 = vcmp.eq.s32.totalorder %v2479_v13, %v185_v12  ;;  %s194_s6 = ssub.s32 1, %s2655_s4  ;;  %s192_s15 = smul.u32 %s2655_s4, %s2655_s4  ;;  %v231_v33 = vsel %vm222_vm15, 1, %v208_v37  ;;  %vm472_vm9 = vcmask 261120  }
  0x38   :  { %v2094_v15 = vsel %vm382_vm11, 1.0, %v2393_v62  ;;  %s195_s12 = scvt.s32.f32 %s194_s6  ;;  %s2667_s17 = sadd.s32 %s2659_s5, %s2655_s4  ;;  %v254_v47 = vsel %vm245_vm3, 1, %v231_v33 }
  0x39   :  { %2096 = vmatmul.msk.f32.vlgmr.msra.gmra.mxu0 %vm406_vm10, %v2094_v15  ;;  %s217_s0 = ssub.s32 1, %s2659_s5  ;;  %s215_s19 = smul.u32 %s2667_s17, %s2659_s5  ;;  %v277_v54 = vsel %vm268_vm5, 1, %v254_v47 }
  0x3a   :  { %s196_s16 = smul.f32 -10000.0, %s195_s12  ;;  %s218_s20 = scvt.s32.f32 %s217_s0 }
  0x3b   :  { %s2684_s18 = sld [smem:[#allocation2 + $0x84]]  ;;  %s193_s8 = sadd.s32 1, %s192_s15 }
  0x3c   :  { %v209_v19 = vstv %s196_s16  ;;  %s219_s21 = smul.f32 -10000.0, %s218_s20  ;;  %s2703_s25 = sadd.s32 1, %s215_s19  ;;  %v203_v32 = vstv %s193_s8 }
  0x3d   :  { %v210_v20 = vsel %vm199_vm14, %v209_v19, %v188_v16  ;;  %s236_s10 = scalar_select %p235_p10, 1, 0  ;;  %v205_v39 = vsel %vm198_vm6, %v203_v32, 0  ;;  %v226_v40 = vstv %s2703_s25  ;;  %vm291_vm6 = vcmp.eq.s32.totalorder %v2479_v13, 12 }
  0x3e   :  { %v232_v24 = vstv %s219_s21  ;;  %s2694_s22 = scalar_select %p258_p11, 1, 0  ;;  %v228_v44 = vsel %vm221_vm8, %v226_v40, %v205_v39  ;;  %vm314_vm8 = vcmp.eq.s32.totalorder %v2479_v13, 13  ;;  %v300_v59 = vsel %vm291_vm6, 1, %v277_v54 }
  0x3f   :  { %v233_v25 = vsel %vm222_vm15, %v232_v24, %v210_v20  ;;  %s237_s11 = sadd.s32 %s236_s10, %s2667_s17  ;;  %s240_s14 = ssub.s32 1, %s236_s10  ;;  %v323_v2 = vsel %vm314_vm8, 1, %v300_v59 }
  0x40   :  { %s241_s23 = scvt.s32.f32 %s240_s14  ;;  %s238_s28 = smul.u32 %s237_s11, %s236_s10 }
  0x41   :  { %s263_s24 = ssub.s32 1, %s2694_s22  ;;  %s2710_s27 = sadd.s32 %s2694_s22, %s237_s11  ;;  %v292_v36 = vstv %s2684_s18 }
  0x42   :  { %s242_s26 = smul.f32 -10000.0, %s241_s23  ;;  %s264_s29 = scvt.s32.f32 %s263_s24  ;;  %v294_v42 = vsel %vm290_vm4, %v292_v36, %v271_v35 }
  0x43   :  { %p281_p12 = scmp.ne.s32.totalorder %s2684_s18, 1  ;;  %s2714_s9 = sld [smem:[#allocation2 + $0x85]] }
  0x44   :  { %v255_v31 = vstv %s242_s26  ;;  %s2716_s30 = sadd.s32 1, %s238_s28  ;;  %s265_s7 = smul.f32 -10000.0, %s264_s29 }
  0x45   :  { %v256_v34 = vsel %vm245_vm3, %v255_v31, %v233_v25  ;;  %s282_s13 = scalar_select %p281_p12, 1, 0  ;;  %v249_v45 = vstv %s2716_s30  ;;  %v2394_v25 = vmov 32.0  }
  0x46   :  { %s261_s3 = smul.u32 %s2710_s27, %s2694_s22  ;;  %v278_v38 = vstv %s265_s7  ;;  %s2728_s4 = sld [smem:[#allocation2 + $0x86]]  ;;  %v251_v50 = vsel %vm244_vm13, %v249_v45, %v228_v44  ;;  %2257 = vrcp.f32 %v2394_v25  ;;  %v532_v44 = vld [vmem:[%s3258_s1 + $0xb8] sm:$0xff]  ;;  %v531_v45 = vld [vmem:[%s3258_s1 + $0xb0] sm:$0xff] }
  0x47   :  { %v279_v41 = vsel %vm268_vm5, %v278_v38, %v256_v34  ;;  %s283_s5 = sadd.s32 %s282_s13, %s2710_s27  ;;  %s286_s6 = ssub.s32 1, %s282_s13  ;;  %vm575_vm5 = vcmask 64512  }
  0x48   :  { %s284_s12 = smul.u32 %s283_s5, %s282_s13  ;;  %s287_s17 = scvt.s32.f32 %s286_s6 }
  0x49   :  { %p304_p13 = scmp.ne.s32.totalorder %s2714_s9, 1  ;;  %s2741_s15 = sld [smem:[#allocation2 + $0x87]]  ;;  %v315_v43 = vstv %s2714_s9 }
  0x4a   :  { %s262_s16 = sadd.s32 1, %s261_s3  ;;  %s288_s0 = smul.f32 -10000.0, %s287_s17  ;;  %v317_v46 = vsel %vm313_vm7, %v315_v43, %v294_v42  ;;  %v533_v43 = vld [vmem:[%s3258_s1 + $0xc0] sm:$0xff] }
  0x4b   :  { %s305_s19 = scalar_select %p304_p13, 1, 0  ;;  %v272_v51 = vstv %s262_s16  ;;  %2176 = vmatpush.msra.mxu3 %v533_v43  ;;  %554 = vmatpush.msra.mxu2 %v533_v43 }
  0x4c   :  { %s285_s20 = sadd.s32 1, %s284_s12  ;;  %v301_v48 = vstv %s288_s0  ;;  %p327_p0 = scmp.ne.s32.totalorder %s2728_s4, 1  ;;  %v338_v49 = vstv %s2728_s4  ;;  %v274_v56 = vsel %vm267_vm0, %v272_v51, %v251_v50  ;;  %vm337_vm0 = vcmp.eq.s32.totalorder %v2479_v13, 14  ;;  %v2258_v26 = vpop.eup %2257 }
  0x4d   :  { %v302_v52 = vsel %vm291_vm6, %v301_v48, %v279_v41  ;;  %s306_s21 = sadd.s32 %s305_s19, %s283_s5  ;;  %s309_s18 = ssub.s32 1, %s305_s19  ;;  %v340_v53 = vsel %vm336_vm12, %v338_v49, %v317_v46  ;;  %v295_v57 = vstv %s285_s20  ;;  %v346_v6 = vsel %vm337_vm0, 1, %v323_v2  ;;  %2177 = vmatpush.msra.mxu3 %v532_v44  ;;  %555 = vmatpush.msra.mxu2 %v532_v44  ;;  %v530_v46 = vld [vmem:[%s3258_s1 + $0xa8] sm:$0xff]  ;;  %v2240_v2 = vld [vmem:[%s3258_s1 + $0xa0] ss:$0 sm:$0xff] }
  0x4e   :  { %s307_s10 = smul.u32 %s306_s21, %s305_s19  ;;  %s310_s22 = scvt.s32.f32 %s309_s18  ;;  %v297_v63 = vsel %vm290_vm4, %v295_v57, %v274_v56  ;;  %vm360_vm4 = vcmp.eq.s32.totalorder %v2479_v13, 15  ;;  %v480_v28 = vmul.f32 32.0, %v2258_v26 }
  0x4f   :  { %s328_s11 = scalar_select %p327_p0, 1, 0  ;;  %v361_v55 = vstv %s2741_s15  ;;  %v2782_v9 = vsel %vm360_vm4, 1, %v346_v6  ;;  %2178 = vmatpush.msra.mxu3 %v531_v45  ;;  %556 = vmatpush.msra.mxu2 %v531_v45 }
  0x50   :  { %s308_s14 = sadd.s32 1, %s307_s10  ;;  %s311_s8 = smul.f32 -10000.0, %s310_s22  ;;  %v363_v58 = vsel %vm359_vm2, %v361_v55, %v340_v53  ;;  %v481_v29 = vsub.f32 1.0, %v480_v28  ;;  %vm2091_vm6 = vcmp.eq.s32.totalorder %v2782_v9, 0 }
  0x51   :  { %s329_s23 = sadd.s32 %s328_s11, %s306_s21  ;;  %s332_s28 = ssub.s32 1, %s328_s11  ;;  %vm377_vm13 = vcmp.eq.s32.totalorder %v2479_v13, %v363_v58  ;;  %v318_v0 = vstv %s308_s14  ;;  %2179 = vmatpush.msra.mxu3 %v530_v46  ;;  %557 = vmatpush.msra.mxu2 %v530_v46 }
  0x52   :  { %v324_v60 = vstv %s311_s8  ;;  %s330_s24 = smul.u32 %s329_s23, %s328_s11  ;;  %s333_s25 = scvt.s32.f32 %s332_s28  ;;  %v2093_v61 = vsel %vm377_vm13, 1.0, %v2393_v62  ;;  %v320_v3 = vsel %vm313_vm7, %v318_v0, %v297_v63  ;;  %v482_v30 = vmul.f32 %v2258_v26, %v481_v29 }
  0x53   :  { %v325_v1 = vsel %vm314_vm8, %v324_v60, %v302_v52  ;;  %p350_p1 = scmp.ne.s32.totalorder %s2741_s15, 1  ;;  %2099 = vmatmul.msk.f32.gmra.mxu1 %vm436_vm1, %v2093_v61  ;;  %vm373_vm1 = vcmp.eq.s32.totalorder %v2692_v23, %v2782_v9  ;;  %v2239_v61 = vld [vmem:[%s3258_s1 + $0x98] ss:$0 sm:$0xff]  ;;  %s2396_s28 = smov 96   ;;  %vm611_vm8 = vcmask 130048  }
  0x54   :  { %s331_s26 = sadd.s32 1, %s330_s24  ;;  %s334_s27 = smul.f32 -10000.0, %s333_s25  ;;  %v483_v31 = vadd.f32 %v2258_v26, %v482_v30 }
  0x55   :  { %s351_s29 = scalar_select %p350_p1, 1, 0  ;;  %v341_v4 = vstv %s331_s26 }
  0x56   :  { %v347_v5 = vstv %s334_s27  ;;  %v343_v8 = vsel %vm336_vm12, %v341_v4, %v320_v3  ;;  %s2397_s24 = smov 120   ;;  %s2398_s25 = smov 64  }
  0x57   :  { %v348_v7 = vsel %vm337_vm0, %v347_v5, %v325_v1  ;;  %s352_s9 = sadd.s32 %s351_s29, %s329_s23  ;;  %s355_s30 = ssub.s32 1, %s351_s29 }
  0x58   :  { %s353_s7 = smul.u32 %s352_s9, %s351_s29  ;;  %s356_s13 = scvt.s32.f32 %s355_s30 }
  0x59   :  { %s2395_s23 = smov 88   ;;  %s2399_s26 = smov 80  }
  0x5a   :  { %s354_s3 = sadd.s32 1, %s353_s7  ;;  %s357_s4 = smul.f32 -10000.0, %s356_s13 }
  0x5b   :  { %v364_v10 = vstv %s354_s3  ;;  %s2400_s27 = smov 56   ;;  %s2401_s29 = smov 72  }
  0x5c   :  { %v366_v11 = vsel %vm359_vm2, %v364_v10, %v343_v8  ;;  %v370_v12 = vstv %s357_s4  ;;  %s2402_s9 = smov 112   ;;  %s2403_s13 = smov 104  }
  0x5d   :  { %v2788_v14 = vsel %vm360_vm4, %v370_v12, %v348_v7  ;;  %vm383_vm7 = vcmp.eq.s32.totalorder %v2479_v13, %v366_v11  ;;  %s2404_s5 = smov 48   ;;  %s2405_s6 = smov 40  }
  0x5e   :  { %v2792_v16 = vsel %vm373_vm1, %v2788_v14, -10000.0  ;;  %v2095_v15 = vsel %vm383_vm7, 1.0, %v2393_v62  ;;  %s2406_s0 = smov [#allocation5]   ;;  %s2063_s18 = sshll.u32 %s3259_s2, 4  ;;  %s2064_s18 = int_to_ptr.hbm [resolvable:$true] %s2063_s18 }
  0x5f   :  { %2097 = vmatmul.msk.f32.gmra.mxu0 %vm406_vm10, %v2095_v15  ;;  %vm484_vm10 = vweird.f32 %v2258_v26  ;;  %v2241_v15 = vld [vmem:[%s3258_s1 + $0xc8] ss:$0 sm:$0xff]  ;;  %s2061_s19 = sshll.u32 %s2406_s0, 4  ;;  %s2408_s10 = smov 8   ;;  %s2062_s19 = int_to_ptr.vmem [resolvable:$true] %s2061_s19 }
  0x60   :  { %v2801_v32 = vsel %vm484_vm10, %v2258_v26, %v483_v31 }
  0xa9   :  { %v460_v17 = vpop.f32.mrf.mxu1 }
  0xb6   :  { %v430_v18 = vpop.f32.mrf.mxu0 }
  0xb7   :  { %v461_v23 = vadd.f32 %v460_v17, %v430_v18 }
  0xb9   :  { %v468_v24 = vadd.f32 %v2238_v27, %v461_v23 }
  0xbb   :  { %v473_v62 = vsel %vm472_vm9, %v468_v24, 0.0 }
  0xd0   :  { %v463_v19 = vpop.f32.mrf.mxu1 }
  0xdc   :  { %v433_v20 = vpop.f32.mrf.mxu0 }
  0xdd   :  { %v464_v21 = vadd.f32 %v463_v19, %v433_v20 }
  0xdf   :  { %v469_v22 = vadd.f32 %v2238_v27, %v464_v21 }
  0xe1   :  { %v476_v13 = vsel %vm472_vm9, %v469_v22, 0.0 }
  0xe2   :  { %477 = vadd.xlane.f32.xlu0 %v476_v13 }
  0xea   :  { %474 = vadd.xlane.f32.xlu0 %v473_v62  ;;  %v2866_v62 = vsel %vm2091_vm6, %v2788_v14, -10000.0 }
 0x155   :  { %v478_v34 = vpop.xlane.xlu0 %477 }
 0x156   :  { %v487_v35 = vmul.f32 %v2801_v32, %v478_v34 }
 0x158   :  { %v489_v36 = vsub.f32 %v469_v22, %v487_v35 }
 0x15a   :  { %v491_v37 = vmul.f32 %v489_v36, %v489_v36 }
 0x15c   :  { %v495_v38 = vsel %vm472_vm9, %v491_v37, 0.0 }
 0x15d   :  { %496 = vadd.xlane.f32.xlu1 %v495_v38  ;;  %v475_v39 = vpop.xlane.xlu0 %474 }
 0x15e   :  { %v486_v40 = vmul.f32 %v2801_v32, %v475_v39 }
 0x160   :  { %v488_v41 = vsub.f32 %v468_v24, %v486_v40 }
 0x162   :  { %v490_v42 = vmul.f32 %v488_v41, %v488_v41 }
 0x164   :  { %v492_v33 = vsel %vm472_vm9, %v490_v42, 0.0 }
 0x165   :  { %493 = vadd.xlane.f32.xlu1 %v492_v33 }
 0x1d0   :  { %v497_v47 = vpop.xlane.xlu1 %496 }
 0x1d1   :  { %v499_v48 = vmul.f32 %v497_v47, %v2801_v32 }
 0x1d3   :  { %v501_v49 = vadd.f32 1e-05, %v499_v48 }
 0x1d5   :  { %2259 = vrsqrt.f32 %v501_v49  ;;  %vm518_vm12 = vweird.f32 %v501_v49 }
 0x1d8   :  { %v494_v50 = vpop.xlane.xlu1 %493 }
 0x1d9   :  { %v498_v51 = vmul.f32 %v494_v50, %v2801_v32 }
 0x1db   :  { %v2260_v52 = vpop.eup %2259  ;;  %v500_v53 = vadd.f32 1e-05, %v498_v51 }
 0x1dc   :  { %v513_v54 = vmul.f32 %v2260_v52, %v501_v49  ;;  %vm519_vm11 = vweird.f32 %v2260_v52 }
 0x1dd   :  { %2261 = vrsqrt.f32 %v500_v53  ;;  %vm520_vm14 = vmor %vm518_vm12, %vm519_vm11  ;;  %vm508_vm2 = vweird.f32 %v500_v53  ;;  %vm1210_vm11 = vcmask 523264  }
 0x1de   :  { %v514_v55 = vmul.f32 %v2260_v52, %v513_v54 }
 0x1e0   :  { %v515_v56 = vmul.f32 0.5, %v514_v55 }
 0x1e2   :  { %v516_v57 = vsub.f32 1.5, %v515_v56 }
 0x1e3   :  { %v2262_v58 = vpop.eup %2261 }
 0x1e4   :  { %v517_v59 = vmul.f32 %v2260_v52, %v516_v57  ;;  %v503_v60 = vmul.f32 %v2262_v58, %v500_v53  ;;  %vm509_vm15 = vweird.f32 %v2262_v58 }
 0x1e5   :  { %vm510_vm3 = vmor %vm508_vm2, %vm509_vm15 }
 0x1e6   :  { %v521_v63 = vsel %vm520_vm14, %v2260_v52, %v517_v59  ;;  %v504_v0 = vmul.f32 %v2262_v58, %v503_v60 }
 0x1e7   :  { %v523_v1 = vmul.f32 %v521_v63, %v489_v36 }
 0x1e8   :  { %v505_v3 = vmul.f32 0.5, %v504_v0 }
 0x1e9   :  { %v526_v4 = vmul.f32 %v2239_v61, %v523_v1 }
 0x1ea   :  { %v506_v5 = vsub.f32 1.5, %v505_v3 }
 0x1eb   :  { %v2827_v6 = vadd.f32 %v2240_v2, %v526_v4 }
 0x1ec   :  { %v507_v7 = vmul.f32 %v2262_v58, %v506_v5 }
 0x1ed   :  { %2101 = vmatmul.msk.f32.vlgmr.msra.gmra.mxu3 %vm472_vm9, %v2827_v6 }
 0x1ee   :  { %v511_v8 = vsel %vm510_vm3, %v2262_v58, %v507_v7 }
 0x1ef   :  { %v522_v10 = vmul.f32 %v511_v8, %v488_v41 }
 0x1f1   :  { %v525_v11 = vmul.f32 %v2239_v61, %v522_v10  ;;  %v565_v61 = vld [vmem:[%s3258_s1 + $0xd0] sm:$0xff] }
 0x1f3   :  { %v2831_v12 = vadd.f32 %v2240_v2, %v525_v11 }
 0x1f5   :  { %2100 = vmatmul.msk.f32.vlgmr.msra.gmra.mxu2 %vm472_vm9, %v2831_v12 }
 0x270   :  { %v562_v17 = vpop.f32.mrf.mxu3 }
 0x271   :  { %v2838_v18 = vadd.f32 %v2241_v15, %v562_v17 }
 0x273   :  { %675 = vrot.lane.b32.xlu0 %v2838_v18, %s2395_s23  ;;  %573 = vrot.lane.b32.xlu2 %v2838_v18, %s2396_s28 }
 0x278   :  { %v559_v19 = vpop.f32.mrf.mxu2 }
 0x279   :  { %v2844_v20 = vadd.f32 %v2241_v15, %v559_v19 }
 0x27b   :  { %673 = vrot.lane.b32.xlu1 %v2844_v20, %s2395_s23  ;;  %571 = vrot.lane.b32.xlu2 %v2844_v20, %s2396_s28  ;;  %v2874_v9 = vpack.i.bf16 %v2844_v20, %v2838_v18 }
 0x283   :  { %669 = vrot.lane.b32.xlu2 %v2844_v20, %s2397_s24 }
 0x28b   :  { %671 = vrot.lane.b32.xlu2 %v2838_v18, %s2397_s24 }
 0x2cd   :  { %v574_v21 = vpop.permute.xlu2 %573 }
 0x2ce   :  { %2102 = vmatpush.xpose.msk.msrb.mxu3 %vm575_vm5, %v574_v21 }
 0x2d5   :  { %v572_v27 = vpop.permute.xlu2 %571 }
 0x2d6   :  { %2103 = vmatpush.xpose.msk.msrb.mxu3 %vm575_vm5, %v572_v27 }
 0x2d9   :  { %2104 = vmatmul.msk.f32.vlgmr.msrb.gmra.mxu3 %vm575_vm5, %v2844_v20 }
 0x2dd   :  { %v670_v13 = vpop.permute.xlu2 %669 }
 0x2e1   :  { %2105 = vmatmul.msk.f32.gmra.mxu3 %vm575_vm5, %v2838_v18 }
 0x2e5   :  { %v676_v22 = vpop.permute.xlu0 %675  ;;  %v672_v24 = vpop.permute.xlu2 %671 }
 0x2e6   :  { %2108 = vmatpush.xpose.msk.msra.mxu3 %vm575_vm5, %v676_v22 }
 0x2ed   :  { %v674_v23 = vpop.permute.xlu1 %673 }
 0x2ee   :  { %2109 = vmatpush.xpose.msk.msra.mxu3 %vm575_vm5, %v674_v23 }
 0x2f1   :  { %2110 = vmatmul.msk.f32.vlgmr.msra.gmra.mxu3 %vm575_vm5, %v670_v13 }
 0x2f2   :  { %819 = vmatpush.msrb.mxu3 %v565_v61 }
 0x2f9   :  { %2111 = vmatmul.msk.f32.gmra.mxu3 %vm575_vm5, %v672_v24 }
 0x35c   :  { %v601_v25 = vpop.f32.mrf.mxu3 }
 0x35d   :  { %v607_v26 = vmul.f32 0.35355338, %v601_v25 }
 0x35f   :  { %v609_v28 = vadd.f32 %v607_v26, %v2866_v62 }
 0x361   :  { %v612_v29 = vsel %vm611_vm8, %v609_v28, -inf }
 0x362   :  { %613 = vmax.xlane.f32.xlu2 %v612_v29 }
 0x364   :  { %v604_v30 = vpop.f32.mrf.mxu3 }
 0x365   :  { %v608_v31 = vmul.f32 0.35355338, %v604_v30 }
 0x367   :  { %v610_v34 = vadd.f32 %v608_v31, %v2792_v16 }
 0x369   :  { %v615_v35 = vsel %vm611_vm8, %v610_v34, -inf }
 0x36a   :  { %616 = vmax.xlane.f32.xlu0 %v615_v35  ;;  %v566_v35 = vld [vmem:[%s3258_s1 + $0xd8] sm:$0xff] }
 0x374   :  { %v702_v38 = vpop.f32.mrf.mxu3 }
 0x375   :  { %v708_v45 = vmul.f32 0.35355338, %v702_v38 }
 0x377   :  { %v710_v47 = vadd.f32 %v708_v45, %v2866_v62 }
 0x379   :  { %v712_v51 = vsel %vm611_vm8, %v710_v47, -inf }
 0x37a   :  { %2199 = vrot.lane.b32.xlu2 %v2874_v9, %s2398_s25 }
 0x37c   :  { %v705_v48 = vpop.f32.mrf.mxu3 }
 0x37d   :  { %v709_v50 = vmul.f32 0.35355338, %v705_v48 }
 0x37f   :  { %v711_v53 = vadd.f32 %v709_v50, %v2792_v16 }
 0x381   :  { %v715_v54 = vsel %vm611_vm8, %v711_v53, -inf }
 0x3d5   :  { %v614_v14 = vpop.xlane.xlu2 %613 }
 0x3d6   :  { %v618_v36 = vsub.f32 %v609_v28, %v614_v14 }
 0x3d8   :  { %v620_v37 = vmul.f32 1.442695, %v618_v36 }
 0x3da   :  { %2263 = vpow2.f32 %v620_v37 }
 0x3dd   :  { %v2200_v39 = vpop.permute.xlu2 %2199  ;;  %v617_v40 = vpop.xlane.xlu0 %616 }
 0x3de   :  { %v619_v41 = vsub.f32 %v610_v34, %v617_v40  ;;  %v2201_v42 = vunpack.i.l.bf16 %v2200_v39  ;;  %v2202_v44 = vunpack.i.h.bf16 %v2200_v39 }
 0x3e0   :  { %v2264_v33 = vpop.eup %2263  ;;  %v622_v43 = vmul.f32 1.442695, %v619_v41  ;;  %660 = vmatpush.msrb.mxu2 %v2201_v42 }
 0x3e1   :  { %v624_v46 = vsel %vm611_vm8, %v2264_v33, 0.0 }
 0x3e2   :  { %2265 = vpow2.f32 %v622_v43  ;;  %625 = vadd.xlane.f32.xlu1 %v624_v46  ;;  %661 = vmatpush.msrb.mxu2 %v2202_v44 }
 0x3e4   :  { %790 = vmatpush.msra.mxu2 %v566_v35  ;;  %v567_v35 = vld [vmem:[%s3258_s1 + $0xe0] sm:$0xff] }
 0x3e8   :  { %v2266_v49 = vpop.eup %2265 }
 0x3e9   :  { %v627_v52 = vsel %vm611_vm8, %v2266_v49, 0.0 }
 0x3ea   :  { %713 = vmax.xlane.f32.xlu1 %v712_v51  ;;  %628 = vadd.xlane.f32.xlu0 %v627_v52 }
 0x3f2   :  { %716 = vmax.xlane.f32.xlu0 %v715_v54 }
 0x403   :  { %833 = vrot.lane.b32.xlu1 %v2838_v18, %s2399_s26 }
 0x406   :  { %2204 = vrot.lane.b32.xlu0 %v2874_v9, %s2400_s27 }
 0x40b   :  { %962 = vrot.lane.b32.xlu1 %v2844_v20, %s2401_s29 }
 0x40e   :  { %964 = vrot.lane.b32.xlu0 %v2838_v18, %s2401_s29 }
 0x416   :  { %831 = vrot.lane.b32.xlu0 %v2844_v20, %s2399_s26 }
 0x41e   :  { %827 = vrot.lane.b32.xlu0 %v2844_v20, %s2402_s9 }
 0x426   :  { %829 = vrot.lane.b32.xlu0 %v2838_v18, %s2402_s9 }
 0x455   :  { %v626_v55 = vpop.xlane.xlu1 %625 }
 0x456   :  { %2267 = vrcp.f32 %v626_v55 }
 0x45c   :  { %v2268_v56 = vpop.eup %2267 }
 0x45d   :  { %v714_v57 = vpop.xlane.xlu1 %713  ;;  %v629_v58 = vpop.xlane.xlu0 %628  ;;  %v632_v59 = vmul.f32 %v2268_v56, %v2264_v33 }
 0x45e   :  { %v718_v60 = vsub.f32 %v710_v47, %v714_v57  ;;  %2269 = vrcp.f32 %v629_v58 }
 0x45f   :  { %2106 = vmatmul.msk.f32.vlgmr.msrb.gmra.mxu2 %vm611_vm8, %v632_v59 }
 0x460   :  { %v720_v63 = vmul.f32 1.442695, %v718_v60  ;;  %948 = vmatpush.msrb.mxu2 %v567_v35 }
 0x462   :  { %2271 = vpow2.f32 %v720_v63 }
 0x464   :  { %v2270_v0 = vpop.eup %2269 }
 0x465   :  { %v717_v1 = vpop.xlane.xlu0 %716  ;;  %v633_v2 = vmul.f32 %v2270_v0, %v2266_v49 }
 0x466   :  { %v719_v3 = vsub.f32 %v711_v53, %v717_v1 }
 0x467   :  { %2107 = vmatmul.msk.f32.gmra.mxu2 %vm611_vm8, %v633_v2 }
 0x468   :  { %v2272_v4 = vpop.eup %2271  ;;  %v722_v5 = vmul.f32 1.442695, %v719_v3 }
 0x469   :  { %v724_v7 = vsel %vm611_vm8, %v2272_v4, 0.0 }
 0x46a   :  { %2273 = vpow2.f32 %v722_v5  ;;  %725 = vadd.xlane.f32.xlu1 %v724_v7 }
 0x470   :  { %v2274_v8 = vpop.eup %2273 }
 0x471   :  { %v727_v10 = vsel %vm611_vm8, %v2274_v8, 0.0 }
 0x472   :  { %728 = vadd.xlane.f32.xlu2 %v727_v10 }
 0x475   :  { %v834_v17 = vpop.permute.xlu1 %833 }
 0x478   :  { %v2205_v11 = vpop.permute.xlu0 %2204 }
 0x479   :  { %v2206_v15 = vunpack.i.l.bf16 %v2205_v11  ;;  %v2207_v19 = vunpack.i.h.bf16 %v2205_v11 }
 0x47b   :  { %760 = vmatpush.msrb.mxu0 %v2206_v15 }
 0x47d   :  { %761 = vmatpush.msrb.mxu0 %v2207_v19  ;;  %v963_v27 = vpop.permute.xlu1 %962 }
 0x47f   :  { %2118 = vmatpush.xpose.msk.msra.mxu0 %vm575_vm5, %v834_v17 }
 0x480   :  { %v965_v21 = vpop.permute.xlu0 %964 }
 0x481   :  { %2126 = vmatpush.xpose.msk.msra.mxu3 %vm575_vm5, %v965_v21 }
 0x483   :  { %958 = vrot.lane.b32.xlu1 %v2844_v20, %s2403_s13 }
 0x485   :  { %2127 = vmatpush.xpose.msk.msra.mxu3 %vm575_vm5, %v963_v27 }
 0x488   :  { %v832_v22 = vpop.permute.xlu0 %831 }
 0x489   :  { %2119 = vmatpush.xpose.msk.msra.mxu0 %vm575_vm5, %v832_v22 }
 0x48a   :  { %960 = vrot.lane.b32.xlu2 %v2838_v18, %s2403_s13 }
 0x490   :  { %v828_v30 = vpop.permute.xlu0 %827 }
 0x498   :  { %v830_v34 = vpop.permute.xlu0 %829 }
 0x4dd   :  { %v726_v23 = vpop.xlane.xlu1 %725 }
 0x4de   :  { %2275 = vrcp.f32 %v726_v23 }
 0x4e2   :  { %v663_v13 = vpop.f32.mrf.mxu2 }
 0x4e3   :  { %2116 = vmatmul.msk.f32.vlgmr.msrb.gmra.mxu3 %vm575_vm5, %v663_v13 }
 0x4e4   :  { %v2276_v24 = vpop.eup %2275 }
 0x4e5   :  { %v729_v25 = vpop.xlane.xlu2 %728  ;;  %v732_v26 = vmul.f32 %v2276_v24, %v2272_v4 }
 0x4e6   :  { %2277 = vrcp.f32 %v729_v25 }
 0x4e7   :  { %2112 = vmatmul.msk.f32.vlgmr.msrb.gmra.mxu0 %vm611_vm8, %v732_v26 }
 0x4ea   :  { %v666_v20 = vpop.f32.mrf.mxu2 }
 0x4eb   :  { %2117 = vmatmul.msk.f32.gmra.mxu3 %vm575_vm5, %v666_v20 }
 0x4ec   :  { %v2278_v28 = vpop.eup %2277 }
 0x4ed   :  { %v733_v29 = vmul.f32 %v2278_v28, %v2274_v8  ;;  %v961_v31 = vpop.permute.xlu2 %960 }
 0x4ef   :  { %2113 = vmatmul.msk.f32.gmra.mxu0 %vm611_vm8, %v733_v29 }
 0x4f5   :  { %v959_v18 = vpop.permute.xlu1 %958 }
 0x4f6   :  { %2128 = vmatmul.msk.f32.vlgmr.msra.gmra.mxu3 %vm575_vm5, %v959_v18 }
 0x4f7   :  { %2120 = vmatmul.msk.f32.vlgmr.msra.gmra.mxu0 %vm575_vm5, %v828_v30 }
 0x4fe   :  { %2129 = vmatmul.msk.f32.gmra.mxu3 %vm575_vm5, %v961_v31 }
 0x4ff   :  { %2121 = vmatmul.msk.f32.gmra.mxu0 %vm575_vm5, %v830_v34 }
 0x564   :  { %v763_v14 = vpop.f32.mrf.mxu0 }
 0x565   :  { %2114 = vmatmul.msk.f32.vlgmr.msra.gmra.mxu2 %vm575_vm5, %v763_v14  ;;  %v568_v14 = vld [vmem:[%s3258_s1 + $0xe8] sm:$0xff] }
 0x566   :  { %v2925_v36 = vpop.f32.mrf.mxu3 }
 0x56c   :  { %v766_v37 = vpop.f32.mrf.mxu0 }
 0x56d   :  { %2115 = vmatmul.msk.f32.gmra.mxu2 %vm575_vm5, %v766_v37 }
 0x56e   :  { %v2928_v38 = vpop.f32.mrf.mxu3 }
 0x574   :  { %v860_v39 = vpop.f32.mrf.mxu0 }
 0x575   :  { %v866_v40 = vmul.f32 0.35355338, %v860_v39 }
 0x577   :  { %v868_v41 = vadd.f32 %v866_v40, %v2866_v62 }
 0x579   :  { %v991_v42 = vpop.f32.mrf.mxu3  ;;  %v870_v33 = vsel %vm611_vm8, %v868_v41, -inf }
 0x57a   :  { %v997_v43 = vmul.f32 0.35355338, %v991_v42  ;;  %871 = vmax.xlane.f32.xlu1 %v870_v33 }
 0x57c   :  { %v863_v44 = vpop.f32.mrf.mxu0  ;;  %v999_v45 = vadd.f32 %v997_v43, %v2866_v62 }
 0x57d   :  { %v867_v46 = vmul.f32 0.35355338, %v863_v44 }
 0x57e   :  { %v1001_v47 = vsel %vm611_vm8, %v999_v45, -inf }
 0x57f   :  { %1002 = vmax.xlane.f32.xlu2 %v1001_v47  ;;  %v869_v48 = vadd.f32 %v867_v46, %v2792_v16  ;;  %v2242_v46 = vld [vmem:[%s3258_s1 + $0xf0] ss:$0 sm:$0xff] }
 0x581   :  { %v994_v49 = vpop.f32.mrf.mxu3  ;;  %v873_v50 = vsel %vm611_vm8, %v869_v48, -inf }
 0x582   :  { %v998_v51 = vmul.f32 0.35355338, %v994_v49  ;;  %874 = vmax.xlane.f32.xlu0 %v873_v50 }
 0x584   :  { %v1000_v52 = vadd.f32 %v998_v51, %v2792_v16 }
 0x586   :  { %v1004_v53 = vsel %vm611_vm8, %v1000_v52, -inf }
 0x587   :  { %1005 = vmax.xlane.f32.xlu1 %v1004_v53 }
 0x5a0   :  { %2209 = vrot.lane.b32.xlu1 %v2874_v9, %s2404_s5 }
 0x5e8   :  { %v792_v42 = vpop.f32.mrf.mxu2 }
 0x5e9   :  { %v822_v44 = vadd.f32 %v2925_v36, %v792_v42  ;;  %v1207_v42 = vld [vmem:[%s3258_s1 + $0x168] sm:$0xff] }
 0x5ea   :  { %1225 = vmatpush.msrb.mxu3 %v1207_v42 }
 0x5ed   :  { %v872_v54 = vpop.xlane.xlu1 %871 }
 0x5ee   :  { %v876_v55 = vsub.f32 %v868_v41, %v872_v54 }
 0x5f0   :  { %v878_v56 = vmul.f32 1.442695, %v876_v55  ;;  %v795_v33 = vpop.f32.mrf.mxu2 }
 0x5f1   :  { %v825_v51 = vadd.f32 %v2928_v38, %v795_v33  ;;  %v1206_v33 = vld [vmem:[%s3258_s1 + $0x160] sm:$0xff] }
 0x5f2   :  { %2279 = vpow2.f32 %v878_v56  ;;  %v1003_v57 = vpop.xlane.xlu2 %1002  ;;  %1226 = vmatpush.msrb.mxu3 %v1206_v33 }
 0x5f3   :  { %v1007_v58 = vsub.f32 %v999_v45, %v1003_v57 }
 0x5f5   :  { %v1009_v59 = vmul.f32 1.442695, %v1007_v58  ;;  %v875_v60 = vpop.xlane.xlu0 %874 }
 0x5f6   :  { %v877_v61 = vsub.f32 %v869_v48, %v875_v60 }
 0x5f7   :  { %2281 = vpow2.f32 %v1009_v59 }
 0x5f8   :  { %v2280_v63 = vpop.eup %2279  ;;  %v880_v0 = vmul.f32 1.442695, %v877_v61 }
 0x5f9   :  { %v882_v1 = vsel %vm611_vm8, %v2280_v63, 0.0 }
 0x5fa   :  { %2283 = vpow2.f32 %v880_v0  ;;  %v1006_v2 = vpop.xlane.xlu1 %1005  ;;  %883 = vadd.xlane.f32.xlu0 %v882_v1 }
 0x5fb   :  { %v1008_v3 = vsub.f32 %v1000_v52, %v1006_v2 }
 0x5fd   :  { %v2282_v4 = vpop.eup %2281  ;;  %v1011_v5 = vmul.f32 1.442695, %v1008_v3 }
 0x5fe   :  { %v1013_v7 = vsel %vm611_vm8, %v2282_v4, 0.0 }
 0x5ff   :  { %2285 = vpow2.f32 %v1011_v5  ;;  %1014 = vadd.xlane.f32.xlu2 %v1013_v7  ;;  %v1148_v5 = vld [vmem:[%s3258_s1 + $0x110] sm:$0xff]  ;;  %v1147_v7 = vld [vmem:[%s3258_s1 + $0x108] sm:$0xff] }
 0x600   :  { %v2284_v8 = vpop.eup %2283 }
 0x601   :  { %v885_v10 = vsel %vm611_vm8, %v2284_v8, 0.0 }
 0x602   :  { %886 = vadd.xlane.f32.xlu0 %v885_v10 }
 0x605   :  { %v2286_v11 = vpop.eup %2285 }
 0x606   :  { %v1016_v15 = vsel %vm611_vm8, %v2286_v11, 0.0 }
 0x607   :  { %1017 = vadd.xlane.f32.xlu2 %v1016_v15 }
 0x612   :  { %v2210_v17 = vpop.permute.xlu1 %2209 }
 0x613   :  { %v2211_v19 = vunpack.i.l.bf16 %v2210_v17  ;;  %v2212_v21 = vunpack.i.h.bf16 %v2210_v17 }
 0x615   :  { %918 = vmatpush.msrb.mxu1 %v2211_v19 }
 0x616   :  { %2214 = vrot.lane.b32.xlu0 %v2874_v9, %s2405_s6 }
 0x617   :  { %919 = vmatpush.msrb.mxu1 %v2212_v21 }
 0x619   :  { %1079 = vmatpush.msra.mxu1 %v568_v14 }
 0x66d   :  { %v884_v27 = vpop.xlane.xlu0 %883 }
 0x66e   :  { %2287 = vrcp.f32 %v884_v27 }
 0x672   :  { %v1015_v26 = vpop.xlane.xlu2 %1014 }
 0x674   :  { %v2288_v22 = vpop.eup %2287 }
 0x675   :  { %v887_v23 = vpop.xlane.xlu0 %886  ;;  %v890_v13 = vmul.f32 %v2288_v22, %v2280_v63 }
 0x676   :  { %2289 = vrcp.f32 %v887_v23 }
 0x677   :  { %2122 = vmatmul.msk.f32.vlgmr.msrb.gmra.mxu1 %vm611_vm8, %v890_v13  ;;  %2291 = vrcp.f32 %v1015_v26 }
 0x67a   :  { %v1018_v20 = vpop.xlane.xlu2 %1017 }
 0x67b   :  { %2293 = vrcp.f32 %v1018_v20  ;;  %v2243_v20 = vld [vmem:[%s3258_s1 + $0xf8] ss:$0 sm:$0xff] }
 0x67c   :  { %v2290_v24 = vpop.eup %2289 }
 0x67d   :  { %v891_v25 = vmul.f32 %v2290_v24, %v2284_v8  ;;  %v2292_v29 = vpop.eup %2291 }
 0x67e   :  { %v1021_v18 = vmul.f32 %v2292_v29, %v2282_v4  ;;  %v1149_v4 = vld [vmem:[%s3258_s1 + $0x118] sm:$0xff] }
 0x67f   :  { %2123 = vmatmul.msk.f32.gmra.mxu1 %vm611_vm8, %v891_v25 }
 0x681   :  { %v2294_v31 = vpop.eup %2293 }
 0x682   :  { %v1022_v34 = vmul.f32 %v2294_v31, %v2286_v11 }
 0x688   :  { %v2215_v28 = vpop.permute.xlu0 %2214 }
 0x689   :  { %v2216_v30 = vunpack.i.l.bf16 %v2215_v28  ;;  %v2217_v9 = vunpack.i.h.bf16 %v2215_v28 }
 0x68b   :  { %1049 = vmatpush.msrb.mxu0 %v2216_v30 }
 0x68d   :  { %1050 = vmatpush.msrb.mxu0 %v2217_v9  ;;  %v2244_v9 = vld [vmem:[%s3258_s1 + $0x100] ss:$0 sm:$0xff] }
 0x68e   :  { %2130 = vmatmul.msk.f32.vlgmr.msrb.gmra.mxu0 %vm611_vm8, %v1021_v18 }
 0x696   :  { %2131 = vmatmul.msk.f32.gmra.mxu0 %vm611_vm8, %v1022_v34 }
 0x6f4   :  { %v921_v37 = vpop.f32.mrf.mxu1 }
 0x6f5   :  { %2124 = vmatmul.msk.f32.vlgmr.msrb.gmra.mxu2 %vm575_vm5, %v921_v37 }
 0x6fc   :  { %v924_v39 = vpop.f32.mrf.mxu1 }
 0x6fd   :  { %2125 = vmatmul.msk.f32.gmra.mxu2 %vm575_vm5, %v924_v39 }
 0x70b   :  { %v1052_v40 = vpop.f32.mrf.mxu0 }
 0x70c   :  { %2132 = vmatmul.msk.f32.vlgmr.msra.gmra.mxu1 %vm575_vm5, %v1052_v40 }
 0x713   :  { %v1055_v41 = vpop.f32.mrf.mxu0 }
 0x714   :  { %2133 = vmatmul.msk.f32.gmra.mxu1 %vm575_vm5, %v1055_v41 }
 0x778   :  { %v950_v43 = vpop.f32.mrf.mxu2 }
 0x779   :  { %v956_v45 = vadd.f32 %v950_v43, %v822_v44  ;;  %v1205_v43 = vld [vmem:[%s3258_s1 + $0x158] sm:$0xff]  ;;  %v1204_v44 = vld [vmem:[%s3258_s1 + $0x150] sm:$0xff] }
 0x77a   :  { %1227 = vmatpush.msrb.mxu3 %v1205_v43 }
 0x77c   :  { %1228 = vmatpush.msrb.mxu3 %v1204_v44 }
 0x780   :  { %v953_v50 = vpop.f32.mrf.mxu2 }
 0x781   :  { %v957_v53 = vadd.f32 %v953_v50, %v825_v51 }
 0x789   :  { %v1081_v47 = vpop.f32.mrf.mxu1 }
 0x78a   :  { %v1087_v48 = vadd.f32 %v1081_v47, %v956_v45  ;;  %v1203_v45 = vld [vmem:[%s3258_s1 + $0x148] sm:$0xff]  ;;  %v1201_v47 = vld [vmem:[%s3258_s1 + $0x138] sm:$0xff] }
 0x78b   :  { %1229 = vmatpush.msrb.mxu3 %v1203_v45 }
 0x78c   :  { %v1091_v49 = vadd.f32 %v2242_v46, %v1087_v48  ;;  %v1200_v48 = vld [vmem:[%s3258_s1 + $0x130] sm:$0xff] }
 0x78e   :  { %v1093_v52 = vadd.f32 %v1091_v49, %v2831_v12  ;;  %v2245_v49 = vld [vmem:[%s3258_s1 + $0x128] ss:$0 sm:$0xff] }
 0x790   :  { %v1097_v54 = vsel %vm472_vm9, %v1093_v52, 0.0 }
 0x791   :  { %v1084_v55 = vpop.f32.mrf.mxu1  ;;  %1098 = vadd.xlane.f32.xlu1 %v1097_v54 }
 0x792   :  { %v1088_v56 = vadd.f32 %v1084_v55, %v957_v53 }
 0x794   :  { %v1092_v36 = vadd.f32 %v2242_v46, %v1088_v56  ;;  %v1202_v46 = vld [vmem:[%s3258_s1 + $0x140] sm:$0xff] }
 0x795   :  { %1230 = vmatpush.msrb.mxu3 %v1202_v46 }
 0x796   :  { %v1094_v57 = vadd.f32 %v1092_v36, %v2827_v6  ;;  %v1150_v6 = vld [vmem:[%s3258_s1 + $0x120] sm:$0xff] }
 0x797   :  { %1171 = vmatpush.msra.mxu2 %v1150_v6  ;;  %1231 = vmatpush.msrb.mxu3 %v1201_v47 }
 0x798   :  { %v1100_v58 = vsel %vm472_vm9, %v1094_v57, 0.0 }
 0x799   :  { %1101 = vadd.xlane.f32.xlu2 %v1100_v58  ;;  %1172 = vmatpush.msra.mxu2 %v1149_v4 }
 0x79a   :  { %1232 = vmatpush.msrb.mxu3 %v1200_v48  ;;  %v2247_v48 = vld [vmem:[%s3258_s1 + $0x178] ss:$0 sm:$0xff] }
 0x79b   :  { %1173 = vmatpush.msra.mxu2 %v1148_v5  ;;  %v2246_v5 = vld [vmem:[%s3258_s1 + $0x170] ss:$0 sm:$0xff] }
 0x79d   :  { %1174 = vmatpush.msra.mxu2 %v1147_v7 }
 0x804   :  { %v1099_v59 = vpop.xlane.xlu1 %1098 }
 0x805   :  { %v1103_v60 = vmul.f32 %v1099_v59, %v2801_v32 }
 0x807   :  { %v1105_v61 = vsub.f32 %v1093_v52, %v1103_v60 }
 0x809   :  { %v1107_v63 = vmul.f32 %v1105_v61, %v1105_v61 }
 0x80b   :  { %v1109_v38 = vsel %vm472_vm9, %v1107_v63, 0.0 }
 0x80c   :  { %1110 = vadd.xlane.f32.xlu0 %v1109_v38  ;;  %v1102_v12 = vpop.xlane.xlu2 %1101 }
 0x80d   :  { %v1104_v0 = vmul.f32 %v1102_v12, %v2801_v32 }
 0x80f   :  { %v1106_v1 = vsub.f32 %v1094_v57, %v1104_v0 }
 0x811   :  { %v1108_v2 = vmul.f32 %v1106_v1, %v1106_v1 }
 0x813   :  { %v1112_v3 = vsel %vm472_vm9, %v1108_v2, 0.0 }
 0x814   :  { %1113 = vadd.xlane.f32.xlu2 %v1112_v3 }
 0x87f   :  { %v1111_v8 = vpop.xlane.xlu0 %1110 }
 0x880   :  { %v1115_v10 = vmul.f32 %v1111_v8, %v2801_v32 }
 0x882   :  { %v1117_v11 = vadd.f32 1e-05, %v1115_v10 }
 0x884   :  { %2295 = vrsqrt.f32 %v1117_v11  ;;  %vm1125_vm0 = vweird.f32 %v1117_v11 }
 0x887   :  { %v1114_v15 = vpop.xlane.xlu2 %1113 }
 0x888   :  { %v1116_v17 = vmul.f32 %v1114_v15, %v2801_v32 }
 0x88a   :  { %v2296_v19 = vpop.eup %2295  ;;  %v1118_v21 = vadd.f32 1e-05, %v1116_v17 }
 0x88b   :  { %v1120_v27 = vmul.f32 %v2296_v19, %v1117_v11  ;;  %vm1126_vm13 = vweird.f32 %v2296_v19 }
 0x88c   :  { %2297 = vrsqrt.f32 %v1118_v21  ;;  %vm1127_vm4 = vmor %vm1125_vm0, %vm1126_vm13  ;;  %vm1135_vm7 = vweird.f32 %v1118_v21 }
 0x88d   :  { %v1121_v22 = vmul.f32 %v2296_v19, %v1120_v27 }
 0x88f   :  { %v1122_v23 = vmul.f32 0.5, %v1121_v22 }
 0x891   :  { %v1123_v13 = vsub.f32 1.5, %v1122_v23 }
 0x892   :  { %v2298_v24 = vpop.eup %2297 }
 0x893   :  { %v1124_v25 = vmul.f32 %v2296_v19, %v1123_v13  ;;  %v1130_v26 = vmul.f32 %v2298_v24, %v1118_v21  ;;  %vm1136_vm1 = vweird.f32 %v2298_v24 }
 0x894   :  { %vm1137_vm10 = vmor %vm1135_vm7, %vm1136_vm1 }
 0x895   :  { %v1128_v28 = vsel %vm1127_vm4, %v2296_v19, %v1124_v25  ;;  %v1131_v29 = vmul.f32 %v2298_v24, %v1130_v26 }
 0x896   :  { %v1139_v30 = vmul.f32 %v1128_v28, %v1105_v61 }
 0x897   :  { %v1132_v18 = vmul.f32 0.5, %v1131_v29 }
 0x898   :  { %v1142_v31 = vmul.f32 %v2243_v20, %v1139_v30  ;;  %v1297_v30 = vld [vmem:[%s3258_s1 + $0x1a0] sm:$0xff] }
 0x899   :  { %v1133_v34 = vsub.f32 1.5, %v1132_v18  ;;  %1318 = vmatpush.msra.mxu0 %v1297_v30  ;;  %v1295_v18 = vld [vmem:[%s3258_s1 + $0x190] sm:$0xff] }
 0x89a   :  { %v1145_v35 = vadd.f32 %v2244_v9, %v1142_v31  ;;  %v1294_v31 = vld [vmem:[%s3258_s1 + $0x188] sm:$0xff] }
 0x89b   :  { %v1134_v14 = vmul.f32 %v2298_v24, %v1133_v34 }
 0x89c   :  { %2134 = vmatmul.msk.f32.vlgmr.msra.gmra.mxu2 %vm472_vm9, %v1145_v35 }
 0x89d   :  { %v1138_v37 = vsel %vm1137_vm10, %v2298_v24, %v1134_v14 }
 0x89e   :  { %v1140_v39 = vmul.f32 %v1138_v37, %v1106_v1 }
 0x8a0   :  { %v1143_v40 = vmul.f32 %v2243_v20, %v1140_v39 }
 0x8a2   :  { %v1146_v41 = vadd.f32 %v2244_v9, %v1143_v40  ;;  %v1296_v9 = vld [vmem:[%s3258_s1 + $0x198] sm:$0xff] }
 0x8a3   :  { %1319 = vmatpush.msra.mxu0 %v1296_v9 }
 0x8a4   :  { %2135 = vmatmul.msk.f32.gmra.mxu2 %vm472_vm9, %v1146_v41 }
 0x8a5   :  { %1320 = vmatpush.msra.mxu0 %v1295_v18 }
 0x8a7   :  { %1321 = vmatpush.msra.mxu0 %v1294_v31 }
 0x91f   :  { %v1176_v50 = vpop.f32.mrf.mxu2 }
 0x920   :  { %v1177_v51 = vadd.f32 %v2245_v49, %v1176_v50 }
 0x922   :  { %v1184_v52 = vmul.f32 0.044715, %v1177_v51  ;;  %v1182_v12 = vmul.f32 0.5, %v1177_v51 }
 0x924   :  { %v1186_v53 = vmul.f32 %v1184_v52, %v1177_v51  ;;  %v2248_v52 = vld [vmem:[%s3258_s1 + $0x180] ss:$0 sm:$0xff] }
 0x926   :  { %v1188_v54 = vmul.f32 %v1186_v53, %v1177_v51 }
 0x927   :  { %v1179_v55 = vpop.f32.mrf.mxu2 }
 0x928   :  { %v1190_v56 = vadd.f32 %v1188_v54, %v1177_v51  ;;  %v1180_v36 = vadd.f32 %v2245_v49, %v1179_v55 }
 0x92a   :  { %v1192_v57 = vmul.f32 0.7978846, %v1190_v56  ;;  %v1185_v58 = vmul.f32 0.044715, %v1180_v36  ;;  %v1183_v3 = vmul.f32 0.5, %v1180_v36 }
 0x92c   :  { %2299 = vtanh.f32 %v1192_v57  ;;  %v1187_v59 = vmul.f32 %v1185_v58, %v1180_v36 }
 0x92e   :  { %v1189_v60 = vmul.f32 %v1187_v59, %v1180_v36 }
 0x930   :  { %v1191_v61 = vadd.f32 %v1189_v60, %v1180_v36 }
 0x932   :  { %v2300_v63 = vpop.eup %2299  ;;  %v1193_v38 = vmul.f32 0.7978846, %v1191_v61  ;;  %v2249_v61 = vld [vmem:[%s3258_s1 + $0x1a8] ss:$0 sm:$0xff] }
 0x933   :  { %v1196_v0 = vadd.f32 1.0, %v2300_v63 }
 0x934   :  { %2301 = vtanh.f32 %v1193_v38 }
 0x935   :  { %v1198_v1 = vmul.f32 %v1196_v0, %v1182_v12 }
 0x937   :  { %2136 = vmatmul.msk.f32.vlgmr.msrb.gmra.mxu3 %vm1210_vm11, %v1198_v1 }
 0x93a   :  { %v2302_v2 = vpop.eup %2301 }
 0x93b   :  { %v1197_v6 = vadd.f32 1.0, %v2302_v2 }
 0x93d   :  { %v1199_v4 = vmul.f32 %v1197_v6, %v1183_v3 }
 0x93f   :  { %2137 = vmatmul.msk.f32.gmra.mxu3 %vm1210_vm11, %v1199_v4 }
 0x9ba   :  { %v1234_v7 = vpop.f32.mrf.mxu3 }
 0x9bb   :  { %v1235_v8 = vadd.f32 %v2246_v5, %v1234_v7 }
 0x9bd   :  { %v1240_v10 = vadd.f32 %v1235_v8, %v1145_v35 }
 0x9bf   :  { %v1244_v11 = vsel %vm472_vm9, %v1240_v10, 0.0 }
 0x9c0   :  { %1245 = vadd.xlane.f32.xlu2 %v1244_v11 }
 0x9c2   :  { %v1237_v15 = vpop.f32.mrf.mxu3 }
 0x9c3   :  { %v1238_v17 = vadd.f32 %v2246_v5, %v1237_v15 }
 0x9c5   :  { %v1241_v19 = vadd.f32 %v1238_v17, %v1146_v41 }
 0x9c7   :  { %v1247_v21 = vsel %vm472_vm9, %v1241_v19, 0.0 }
 0x9c8   :  { %1248 = vadd.xlane.f32.xlu2 %v1247_v21 }
 0xa33   :  { %v1246_v27 = vpop.xlane.xlu2 %1245 }
 0xa34   :  { %v1250_v22 = vmul.f32 %v1246_v27, %v2801_v32 }
 0xa36   :  { %v1252_v23 = vsub.f32 %v1240_v10, %v1250_v22 }
 0xa38   :  { %v1254_v13 = vmul.f32 %v1252_v23, %v1252_v23 }
 0xa3a   :  { %v1256_v24 = vsel %vm472_vm9, %v1254_v13, 0.0 }
 0xa3b   :  { %1257 = vadd.xlane.f32.xlu2 %v1256_v24  ;;  %v1249_v25 = vpop.xlane.xlu2 %1248 }
 0xa3c   :  { %v1251_v26 = vmul.f32 %v1249_v25, %v2801_v32 }
 0xa3e   :  { %v1253_v20 = vsub.f32 %v1241_v19, %v1251_v26 }
 0xa40   :  { %v1255_v28 = vmul.f32 %v1253_v20, %v1253_v20 }
 0xa42   :  { %v1259_v29 = vsel %vm472_vm9, %v1255_v28, 0.0 }
 0xa43   :  { %1260 = vadd.xlane.f32.xlu1 %v1259_v29 }
 0xaae   :  { %v1258_v34 = vpop.xlane.xlu2 %1257 }
 0xaaf   :  { %v1262_v35 = vmul.f32 %v1258_v34, %v2801_v32 }
 0xab1   :  { %v1264_v14 = vadd.f32 1e-05, %v1262_v35 }
 0xab3   :  { %2303 = vrsqrt.f32 %v1264_v14  ;;  %vm1272_vm14 = vweird.f32 %v1264_v14 }
 0xab6   :  { %v1261_v37 = vpop.xlane.xlu1 %1260 }
 0xab7   :  { %v1263_v39 = vmul.f32 %v1261_v37, %v2801_v32  ;;  %v1329_v37 = vld [vmem:[%s3258_s1 + $0x1b0] sm:$0xff] }
 0xab9   :  { %v2304_v40 = vpop.eup %2303  ;;  %v1265_v41 = vadd.f32 1e-05, %v1263_v39 }
 0xaba   :  { %v1267_v42 = vmul.f32 %v2304_v40, %v1264_v14  ;;  %vm1273_vm12 = vweird.f32 %v2304_v40 }
 0xabb   :  { %2305 = vrsqrt.f32 %v1265_v41  ;;  %vm1274_vm15 = vmor %vm1272_vm14, %vm1273_vm12  ;;  %vm1282_vm3 = vweird.f32 %v1265_v41 }
 0xabc   :  { %v1268_v33 = vmul.f32 %v2304_v40, %v1267_v42 }
 0xabe   :  { %v1269_v43 = vmul.f32 0.5, %v1268_v33 }
 0xac0   :  { %v1270_v44 = vsub.f32 1.5, %v1269_v43 }
 0xac1   :  { %v2306_v45 = vpop.eup %2305 }
 0xac2   :  { %v1271_v46 = vmul.f32 %v2304_v40, %v1270_v44  ;;  %v1277_v47 = vmul.f32 %v2306_v45, %v1265_v41  ;;  %vm1283_vm2 = vweird.f32 %v2306_v45 }
 0xac3   :  { %vm1284_vm6 = vmor %vm1282_vm3, %vm1283_vm2 }
 0xac4   :  { %v1275_v49 = vsel %vm1274_vm15, %v2304_v40, %v1271_v46  ;;  %v1278_v50 = vmul.f32 %v2306_v45, %v1277_v47 }
 0xac5   :  { %v1286_v51 = vmul.f32 %v1275_v49, %v1252_v23 }
 0xac6   :  { %v1279_v53 = vmul.f32 0.5, %v1278_v50 }
 0xac7   :  { %v1289_v54 = vmul.f32 %v2247_v48, %v1286_v51 }
 0xac8   :  { %v1280_v55 = vsub.f32 1.5, %v1279_v53 }
 0xac9   :  { %v3053_v56 = vadd.f32 %v2248_v52, %v1289_v54 }
 0xaca   :  { %v1281_v36 = vmul.f32 %v2306_v45, %v1280_v55 }
 0xacb   :  { %2138 = vmatmul.msk.f32.vlgmr.msra.gmra.mxu0 %vm472_vm9, %v3053_v56 }
 0xacc   :  { %v1285_v57 = vsel %vm1284_vm6, %v2306_v45, %v1281_v36 }
 0xacd   :  { %v1287_v58 = vmul.f32 %v1285_v57, %v1253_v20 }
 0xacf   :  { %v1290_v59 = vmul.f32 %v2247_v48, %v1287_v58 }
 0xad1   :  { %v3057_v60 = vadd.f32 %v2248_v52, %v1290_v59 }
 0xad3   :  { %2139 = vmatmul.msk.f32.gmra.mxu0 %vm472_vm9, %v3057_v60 }
 0xb48   :  { %v1323_v63 = vpop.f32.mrf.mxu0 }
 0xb49   :  { %v3064_v38 = vadd.f32 %v2249_v61, %v1323_v63 }
 0xb4b   :  { %1335 = vrot.lane.b32.xlu1 %v3064_v38, %s2396_s28 }
 0xb50   :  { %v1326_v12 = vpop.f32.mrf.mxu0 }
 0xb51   :  { %v1327_v0 = vadd.f32 %v2249_v61, %v1326_v12 }
 0xb53   :  { %1337 = vrot.lane.b32.xlu2 %v1327_v0, %s2396_s28  ;;  %1437 = vrot.lane.b32.xlu1 %v1327_v0, %s2395_s23  ;;  %v3071_v1 = vpack.i.bf16 %v3064_v38, %v1327_v0 }
 0xb5b   :  { %2219 = vrot.lane.b32.xlu2 %v3071_v1, %s2398_s25  ;;  %1726 = vrot.lane.b32.xlu1 %v1327_v0, %s2401_s29 }
 0xb63   :  { %1435 = vrot.lane.b32.xlu2 %v3064_v38, %s2395_s23  ;;  %1595 = vrot.lane.b32.xlu1 %v1327_v0, %s2399_s26 }
 0xb6b   :  { %1433 = vrot.lane.b32.xlu2 %v1327_v0, %s2397_s24  ;;  %1720 = vrot.lane.b32.xlu1 %v3064_v38, %s2403_s13 }
 0xb73   :  { %1724 = vrot.lane.b32.xlu2 %v3064_v38, %s2401_s29  ;;  %1722 = vrot.lane.b32.xlu1 %v1327_v0, %s2403_s13 }
 0xb7b   :  { %1593 = vrot.lane.b32.xlu2 %v3064_v38, %s2399_s26 }
 0xb83   :  { %1591 = vrot.lane.b32.xlu2 %v1327_v0, %s2402_s9 }
 0xbad   :  { %v1338_v2 = vpop.permute.xlu2 %1337 }
 0xbae   :  { %2140 = vmatpush.xpose.msk.msrb.mxu1 %vm575_vm5, %v1338_v2 }
 0xbb5   :  { %v2220_v3 = vpop.permute.xlu2 %2219 }
 0xbb6   :  { %v2221_v6 = vunpack.i.l.bf16 %v2220_v3  ;;  %v2222_v4 = vunpack.i.h.bf16 %v2220_v3 }
 0xbb8   :  { %1422 = vmatpush.msrb.mxu2 %v2221_v6 }
 0xbba   :  { %1423 = vmatpush.msrb.mxu2 %v2222_v4 }
 0xbbc   :  { %1581 = vmatpush.msra.mxu2 %v1329_v37 }
 0xbbd   :  { %v1436_v5 = vpop.permute.xlu2 %1435  ;;  %v1336_v7 = vpop.permute.xlu1 %1335 }
 0xbbe   :  { %2141 = vmatpush.xpose.msk.msrb.mxu1 %vm575_vm5, %v1336_v7 }
 0xbc1   :  { %2142 = vmatmul.msk.f32.vlgmr.msrb.gmra.mxu1 %vm575_vm5, %v3064_v38 }
 0xbc5   :  { %v1434_v8 = vpop.permute.xlu2 %1433  ;;  %v1438_v10 = vpop.permute.xlu1 %1437 }
 0xbc6   :  { %2146 = vmatpush.xpose.msk.msra.mxu3 %vm575_vm5, %v1438_v10 }
 0xbc9   :  { %2143 = vmatmul.msk.f32.gmra.mxu1 %vm575_vm5, %v1327_v0 }
 0xbca   :  { %2147 = vmatpush.xpose.msk.msra.mxu3 %vm575_vm5, %v1436_v5 }
 0xbcd   :  { %v1727_v11 = vpop.permute.xlu1 %1726  ;;  %v1725_v15 = vpop.permute.xlu2 %1724 }
 0xbd5   :  { %v1596_v17 = vpop.permute.xlu1 %1595  ;;  %v1594_v19 = vpop.permute.xlu2 %1593 }
 0xbd6   :  { %2156 = vmatpush.xpose.msk.msrb.mxu3 %vm575_vm5, %v1596_v17 }
 0xbda   :  { %2157 = vmatpush.xpose.msk.msrb.mxu3 %vm575_vm5, %v1594_v19 }
 0xbdd   :  { %v1592_v46 = vpop.permute.xlu2 %1591  ;;  %v1721_v49 = vpop.permute.xlu1 %1720 }
 0xbe5   :  { %v1723_v54 = vpop.permute.xlu1 %1722 }
 0xc3e   :  { %v1364_v21 = vpop.f32.mrf.mxu1 }
 0xc3f   :  { %v1370_v27 = vmul.f32 0.35355338, %v1364_v21 }
 0xc41   :  { %v1372_v22 = vadd.f32 %v1370_v27, %v2866_v62 }
 0xc43   :  { %v1374_v23 = vsel %vm611_vm8, %v1372_v22, -inf }
 0xc44   :  { %1375 = vmax.xlane.f32.xlu0 %v1374_v23 }
 0xc46   :  { %v1367_v13 = vpop.f32.mrf.mxu1 }
 0xc47   :  { %v1371_v24 = vmul.f32 0.35355338, %v1367_v13 }
 0xc49   :  { %v1373_v25 = vadd.f32 %v1371_v24, %v2792_v16 }
 0xc4b   :  { %v1377_v26 = vsel %vm611_vm8, %v1373_v25, -inf }
 0xc4c   :  { %1378 = vmax.xlane.f32.xlu0 %v1377_v26 }
 0xcb7   :  { %v1376_v20 = vpop.xlane.xlu0 %1375 }
 0xcb8   :  { %v1380_v28 = vsub.f32 %v1372_v22, %v1376_v20 }
 0xcba   :  { %v1382_v29 = vmul.f32 1.442695, %v1380_v28 }
 0xcbc   :  { %2307 = vpow2.f32 %v1382_v29 }
 0xcbf   :  { %v1379_v30 = vpop.xlane.xlu0 %1378 }
 0xcc0   :  { %v1381_v9 = vsub.f32 %v1373_v25, %v1379_v30 }
 0xcc2   :  { %v2308_v18 = vpop.eup %2307  ;;  %v1384_v31 = vmul.f32 1.442695, %v1381_v9 }
 0xcc3   :  { %v1386_v34 = vsel %vm611_vm8, %v2308_v18, 0.0 }
 0xcc4   :  { %2309 = vpow2.f32 %v1384_v31  ;;  %1387 = vadd.xlane.f32.xlu0 %v1386_v34 }
 0xcca   :  { %v2310_v35 = vpop.eup %2309 }
 0xccb   :  { %v1389_v14 = vsel %vm611_vm8, %v2310_v35, 0.0 }
 0xccc   :  { %1390 = vadd.xlane.f32.xlu0 %v1389_v14 }
 0xce0   :  { %1431 = vrot.lane.b32.xlu0 %v3064_v38, %s2397_s24 }
 0xce8   :  { %1589 = vrot.lane.b32.xlu0 %v3064_v38, %s2402_s9 }
 0xd37   :  { %v1388_v39 = vpop.xlane.xlu0 %1387 }
 0xd38   :  { %2311 = vrcp.f32 %v1388_v39 }
 0xd3e   :  { %v2312_v40 = vpop.eup %2311 }
 0xd3f   :  { %v1394_v41 = vmul.f32 %v2312_v40, %v2308_v18  ;;  %v1391_v42 = vpop.xlane.xlu0 %1390 }
 0xd40   :  { %2313 = vrcp.f32 %v1391_v42 }
 0xd41   :  { %2144 = vmatmul.msk.f32.vlgmr.msrb.gmra.mxu2 %vm611_vm8, %v1394_v41 }
 0xd42   :  { %2164 = vmatpush.xpose.msk.msrb.mxu2 %vm575_vm5, %v1727_v11 }
 0xd46   :  { %v2314_v33 = vpop.eup %2313  ;;  %2165 = vmatpush.xpose.msk.msrb.mxu2 %vm575_vm5, %v1725_v15 }
 0xd47   :  { %v1395_v43 = vmul.f32 %v2314_v33, %v2310_v35 }
 0xd49   :  { %2145 = vmatmul.msk.f32.gmra.mxu2 %vm611_vm8, %v1395_v43 }
 0xd52   :  { %v1432_v44 = vpop.permute.xlu0 %1431 }
 0xd53   :  { %2148 = vmatmul.msk.f32.vlgmr.msra.gmra.mxu3 %vm575_vm5, %v1432_v44 }
 0xd5a   :  { %v1590_v45 = vpop.permute.xlu0 %1589 }
 0xd5b   :  { %2149 = vmatmul.msk.f32.gmra.mxu3 %vm575_vm5, %v1434_v8 }
 0xd63   :  { %2158 = vmatmul.msk.f32.vlgmr.msrb.gmra.mxu3 %vm575_vm5, %v1590_v45 }
 0xd6b   :  { %2159 = vmatmul.msk.f32.gmra.mxu3 %vm575_vm5, %v1592_v46 }
 0xdc4   :  { %v1425_v47 = vpop.f32.mrf.mxu2 }
 0xdc5   :  { %2154 = vmatmul.msk.f32.vlgmr.msra.gmra.mxu2 %vm575_vm5, %v1425_v47 }
 0xdcc   :  { %v1428_v48 = vpop.f32.mrf.mxu2 }
 0xdcd   :  { %2155 = vmatmul.msk.f32.gmra.mxu2 %vm575_vm5, %v1428_v48 }
 0xdd5   :  { %2166 = vmatmul.msk.f32.vlgmr.msrb.gmra.mxu2 %vm575_vm5, %v1721_v49 }
 0xdd6   :  { %v1464_v50 = vpop.f32.mrf.mxu3 }
 0xdd7   :  { %v1470_v51 = vmul.f32 0.35355338, %v1464_v50 }
 0xdd9   :  { %v1472_v52 = vadd.f32 %v1470_v51, %v2866_v62 }
 0xddb   :  { %v1474_v53 = vsel %vm611_vm8, %v1472_v52, -inf }
 0xddc   :  { %1475 = vmax.xlane.f32.xlu0 %v1474_v53 }
 0xddd   :  { %2167 = vmatmul.msk.f32.gmra.mxu2 %vm575_vm5, %v1723_v54 }
 0xdde   :  { %v1467_v55 = vpop.f32.mrf.mxu3 }
 0xddf   :  { %v1471_v36 = vmul.f32 0.35355338, %v1467_v55 }
 0xde1   :  { %v1473_v57 = vadd.f32 %v1471_v36, %v2792_v16 }
 0xde3   :  { %v1477_v58 = vsel %vm611_vm8, %v1473_v57, -inf }
 0xde4   :  { %1478 = vmax.xlane.f32.xlu1 %v1477_v58 }
 0xde6   :  { %v1622_v59 = vpop.f32.mrf.mxu3 }
 0xde7   :  { %v1628_v61 = vmul.f32 0.35355338, %v1622_v59 }
 0xde9   :  { %v1630_v63 = vadd.f32 %v1628_v61, %v2866_v62 }
 0xdeb   :  { %v1632_v38 = vsel %vm611_vm8, %v1630_v63, -inf }
 0xdec   :  { %1633 = vmax.xlane.f32.xlu0 %v1632_v38 }
 0xdee   :  { %v1625_v12 = vpop.f32.mrf.mxu3 }
 0xdef   :  { %v1629_v0 = vmul.f32 0.35355338, %v1625_v12 }
 0xdf1   :  { %v1631_v2 = vadd.f32 %v1629_v0, %v2792_v16 }
 0xdf3   :  { %v1635_v3 = vsel %vm611_vm8, %v1631_v2, -inf }
 0xdf4   :  { %1636 = vmax.xlane.f32.xlu2 %v1635_v3 }
 0xe48   :  { %v3130_v6 = vpop.f32.mrf.mxu2 }
 0xe4f   :  { %v1476_v4 = vpop.xlane.xlu0 %1475 }
 0xe50   :  { %v1480_v5 = vsub.f32 %v1472_v52, %v1476_v4  ;;  %v3132_v7 = vpop.f32.mrf.mxu2 }
 0xe52   :  { %v1482_v8 = vmul.f32 1.442695, %v1480_v5 }
 0xe54   :  { %2315 = vpow2.f32 %v1482_v8 }
 0xe57   :  { %v1479_v10 = vpop.xlane.xlu1 %1478 }
 0xe58   :  { %v1481_v11 = vsub.f32 %v1473_v57, %v1479_v10  ;;  %v1753_v15 = vpop.f32.mrf.mxu2  ;;  %v1330_v57 = vld [vmem:[%s3258_s1 + $0x1b8] sm:$0xff] }
 0xe59   :  { %v1759_v17 = vmul.f32 0.35355338, %v1753_v15  ;;  %1552 = vmatpush.msra.mxu1 %v1330_v57 }
 0xe5a   :  { %v2316_v19 = vpop.eup %2315  ;;  %v1484_v21 = vmul.f32 1.442695, %v1481_v11 }
 0xe5b   :  { %v1486_v27 = vsel %vm611_vm8, %v2316_v19, 0.0  ;;  %v1761_v22 = vadd.f32 %v1759_v17, %v2866_v62 }
 0xe5c   :  { %2317 = vpow2.f32 %v1484_v21  ;;  %1487 = vadd.xlane.f32.xlu0 %v1486_v27  ;;  %v1331_v27 = vld [vmem:[%s3258_s1 + $0x1c0] sm:$0xff] }
 0xe5d   :  { %v1763_v23 = vsel %vm611_vm8, %v1761_v22, -inf  ;;  %1710 = vmatpush.msrb.mxu1 %v1331_v27 }
 0xe5e   :  { %1764 = vmax.xlane.f32.xlu2 %v1763_v23 }
 0xe5f   :  { %v1634_v13 = vpop.xlane.xlu0 %1633 }
 0xe60   :  { %v1638_v24 = vsub.f32 %v1630_v63, %v1634_v13  ;;  %v1756_v25 = vpop.f32.mrf.mxu2 }
 0xe61   :  { %v1760_v26 = vmul.f32 0.35355338, %v1756_v25 }
 0xe62   :  { %v2318_v20 = vpop.eup %2317  ;;  %v1640_v28 = vmul.f32 1.442695, %v1638_v24 }
 0xe63   :  { %v1762_v29 = vadd.f32 %v1760_v26, %v2792_v16  ;;  %v1489_v9 = vsel %vm611_vm8, %v2318_v20, 0.0 }
 0xe64   :  { %2319 = vpow2.f32 %v1640_v28 }
 0xe65   :  { %v1766_v30 = vsel %vm611_vm8, %v1762_v29, -inf }
 0xe66   :  { %1767 = vmax.xlane.f32.xlu1 %v1766_v30  ;;  %1490 = vadd.xlane.f32.xlu2 %v1489_v9  ;;  %v2250_v9 = vld [vmem:[%s3258_s1 + $0x1d0] ss:$0 sm:$0xff] }
 0xe67   :  { %v1637_v31 = vpop.xlane.xlu2 %1636 }
 0xe68   :  { %v1639_v34 = vsub.f32 %v1631_v2, %v1637_v31 }
 0xe6a   :  { %v2320_v62 = vpop.eup %2319  ;;  %v1642_v35 = vmul.f32 1.442695, %v1639_v34 }
 0xe6b   :  { %v1644_v18 = vsel %vm611_vm8, %v2320_v62, 0.0 }
 0xe6c   :  { %2321 = vpow2.f32 %v1642_v35 }
 0xe6e   :  { %1645 = vadd.xlane.f32.xlu2 %v1644_v18 }
 0xe72   :  { %v2322_v14 = vpop.eup %2321 }
 0xe73   :  { %v1647_v16 = vsel %vm611_vm8, %v2322_v14, 0.0 }
 0xe7f   :  { %2224 = vrot.lane.b32.xlu1 %v3071_v1, %s2400_s27 }
 0xea9   :  { %1648 = vadd.xlane.f32.xlu1 %v1647_v16 }
 0xecf   :  { %v1488_v47 = vpop.xlane.xlu0 %1487 }
 0xed1   :  { %v1765_v37 = vpop.xlane.xlu2 %1764 }
 0xed2   :  { %v1769_v39 = vsub.f32 %v1761_v22, %v1765_v37  ;;  %v1332_v22 = vld [vmem:[%s3258_s1 + $0x1c8] sm:$0xff] }
 0xed4   :  { %v1771_v40 = vmul.f32 1.442695, %v1769_v39 }
 0xed6   :  { %2323 = vpow2.f32 %v1771_v40 }
 0xed9   :  { %v1768_v41 = vpop.xlane.xlu1 %1767  ;;  %v1491_v48 = vpop.xlane.xlu2 %1490 }
 0xeda   :  { %v1770_v42 = vsub.f32 %v1762_v29, %v1768_v41 }
 0xedc   :  { %v2324_v33 = vpop.eup %2323  ;;  %v1773_v43 = vmul.f32 1.442695, %v1770_v42 }
 0xedd   :  { %v1775_v44 = vsel %vm611_vm8, %v2324_v33, 0.0 }
 0xede   :  { %2325 = vpow2.f32 %v1773_v43  ;;  %1776 = vadd.xlane.f32.xlu0 %v1775_v44 }
 0xedf   :  { %2327 = vrcp.f32 %v1488_v47 }
 0xee0   :  { %2329 = vrcp.f32 %v1491_v48 }
 0xee1   :  { %v1646_v36 = vpop.xlane.xlu2 %1645 }
 0xee2   :  { %2331 = vrcp.f32 %v1646_v36 }
 0xee4   :  { %v2326_v45 = vpop.eup %2325 }
 0xee5   :  { %v1778_v46 = vsel %vm611_vm8, %v2326_v45, 0.0  ;;  %v2328_v50 = vpop.eup %2327 }
 0xee6   :  { %1779 = vadd.xlane.f32.xlu2 %v1778_v46  ;;  %v1494_v53 = vmul.f32 %v2328_v50, %v2316_v19  ;;  %v2330_v54 = vpop.eup %2329  ;;  %v1911_v50 = vld [vmem:[%s3258_s1 + $0x1f8] sm:$0xff] }
 0xee7   :  { %v1495_v55 = vmul.f32 %v2330_v54, %v2318_v20 }
 0xee8   :  { %v2332_v38 = vpop.eup %2331 }
 0xee9   :  { %v1652_v3 = vmul.f32 %v2332_v38, %v2320_v62 }
 0xef1   :  { %v2225_v49 = vpop.permute.xlu1 %2224 }
 0xef2   :  { %v2226_v51 = vunpack.i.l.bf16 %v2225_v49  ;;  %2229 = vrot.lane.b32.xlu0 %v3071_v1, %s2405_s6  ;;  %v2227_v52 = vunpack.i.h.bf16 %v2225_v49 }
 0xef4   :  { %1522 = vmatpush.msrb.mxu0 %v2226_v51  ;;  %v1910_v51 = vld [vmem:[%s3258_s1 + $0x1f0] sm:$0xff] }
 0xef6   :  { %1523 = vmatpush.msrb.mxu0 %v2227_v52  ;;  %v1909_v52 = vld [vmem:[%s3258_s1 + $0x1e8] sm:$0xff] }
 0xef7   :  { %2150 = vmatmul.msk.f32.vlgmr.msrb.gmra.mxu0 %vm611_vm8, %v1494_v53 }
 0xefe   :  { %2234 = vrot.lane.b32.xlu2 %v3071_v1, %s2404_s5 }
 0xeff   :  { %2151 = vmatmul.msk.f32.gmra.mxu0 %vm611_vm8, %v1495_v55 }
 0xf1c   :  { %v1649_v61 = vpop.xlane.xlu1 %1648 }
 0xf51   :  { %v1777_v59 = vpop.xlane.xlu0 %1776 }
 0xf52   :  { %2333 = vrcp.f32 %v1777_v59 }
 0xf53   :  { %2335 = vrcp.f32 %v1649_v61 }
 0xf58   :  { %v2334_v1 = vpop.eup %2333 }
 0xf59   :  { %v1780_v58 = vpop.xlane.xlu2 %1779  ;;  %v1783_v8 = vmul.f32 %v2334_v1, %v2324_v33  ;;  %v2336_v10 = vpop.eup %2335 }
 0xf5a   :  { %2337 = vrcp.f32 %v1780_v58  ;;  %v1653_v15 = vmul.f32 %v2336_v10, %v2322_v14  ;;  %v2252_v10 = vld [vmem:[%s3258_s1 + $0x1e0] ss:$0 sm:$0xff] }
 0xf60   :  { %v2338_v11 = vpop.eup %2337 }
 0xf61   :  { %v2235_v63 = vpop.permute.xlu2 %2234  ;;  %v1784_v17 = vmul.f32 %v2338_v11, %v2326_v45 }
 0xf62   :  { %v2236_v12 = vunpack.i.l.bf16 %v2235_v63  ;;  %v2237_v0 = vunpack.i.h.bf16 %v2235_v63 }
 0xf64   :  { %v2230_v2 = vpop.permute.xlu0 %2229  ;;  %1680 = vmatpush.msra.mxu0 %v2236_v12 }
 0xf65   :  { %v2231_v4 = vunpack.i.l.bf16 %v2230_v2  ;;  %v2232_v5 = vunpack.i.h.bf16 %v2230_v2 }
 0xf66   :  { %1681 = vmatpush.msra.mxu0 %v2237_v0 }
 0xf67   :  { %2160 = vmatmul.msk.f32.vlgmr.msra.gmra.mxu0 %vm611_vm8, %v1652_v3  ;;  %1811 = vmatpush.msra.mxu3 %v2231_v4  ;;  %v2251_v3 = vld [vmem:[%s3258_s1 + $0x1d8] ss:$0 sm:$0xff] }
 0xf68   :  { %1841 = vmatpush.msrb.mxu0 %v1332_v22 }
 0xf69   :  { %1812 = vmatpush.msra.mxu3 %v2232_v5 }
 0xf6a   :  { %2168 = vmatmul.msk.f32.vlgmr.msra.gmra.mxu3 %vm611_vm8, %v1783_v8 }
 0xf6f   :  { %2161 = vmatmul.msk.f32.gmra.mxu0 %vm611_vm8, %v1653_v15 }
 0xf72   :  { %2169 = vmatmul.msk.f32.gmra.mxu3 %vm611_vm8, %v1784_v17 }
 0xf74   :  { %v1525_v19 = vpop.f32.mrf.mxu0 }
 0xf75   :  { %2152 = vmatmul.msk.f32.vlgmr.msra.gmra.mxu1 %vm575_vm5, %v1525_v19 }
 0xf7c   :  { %v1528_v21 = vpop.f32.mrf.mxu0 }
 0xf7d   :  { %2153 = vmatmul.msk.f32.gmra.mxu1 %vm575_vm5, %v1528_v21 }
 0xfe4   :  { %v1683_v23 = vpop.f32.mrf.mxu0 }
 0xfe5   :  { %2162 = vmatmul.msk.f32.vlgmr.msrb.gmra.mxu1 %vm575_vm5, %v1683_v23 }
 0xfec   :  { %v1686_v13 = vpop.f32.mrf.mxu0 }
 0xfed   :  { %2163 = vmatmul.msk.f32.gmra.mxu1 %vm575_vm5, %v1686_v13  ;;  %v1814_v24 = vpop.f32.mrf.mxu3 }
 0xfee   :  { %2170 = vmatmul.msk.f32.vlgmr.msrb.gmra.mxu0 %vm575_vm5, %v1814_v24  ;;  %v1969_v24 = vld [vmem:[%s3258_s1 + $0x248] sm:$0xff] }
 0xfef   :  { %1986 = vmatpush.msra.mxu2 %v1969_v24 }
 0xff2   :  { %v1554_v26 = vpop.f32.mrf.mxu1 }
 0xff3   :  { %v1584_v29 = vadd.f32 %v3130_v6, %v1554_v26  ;;  %v1967_v26 = vld [vmem:[%s3258_s1 + $0x238] sm:$0xff] }
 0xff5   :  { %v1817_v25 = vpop.f32.mrf.mxu3 }
 0xff6   :  { %2171 = vmatmul.msk.f32.gmra.mxu0 %vm575_vm5, %v1817_v25  ;;  %v1968_v25 = vld [vmem:[%s3258_s1 + $0x240] sm:$0xff] }
 0xff7   :  { %1987 = vmatpush.msra.mxu2 %v1968_v25  ;;  %v2255_v25 = vld [vmem:[%s3258_s1 + $0x258] ss:$0 sm:$0xff] }
 0xff9   :  { %1988 = vmatpush.msra.mxu2 %v1967_v26 }
 0xffa   :  { %v1557_v20 = vpop.f32.mrf.mxu1 }
 0xffb   :  { %v1587_v35 = vadd.f32 %v3132_v7, %v1557_v20  ;;  %v1966_v20 = vld [vmem:[%s3258_s1 + $0x230] sm:$0xff] }
 0xffc   :  { %1989 = vmatpush.msra.mxu2 %v1966_v20 }
0x1062   :  { %v1712_v28 = vpop.f32.mrf.mxu1 }
0x1063   :  { %v1718_v30 = vadd.f32 %v1712_v28, %v1584_v29  ;;  %v1965_v28 = vld [vmem:[%s3258_s1 + $0x228] sm:$0xff]  ;;  %v1964_v29 = vld [vmem:[%s3258_s1 + $0x220] sm:$0xff] }
0x1064   :  { %1990 = vmatpush.msra.mxu2 %v1965_v28  ;;  %v2256_v28 = vld [vmem:[%s3258_s1 + $0x260] ss:$0 sm:$0xff] }
0x1066   :  { %1991 = vmatpush.msra.mxu2 %v1964_v29 }
0x106a   :  { %v1715_v34 = vpop.f32.mrf.mxu1 }
0x106b   :  { %v1843_v62 = vpop.f32.mrf.mxu0  ;;  %v1719_v16 = vadd.f32 %v1715_v34, %v1587_v35 }
0x106c   :  { %v1849_v18 = vadd.f32 %v1843_v62, %v1718_v30  ;;  %v1963_v30 = vld [vmem:[%s3258_s1 + $0x218] sm:$0xff]  ;;  %v2253_v62 = vld [vmem:[%s3258_s1 + $0x208] ss:$0 sm:$0xff] }
0x106d   :  { %1992 = vmatpush.msra.mxu2 %v1963_v30 }
0x106e   :  { %v1853_v31 = vadd.f32 %v2250_v9, %v1849_v18 }
0x1070   :  { %v1855_v14 = vadd.f32 %v1853_v31, %v3053_v56 }
0x1072   :  { %v1859_v37 = vsel %vm472_vm9, %v1855_v14, 0.0 }
0x1073   :  { %v1846_v39 = vpop.f32.mrf.mxu0  ;;  %1860 = vadd.xlane.f32.xlu0 %v1859_v37 }
0x1074   :  { %v1850_v40 = vadd.f32 %v1846_v39, %v1719_v16 }
0x1076   :  { %v1854_v6 = vadd.f32 %v2250_v9, %v1850_v40  ;;  %v1962_v9 = vld [vmem:[%s3258_s1 + $0x210] sm:$0xff] }
0x1077   :  { %1993 = vmatpush.msra.mxu2 %v1962_v9 }
0x1078   :  { %v1856_v41 = vadd.f32 %v1854_v6, %v3057_v60  ;;  %v1912_v60 = vld [vmem:[%s3258_s1 + $0x200] sm:$0xff] }
0x1079   :  { %1933 = vmatpush.msra.mxu1 %v1912_v60  ;;  %v2254_v60 = vld [vmem:[%s3258_s1 + $0x250] ss:$0 sm:$0xff]  ;;  %s2407_s1 = smov 128  }
0x107a   :  { %v1862_v42 = vsel %vm472_vm9, %v1856_v41, 0.0 }
0x107b   :  { %1863 = vadd.xlane.f32.xlu2 %v1862_v42  ;;  %1934 = vmatpush.msra.mxu1 %v1911_v50 }
0x107d   :  { %1935 = vmatpush.msra.mxu1 %v1910_v51 }
0x107f   :  { %1936 = vmatpush.msra.mxu1 %v1909_v52 }
0x10e6   :  { %v1861_v33 = vpop.xlane.xlu0 %1860 }
0x10e7   :  { %v1865_v43 = vmul.f32 %v1861_v33, %v2801_v32 }
0x10e9   :  { %v1867_v44 = vsub.f32 %v1855_v14, %v1865_v43 }
0x10eb   :  { %v1869_v45 = vmul.f32 %v1867_v44, %v1867_v44 }
0x10ed   :  { %v1871_v7 = vsel %vm472_vm9, %v1869_v45, 0.0 }
0x10ee   :  { %1872 = vadd.xlane.f32.xlu1 %v1871_v7  ;;  %v1864_v56 = vpop.xlane.xlu2 %1863 }
0x10ef   :  { %v1866_v46 = vmul.f32 %v1864_v56, %v2801_v32 }
0x10f1   :  { %v1868_v47 = vsub.f32 %v1856_v41, %v1866_v46 }
0x10f3   :  { %v1870_v48 = vmul.f32 %v1868_v47, %v1868_v47 }
0x10f5   :  { %v1874_v49 = vsel %vm472_vm9, %v1870_v48, 0.0 }
0x10f6   :  { %1875 = vadd.xlane.f32.xlu0 %v1874_v49 }
0x1161   :  { %v1873_v53 = vpop.xlane.xlu1 %1872 }
0x1162   :  { %v1877_v54 = vmul.f32 %v1873_v53, %v2801_v32 }
0x1164   :  { %v1879_v55 = vadd.f32 1e-05, %v1877_v54 }
0x1166   :  { %2339 = vrsqrt.f32 %v1879_v55  ;;  %vm1887_vm8 = vweird.f32 %v1879_v55 }
0x1169   :  { %v1876_v36 = vpop.xlane.xlu0 %1875 }
0x116a   :  { %v1878_v57 = vmul.f32 %v1876_v36, %v2801_v32 }
0x116c   :  { %v2340_v58 = vpop.eup %2339  ;;  %v1880_v59 = vadd.f32 1e-05, %v1878_v57 }
0x116d   :  { %v1882_v61 = vmul.f32 %v2340_v58, %v1879_v55  ;;  %vm1888_vm5 = vweird.f32 %v2340_v58 }
0x116e   :  { %2341 = vrsqrt.f32 %v1880_v59  ;;  %vm1889_vm13 = vmor %vm1887_vm8, %vm1888_vm5  ;;  %vm1897_vm4 = vweird.f32 %v1880_v59 }
0x116f   :  { %v1883_v63 = vmul.f32 %v2340_v58, %v1882_v61 }
0x1171   :  { %v1884_v38 = vmul.f32 0.5, %v1883_v63 }
0x1173   :  { %v1885_v12 = vsub.f32 1.5, %v1884_v38 }
0x1174   :  { %v2342_v0 = vpop.eup %2341 }
0x1175   :  { %v1886_v2 = vmul.f32 %v2340_v58, %v1885_v12  ;;  %v1892_v1 = vmul.f32 %v2342_v0, %v1880_v59  ;;  %vm1898_vm0 = vweird.f32 %v2342_v0 }
0x1176   :  { %vm1899_vm1 = vmor %vm1897_vm4, %vm1898_vm0 }
0x1177   :  { %v1890_v4 = vsel %vm1889_vm13, %v2340_v58, %v1886_v2  ;;  %v1893_v5 = vmul.f32 %v2342_v0, %v1892_v1 }
0x1178   :  { %v1901_v8 = vmul.f32 %v1890_v4, %v1867_v44 }
0x1179   :  { %v1894_v11 = vmul.f32 0.5, %v1893_v5 }
0x117a   :  { %v1904_v15 = vmul.f32 %v2251_v3, %v1901_v8 }
0x117b   :  { %v1895_v17 = vsub.f32 1.5, %v1894_v11 }
0x117c   :  { %v1907_v19 = vadd.f32 %v2252_v10, %v1904_v15 }
0x117d   :  { %v1896_v21 = vmul.f32 %v2342_v0, %v1895_v17 }
0x117e   :  { %2172 = vmatmul.msk.f32.vlgmr.msra.gmra.mxu1 %vm472_vm9, %v1907_v19 }
0x117f   :  { %v1900_v27 = vsel %vm1899_vm1, %v2342_v0, %v1896_v21 }
0x1180   :  { %v1902_v22 = vmul.f32 %v1900_v27, %v1868_v47 }
0x1182   :  { %v1905_v23 = vmul.f32 %v2251_v3, %v1902_v22 }
0x1184   :  { %v1908_v13 = vadd.f32 %v2252_v10, %v1905_v23 }
0x1186   :  { %2173 = vmatmul.msk.f32.gmra.mxu1 %vm472_vm9, %v1908_v13 }
0x11fb   :  { %v1938_v18 = vpop.f32.mrf.mxu1 }
0x11fc   :  { %v1939_v31 = vadd.f32 %v2253_v62, %v1938_v18 }
0x11fe   :  { %v1946_v34 = vmul.f32 0.044715, %v1939_v31  ;;  %v1944_v45 = vmul.f32 0.5, %v1939_v31 }
0x1200   :  { %v1948_v35 = vmul.f32 %v1946_v34, %v1939_v31 }
0x1202   :  { %v1950_v14 = vmul.f32 %v1948_v35, %v1939_v31 }
0x1203   :  { %v1941_v16 = vpop.f32.mrf.mxu1 }
0x1204   :  { %v1952_v37 = vadd.f32 %v1950_v14, %v1939_v31  ;;  %v1942_v39 = vadd.f32 %v2253_v62, %v1941_v16 }
0x1206   :  { %v1954_v40 = vmul.f32 0.7978846, %v1952_v37  ;;  %v1947_v6 = vmul.f32 0.044715, %v1942_v39  ;;  %v1945_v47 = vmul.f32 0.5, %v1942_v39 }
0x1208   :  { %2343 = vtanh.f32 %v1954_v40  ;;  %v1949_v41 = vmul.f32 %v1947_v6, %v1942_v39 }
0x120a   :  { %v1951_v42 = vmul.f32 %v1949_v41, %v1942_v39 }
0x120c   :  { %v1953_v33 = vadd.f32 %v1951_v42, %v1942_v39 }
0x120e   :  { %v2344_v43 = vpop.eup %2343  ;;  %v1955_v44 = vmul.f32 0.7978846, %v1953_v33 }
0x120f   :  { %v1958_v7 = vadd.f32 1.0, %v2344_v43 }
0x1210   :  { %2345 = vtanh.f32 %v1955_v44 }
0x1211   :  { %v1960_v56 = vmul.f32 %v1958_v7, %v1944_v45 }
0x1213   :  { %2174 = vmatmul.msk.f32.vlgmr.msra.gmra.mxu2 %vm1210_vm11, %v1960_v56 }
0x1216   :  { %v2346_v46 = vpop.eup %2345 }
0x1217   :  { %v1959_v48 = vadd.f32 1.0, %v2346_v46 }
0x1219   :  { %v1961_v49 = vmul.f32 %v1959_v48, %v1945_v47 }
0x121b   :  { %2175 = vmatmul.msk.f32.gmra.mxu2 %vm1210_vm11, %v1961_v49 }
0x1296   :  { %v1995_v50 = vpop.f32.mrf.mxu2 }
0x1297   :  { %v1996_v51 = vadd.f32 %v2254_v60, %v1995_v50 }
0x1299   :  { %v2001_v52 = vadd.f32 %v1996_v51, %v1907_v19 }
0x129b   :  { %v2005_v53 = vsel %vm472_vm9, %v2001_v52, 0.0 }
0x129c   :  { %2006 = vadd.xlane.f32.xlu1 %v2005_v53 }
0x129e   :  { %v1998_v54 = vpop.f32.mrf.mxu2 }
0x129f   :  { %v1999_v55 = vadd.f32 %v2254_v60, %v1998_v54 }
0x12a1   :  { %v2002_v36 = vadd.f32 %v1999_v55, %v1908_v13 }
0x12a3   :  { %v2008_v57 = vsel %vm472_vm9, %v2002_v36, 0.0 }
0x12a4   :  { %2009 = vadd.xlane.f32.xlu0 %v2008_v57 }
0x130f   :  { %v2007_v58 = vpop.xlane.xlu1 %2006 }
0x1310   :  { %v2011_v59 = vmul.f32 %v2007_v58, %v2801_v32 }
0x1312   :  { %v2013_v61 = vsub.f32 %v2001_v52, %v2011_v59 }
0x1314   :  { %v2015_v63 = vmul.f32 %v2013_v61, %v2013_v61 }
0x1316   :  { %v2017_v38 = vsel %vm472_vm9, %v2015_v63, 0.0 }
0x1317   :  { %2018 = vadd.xlane.f32.xlu1 %v2017_v38  ;;  %v2010_v12 = vpop.xlane.xlu0 %2009 }
0x1318   :  { %v2012_v0 = vmul.f32 %v2010_v12, %v2801_v32 }
0x131a   :  { %v2014_v2 = vsub.f32 %v2002_v36, %v2012_v0 }
0x131c   :  { %v2016_v1 = vmul.f32 %v2014_v2, %v2014_v2 }
0x131e   :  { %v2020_v3 = vsel %vm472_vm9, %v2016_v1, 0.0 }
0x131f   :  { %2021 = vadd.xlane.f32.xlu2 %v2020_v3 }
0x138a   :  { %v2019_v4 = vpop.xlane.xlu1 %2018 }
0x138b   :  { %v2023_v5 = vmul.f32 %v2019_v4, %v2801_v32 }
0x138d   :  { %v2025_v8 = vadd.f32 1e-05, %v2023_v5 }
0x138f   :  { %2347 = vrsqrt.f32 %v2025_v8  ;;  %vm2033_vm10 = vweird.f32 %v2025_v8 }
0x1392   :  { %v2022_v10 = vpop.xlane.xlu2 %2021 }
0x1393   :  { %v2024_v11 = vmul.f32 %v2022_v10, %v2801_v32 }
0x1395   :  { %v2348_v15 = vpop.eup %2347  ;;  %v2026_v17 = vadd.f32 1e-05, %v2024_v11 }
0x1396   :  { %v2028_v19 = vmul.f32 %v2348_v15, %v2025_v8  ;;  %vm2034_vm7 = vweird.f32 %v2348_v15 }
0x1397   :  { %2349 = vrsqrt.f32 %v2026_v17  ;;  %vm2035_vm11 = vmor %vm2033_vm10, %vm2034_vm7  ;;  %vm2043_vm14 = vweird.f32 %v2026_v17 }
0x1398   :  { %v2029_v21 = vmul.f32 %v2348_v15, %v2028_v19 }
0x139a   :  { %v2030_v27 = vmul.f32 0.5, %v2029_v21 }
0x139c   :  { %v2031_v22 = vsub.f32 1.5, %v2030_v27 }
0x139d   :  { %v2350_v23 = vpop.eup %2349 }
0x139e   :  { %v2032_v13 = vmul.f32 %v2348_v15, %v2031_v22  ;;  %v2038_v24 = vmul.f32 %v2350_v23, %v2026_v17  ;;  %vm2044_vm12 = vweird.f32 %v2350_v23 }
0x139f   :  { %vm2045_vm15 = vmor %vm2043_vm14, %vm2044_vm12 }
0x13a0   :  { %v2036_v26 = vsel %vm2035_vm11, %v2348_v15, %v2032_v13  ;;  %v2039_v20 = vmul.f32 %v2350_v23, %v2038_v24 }
0x13a1   :  { %v2047_v32 = vmul.f32 %v2036_v26, %v2013_v61 }
0x13a2   :  { %v2040_v29 = vmul.f32 0.5, %v2039_v20 }
0x13a3   :  { %v2050_v30 = vmul.f32 %v2255_v25, %v2047_v32 }
0x13a4   :  { %v2041_v9 = vsub.f32 1.5, %v2040_v29 }
0x13a5   :  { %v2053_v62 = vadd.f32 %v2256_v28, %v2050_v30 }
0x13a6   :  { %v2042_v18 = vmul.f32 %v2350_v23, %v2041_v9 }
0x13a7   :  { %2055 = vst.msk [vmem:[#allocation5] sm:$0xff] %vm472_vm9, %v2053_v62 }
0x13a8   :  { %v2046_v31 = vsel %vm2045_vm15, %v2350_v23, %v2042_v18 }
0x13a9   :  { %v2048_v34 = vmul.f32 %v2046_v31, %v2014_v2 }
0x13ab   :  { %v2051_v35 = vmul.f32 %v2255_v25, %v2048_v34 }
0x13ad   :  { %v2054_v14 = vadd.f32 %v2256_v28, %v2051_v35 }
0x13af   :  { %2056 = vst.msk [vmem:[#allocation5 + $0x8] sm:$0xff] %vm472_vm9, %v2054_v14 }
0x13b0   :  { %2069 = dma.vmem_to_hbm [thread:$0]  %s2062_s19, 256, %s2064_s18, [#allocation3], %s2407_s1, %s2407_s1, %s2408_s10  }
0x13b1   :  { %2389 = dma.done.wait [#allocation3], 256  }
0x13b2   :  { %2390 = vsyncadd [#allocation3], 4294967040 }
0x13b3   :  { %2074 = vsyncpa [#allocation3], 1 }
0x13b4   :  { %2075 = vsyncpa [#allocation4], 1 }

</bundles_post_ra>
